<compile_context>
chip_gen: v7x
topology: tpu7x:2x2x1
jax: 0.10.0
libtpu: 0.0.40
codegen_flags: <defaults>
</compile_context>

<pallas_src>
import math

import jax
import jax.numpy as jnp
from jax.experimental import pallas as pl
from jax.experimental.pallas import tpu as pltpu

DIMS = 64                   # embedding width of the torch module
MAX_FREQ = 20000.0
MAX_VAL = 1.0e6             # torch clamp bound -- a no-op for sin/cos outputs
DEFAULT_TILE_PAIRS = 2048   # 4096 scalars / grid step; ~4.5 MiB VMEM incl. double buffers
                            # (fits the 32 MiB scoped default on all of v5e/v6e/v7x)


def _round_up(a: int, b: int) -> int:
    return (a + b - 1) // b * b


def fourier_embedding_kernel(x_ref, f_ref, w1_ref, b1_ref, w2_ref, b2_ref, o_ref):
    # x_ref:  (T, 2)        pairs of scalars (x[2i], x[2i+1])
    # f_ref:  (1, 128)      [freqs, freqs, freqs, freqs]  (freqs = pi * exp(logfreqs), 32 wide)
    # w1_ref: (128, 256)    blockdiag(w1, w1)   (w1 is the (64, 128) transposed torch weight)
    # b1_ref: (1, 256)      [b1, b1]            (float32)
    # w2_ref: (256, 128)    blockdiag(w2, w2)
    # b2_ref: (1, 128)      [b2, b2]            (float32)
    # o_ref:  (T, 128)      [out(x[2i]) | out(x[2i+1])] per row  -> reshapes to (2T, 64)
    xa = x_ref[:, 0:1]                                  # (T, 1)
    xb = x_ref[:, 1:2]                                  # (T, 1)

    # Fourier features for both scalars on one 128-lane vreg row:
    # lanes   0: 31 -> sin(xa * f),  32: 63 -> cos(xa * f)
    # lanes  64: 95 -> sin(xb * f),  96:127 -> cos(xb * f)
    lane = jax.lax.broadcasted_iota(jnp.int32, (x_ref.shape[0], 2 * DIMS), 1)
    xsel = jnp.where(lane < DIMS, xa, xb)               # lanes 0-63: xa, 64-127: xb
    arg = xsel * f_ref[...]                              # (T, 128)
    is_sin = (lane & (DIMS // 2)) == 0                   # lanes 0-31 and 64-95
    feat = jnp.where(is_sin, jnp.sin(arg), jnp.cos(arg))
    # torch clamp(+-MAX_VAL) omitted: sin/cos are already in [-1, 1].

    # lin_layer1 (+ SiLU) and lin_layer2, block-diagonal so the pair stays independent.
    feat = feat.astype(w1_ref.dtype)                     # optional bf16 MXU inputs
    h = jnp.dot(feat, w1_ref[...], preferred_element_type=jnp.float32) + b1_ref[...]
    h = h * jax.nn.sigmoid(h)                            # SiLU (sigmoid on the EUP)
    h = h.astype(w2_ref.dtype)
    out = jnp.dot(h, w2_ref[...], preferred_element_type=jnp.float32) + b2_ref[...]
    o_ref[...] = out.astype(o_ref.dtype)


def fourier_embedding(x, freqs, w1, b1, w2, b2, *,
                      tile_pairs: int = DEFAULT_TILE_PAIRS,
                      matmul_dtype=jnp.float32):
    """x: (N,) float32. freqs: (1, 32); w1: (64, 128); b1: (1, 128); w2: (128, 64);
    b2: (1, 64) (torch Linear weights pre-transposed to (in, out)). Returns (N, 64) f32.

    matmul_dtype=jnp.bfloat16 casts the MXU inputs (f32 accumulation) -- recommended on
    v5e if the small accuracy loss is acceptable.
    """
    assert x.ndim == 1, "Input tensor must be 1D"
    n = x.shape[0]

    # ---- pack parameters for the paired (2 scalars per kernel row) layout ------------
    f128 = jnp.tile(freqs, (1, 4))                                      # (1, 128)

    zw1 = jnp.zeros_like(w1)
    w1blk = jnp.concatenate(
        [jnp.concatenate([w1, zw1], axis=1),
         jnp.concatenate([zw1, w1], axis=1)], axis=0)                   # (128, 256)
    zw2 = jnp.zeros_like(w2)
    w2blk = jnp.concatenate(
        [jnp.concatenate([w2, zw2], axis=1),
         jnp.concatenate([zw2, w2], axis=1)], axis=0)                   # (256, 128)
    b1blk = jnp.concatenate([b1, b1], axis=-1)                          # (1, 256)
    b2blk = jnp.concatenate([b2, b2], axis=-1)                          # (1, 128)
    if matmul_dtype != jnp.float32:
        w1blk = w1blk.astype(matmul_dtype)
        w2blk = w2blk.astype(matmul_dtype)

    # ---- pad the batch to whole tiles of pairs ----------------------------------------
    n_pairs = max((n + 1) // 2, 1)
    tp = min(tile_pairs, _round_up(n_pairs, 8))                         # multiple of 8
    n_pairs_pad = _round_up(n_pairs, tp)
    n_tiles = n_pairs_pad // tp
    x_pad = jnp.zeros((2 * n_pairs_pad,), x.dtype).at[:n].set(x)
    x2 = x_pad.reshape(n_pairs_pad, 2)

    # advisory cost hint for XLA's scheduler
    flops = 4 * n_pairs_pad * (2 * DIMS) * (4 * DIMS)                   # two block-diag matmuls
    transcendentals = n_pairs_pad * (2 * DIMS + 2 * DIMS + 4 * DIMS)    # sin + cos + sigmoid
    bytes_accessed = 4 * (x2.size + n_pairs_pad * 2 * DIMS + w1blk.size + w2blk.size
                          + b1blk.size + b2blk.size + f128.size)

    out2 = pl.pallas_call(
        fourier_embedding_kernel,
        out_shape=jax.ShapeDtypeStruct((n_pairs_pad, 2 * DIMS), jnp.float32),
        grid_spec=pltpu.PrefetchScalarGridSpec(
            num_scalar_prefetch=0,
            grid=(n_tiles,),
            in_specs=[
                pl.BlockSpec((tp, 2), lambda i: (i, 0)),                    # x pairs
                pl.BlockSpec((1, 2 * DIMS), lambda i: (0, 0)),              # f128
                pl.BlockSpec((2 * DIMS, 4 * DIMS), lambda i: (0, 0)),       # w1 blockdiag
                pl.BlockSpec((1, 4 * DIMS), lambda i: (0, 0)),              # b1
                pl.BlockSpec((4 * DIMS, 2 * DIMS), lambda i: (0, 0)),       # w2 blockdiag
                pl.BlockSpec((1, 2 * DIMS), lambda i: (0, 0)),              # b2
            ],
            out_specs=pl.BlockSpec((tp, 2 * DIMS), lambda i: (i, 0)),       # lane-dense out
        ),
        compiler_params=pltpu.CompilerParams(
            dimension_semantics=("parallel",),          # shard the row grid across TCs (v7x)
            vmem_limit_bytes=32 * 1024 * 1024,
        ),
        cost_estimate=pl.CostEstimate(
            flops=flops, transcendentals=transcendentals, bytes_accessed=bytes_accessed),
    )(x2, f128, w1blk, b1blk, w2blk, b2blk)

    # (N/2, 128) -> (N, 64) is a free row-major reshape; drop the padding rows.
    return out2.reshape(2 * n_pairs_pad, DIMS)[:n]


def make_params(key):
    """Deterministic parameters matching the torch module's shapes (projection=True)."""
    logfreqs = jnp.linspace(0.0, math.log(MAX_FREQ), DIMS // 2, dtype=jnp.float32)
    const_freqs = (math.pi * jnp.exp(logfreqs)).reshape(1, DIMS // 2)
    k1, k2, k3, k4 = jax.random.split(key, 4)
    # torch Linear weights are (out, in); we store the transposed (in, out) form.
    w1 = jax.random.normal(k1, (DIMS, 2 * DIMS), dtype=jnp.float32) * (1.0 / math.sqrt(DIMS))
    b1 = jax.random.normal(k2, (1, 2 * DIMS), dtype=jnp.float32) * 0.01
    w2 = jax.random.normal(k3, (2 * DIMS, DIMS), dtype=jnp.float32) * (1.0 / math.sqrt(2 * DIMS))
    b2 = jax.random.normal(k4, (1, DIMS), dtype=jnp.float32) * 0.01
    return const_freqs, w1, b1, w2, b2


def reference(x, freqs, w1, b1, w2, b2):
    """Pure-JAX reference mirroring the torch forward pass (projection=True, SiLU)."""
    xp = freqs * x[:, None]
    xp = jnp.concatenate([jnp.sin(xp), jnp.cos(xp)], axis=-1)
    xp = jnp.clip(xp, -MAX_VAL, MAX_VAL)
    h = xp @ w1 + b1
    h = h * jax.nn.sigmoid(h)
    return h @ w2 + b2


if __name__ == "__main__":
    key = jax.random.PRNGKey(0)
    k_params, k_x = jax.random.split(key)
    freqs, w1, b1, w2, b2 = make_params(k_params)

    N = 201  # odd, exercises pair/tile padding; small per instructions
    x = jax.random.uniform(k_x, (N,), dtype=jnp.float32) * 10.0

    out = fourier_embedding(x, freqs, w1, b1, w2, b2)
    jax.block_until_ready(out)

    ref = reference(x, freqs, w1, b1, w2, b2)
    assert out.shape == (N, DIMS)
    max_err = float(jnp.max(jnp.abs(out - ref)))
    assert jnp.allclose(out, ref, atol=1e-3, rtol=1e-3), f"mismatch vs JAX reference: {max_err}"
    print("KERNEL_OK")
</pallas_src>

<mosaic_0001>
module attributes {stable_mosaic.version = 11 : i64} {
  func.func @fourier_embedding_kernel(%arg0: i32, %arg1: memref<104x2xf32, #tpu.memory_space<vmem>>, %arg2: memref<1x128xf32, #tpu.memory_space<vmem>>, %arg3: memref<128x256xf32, #tpu.memory_space<vmem>>, %arg4: memref<1x256xf32, #tpu.memory_space<vmem>>, %arg5: memref<256x128xf32, #tpu.memory_space<vmem>>, %arg6: memref<1x128xf32, #tpu.memory_space<vmem>>, %arg7: memref<104x128xf32, #tpu.memory_space<vmem>>) attributes {dimension_semantics = [#tpu.dimension_semantics<parallel>], iteration_bounds = array<i64: 1>, scalar_prefetch = 0 : i64, scratch_operands = 0 : i64, tpu.core_type = #tpu.core_type<tc>, window_params = [{transform_indices = @transform_0, window_bounds = array<i64: 104, 2>}, {pipeline_mode = #tpu.pipeline_mode<synchronous>, transform_indices = @transform_1, window_bounds = array<i64: 1, 128>}, {pipeline_mode = #tpu.pipeline_mode<synchronous>, transform_indices = @transform_2, window_bounds = array<i64: 128, 256>}, {pipeline_mode = #tpu.pipeline_mode<synchronous>, transform_indices = @transform_3, window_bounds = array<i64: 1, 256>}, {pipeline_mode = #tpu.pipeline_mode<synchronous>, transform_indices = @transform_4, window_bounds = array<i64: 256, 128>}, {pipeline_mode = #tpu.pipeline_mode<synchronous>, transform_indices = @transform_5, window_bounds = array<i64: 1, 128>}, {transform_indices = @transform_6, window_bounds = array<i64: 104, 128>}]} {
    %c0 = arith.constant 0 : index
    %c0_0 = arith.constant 0 : index
    %0 = vector.load %arg1[%c0, %c0_0] : memref<104x2xf32, #tpu.memory_space<vmem>>, vector<104x1xf32>
    %c0_1 = arith.constant 0 : index
    %c1 = arith.constant 1 : index
    %1 = vector.load %arg1[%c0_1, %c1] : memref<104x2xf32, #tpu.memory_space<vmem>>, vector<104x1xf32>
    %2 = tpu.iota {dimensions = array<i32: 1>} : vector<104x128xi32>
    %c64_i32 = arith.constant 64 : i32
    %3 = vector.broadcast %c64_i32 : i32 to vector<104x128xi32>
    %4 = arith.cmpi slt, %2, %3 : vector<104x128xi32>
    %5 = vector.shape_cast %0 : vector<104x1xf32> to vector<104x1xf32>
    %6 = vector.broadcast %5 : vector<104x1xf32> to vector<104x128xf32>
    %7 = vector.shape_cast %1 : vector<104x1xf32> to vector<104x1xf32>
    %8 = vector.broadcast %7 : vector<104x1xf32> to vector<104x128xf32>
    %9 = arith.select %4, %6, %8 : vector<104x128xi1>, vector<104x128xf32>
    %c0_2 = arith.constant 0 : index
    %c0_3 = arith.constant 0 : index
    %10 = vector.load %arg2[%c0_2, %c0_3] : memref<1x128xf32, #tpu.memory_space<vmem>>, vector<1x128xf32>
    %11 = vector.broadcast %10 : vector<1x128xf32> to vector<104x128xf32>
    %12 = arith.mulf %9, %11 : vector<104x128xf32>
    %c32_i32 = arith.constant 32 : i32
    %13 = vector.broadcast %c32_i32 : i32 to vector<104x128xi32>
    %14 = arith.andi %2, %13 : vector<104x128xi32>
    %c0_i32 = arith.constant 0 : i32
    %15 = vector.broadcast %c0_i32 : i32 to vector<104x128xi32>
    %16 = arith.cmpi eq, %14, %15 : vector<104x128xi32>
    %17 = math.sin %12 : vector<104x128xf32>
    %18 = math.cos %12 : vector<104x128xf32>
    %19 = arith.select %16, %17, %18 : vector<104x128xi1>, vector<104x128xf32>
    %c0_4 = arith.constant 0 : index
    %c0_5 = arith.constant 0 : index
    %20 = vector.load %arg3[%c0_4, %c0_5] : memref<128x256xf32, #tpu.memory_space<vmem>>, vector<128x256xf32>
    %cst = arith.constant dense<0.000000e+00> : vector<104x256xf32>
    %21 = tpu.matmul %19, %20, %cst {dimension_numbers = #tpu.dot_dimension_numbers<[1], [0], [0], [1], [0, 0, 1, 1], [], []>} : vector<104x128xf32>, vector<128x256xf32>, vector<104x256xf32> -> vector<104x256xf32>
    %c0_6 = arith.constant 0 : index
    %c0_7 = arith.constant 0 : index
    %22 = vector.load %arg4[%c0_6, %c0_7] : memref<1x256xf32, #tpu.memory_space<vmem>>, vector<1x256xf32>
    %23 = vector.broadcast %22 : vector<1x256xf32> to vector<104x256xf32>
    %24 = arith.addf %21, %23 : vector<104x256xf32>
    %25 = arith.negf %24 : vector<104x256xf32>
    %26 = math.exp %25 : vector<104x256xf32>
    %cst_8 = arith.constant 1.000000e+00 : f32
    %27 = vector.broadcast %cst_8 : f32 to vector<104x256xf32>
    %28 = arith.addf %27, %26 : vector<104x256xf32>
    %29 = arith.divf %27, %28 : vector<104x256xf32>
    %30 = arith.mulf %24, %29 : vector<104x256xf32>
    %c0_9 = arith.constant 0 : index
    %c0_10 = arith.constant 0 : index
    %31 = vector.load %arg5[%c0_9, %c0_10] : memref<256x128xf32, #tpu.memory_space<vmem>>, vector<256x128xf32>
    %cst_11 = arith.constant dense<0.000000e+00> : vector<104x128xf32>
    %32 = tpu.matmul %30, %31, %cst_11 {dimension_numbers = #tpu.dot_dimension_numbers<[1], [0], [0], [1], [0, 0, 1, 1], [], []>} : vector<104x256xf32>, vector<256x128xf32>, vector<104x128xf32> -> vector<104x128xf32>
    %c0_12 = arith.constant 0 : index
    %c0_13 = arith.constant 0 : index
    %33 = vector.load %arg6[%c0_12, %c0_13] : memref<1x128xf32, #tpu.memory_space<vmem>>, vector<1x128xf32>
    %34 = vector.broadcast %33 : vector<1x128xf32> to vector<104x128xf32>
    %35 = arith.addf %32, %34 : vector<104x128xf32>
    %c0_14 = arith.constant 0 : index
    %c0_15 = arith.constant 0 : index
    %36 = vector.load %arg7[%c0_14, %c0_15] : memref<104x128xf32, #tpu.memory_space<vmem>>, vector<104x128xf32>
    tpu.vector_store %arg7[%c0_14, %c0_15], %35 {strides = array<i32>} : memref<104x128xf32, #tpu.memory_space<vmem>>, vector<104x128xf32>,
    return
  }
  func.func @transform_0(%arg0: i32) -> (i32, i32) {
    %c0_i32 = arith.constant 0 : i32
    %c0_i32_0 = arith.constant 0 : i32
    return %arg0, %c0_i32 : i32, i32
  }
  func.func @transform_1(%arg0: i32) -> (i32, i32) {
    %c0_i32 = arith.constant 0 : i32
    %c0_i32_0 = arith.constant 0 : i32
    %c0_i32_1 = arith.constant 0 : i32
    return %c0_i32, %c0_i32_0 : i32, i32
  }
  func.func @transform_2(%arg0: i32) -> (i32, i32) {
    %c0_i32 = arith.constant 0 : i32
    %c0_i32_0 = arith.constant 0 : i32
    %c0_i32_1 = arith.constant 0 : i32
    return %c0_i32, %c0_i32_0 : i32, i32
  }
  func.func @transform_3(%arg0: i32) -> (i32, i32) {
    %c0_i32 = arith.constant 0 : i32
    %c0_i32_0 = arith.constant 0 : i32
    %c0_i32_1 = arith.constant 0 : i32
    return %c0_i32, %c0_i32_0 : i32, i32
  }
  func.func @transform_4(%arg0: i32) -> (i32, i32) {
    %c0_i32 = arith.constant 0 : i32
    %c0_i32_0 = arith.constant 0 : i32
    %c0_i32_1 = arith.constant 0 : i32
    return %c0_i32, %c0_i32_0 : i32, i32
  }
  func.func @transform_5(%arg0: i32) -> (i32, i32) {
    %c0_i32 = arith.constant 0 : i32
    %c0_i32_0 = arith.constant 0 : i32
    %c0_i32_1 = arith.constant 0 : i32
    return %c0_i32, %c0_i32_0 : i32, i32
  }
  func.func @transform_6(%arg0: i32) -> (i32, i32) {
    %c0_i32 = arith.constant 0 : i32
    %c0_i32_0 = arith.constant 0 : i32
    return %arg0, %c0_i32 : i32, i32
  }
}

</mosaic_0001>

<bundles_post_ra>
// kernel: tpu_custom_call.1
= control target key start
LH: loop header
LB: loop body
LE: loop exit
PB: predicated region body
PF: predicated region fallthrough
CT: control target
= control target key end

     0   :  { %11 = vsyncpa [#allocation3], 0  ;;  %s5550_s0 = inlined_call_operand.vmem [shape: f32[104,2], index: 0, kind: input, shape index: {}]   ;;  %s5551_s1 = inlined_call_operand.vmem [shape: f32[1,128], index: 1, kind: input, shape index: {}]   ;;  %s5552_s2 = inlined_call_operand.hbm [shape: f32[128,256], index: 2, kind: input, shape index: {}]   ;;  %s5553_s3 = inlined_call_operand.vmem [shape: f32[1,256], index: 3, kind: input, shape index: {}]   ;;  %s5554_s4 = inlined_call_operand.hbm [shape: f32[256,128], index: 4, kind: input, shape index: {}]   ;;  %s5555_s5 = inlined_call_operand.vmem [shape: f32[1,128], index: 5, kind: input, shape index: {}]   ;;  %s5556_s6 = inlined_call_operand.hbm [shape: f32[104,128], index: 6, kind: output, shape index: {}]  }
   0x1   :  { %12 = vsyncpa [#allocation6], 0 }
   0x2   :  { %13 = vsyncpa [#allocation4], 0  ;;  %s4062_s21 = smov [#allocation2]   ;;  %s3990_s25 = scalar_lea.hbm %s5552_s2, 4096 }
   0x3   :  { %s23_s22 = sshll.u32 %s4062_s21, 4  ;;  %p3991_p0 = scmp.ne.s32.totalorder %s5552_s2, %s3990_s25  ;;  %s24_s22 = int_to_ptr.vmem [resolvable:$true] %s23_s22 }
   0x4   :  { %p3994_p1 = scmp.lt.u32.totalorder %s3990_s25, %s5552_s2 }
   0x6   :  { %p3996_p2 = pnand %p3994_p1, %p3991_p0 }
   0x8   :  { %3999 = shalt.err (!%p3996_p2)
}
   0x9   :  { %s4000_s30 = scalar_lea.vmem %s24_s22, 4096  ;;  %p4005_p4 = scmp.lt.s32.totalorder %s24_s22, %s24_s22 }
   0xa   :  { %p4001_p3 = scmp.ne.s32.totalorder %s24_s22, %s4000_s30  ;;  %p4006_p5 = scmp.lt.s32.totalorder %s4000_s30, %s4000_s30 }
   0xc   :  { %p4007_p6 = por %p4006_p5, %p4005_p4 }
   0xe   :  { %p4008_p7 = pnand %p4007_p6, %p4001_p3 }
  0x10   :  { %4011 = shalt.err (!%p4008_p7)
}
  0x11   :  { %s4063_s7 = smov 256   ;;  %s4064_s8 = smov 16  }
  0x12   :  { %29 = dma.hbm_to_vmem [thread:$0]  %s5552_s2, 4096, %s24_s22, [#allocation3], %s4063_s7, %s4063_s7, %s4064_s8  }
  0x13   :  { %s4065_s11 = smov [#allocation5]   ;;  %s4012_s15 = scalar_lea.hbm %s5554_s4, 4096 }
  0x14   :  { %s37_s12 = sshll.u32 %s4065_s11, 4  ;;  %p4013_p8 = scmp.ne.s32.totalorder %s5554_s4, %s4012_s15  ;;  %s38_s12 = int_to_ptr.vmem [resolvable:$true] %s37_s12 }
  0x15   :  { %p4016_p9 = scmp.lt.u32.totalorder %s4012_s15, %s5554_s4 }
  0x17   :  { %p4018_p10 = pnand %p4016_p9, %p4013_p8 }
  0x19   :  { %4021 = shalt.err (!%p4018_p10)
}
  0x1a   :  { %s4022_s20 = scalar_lea.vmem %s38_s12, 4096  ;;  %p4027_p12 = scmp.lt.s32.totalorder %s38_s12, %s38_s12 }
  0x1b   :  { %p4023_p11 = scmp.ne.s32.totalorder %s38_s12, %s4022_s20  ;;  %p4028_p13 = scmp.lt.s32.totalorder %s4022_s20, %s4022_s20 }
  0x1d   :  { %p4029_p0 = por %p4028_p13, %p4027_p12 }
  0x1f   :  { %p4030_p1 = pnand %p4029_p0, %p4023_p11 }
  0x21   :  { %4033 = shalt.err (!%p4030_p1)
}
  0x22   :  { %s4066_s2 = smov 128   ;;  %s4067_s21 = smov 8  }
  0x23   :  { %43 = dma.hbm_to_vmem [thread:$0]  %s5554_s4, 4096, %s38_s12, [#allocation6], %s4066_s2, %s4066_s2, %s4067_s21  }
  0x24   :  { %4056 = dma.done.wait [#allocation3], 4096  }
  0x25   :  { %4057 = vsyncadd [#allocation3], 4294963200 }
  0x26   :  { %4058 = dma.done.wait [#allocation6], 4096  }
  0x27   :  { %4059 = vsyncadd [#allocation6], 4294963200  ;;  %v4068_v0 = vmov 0   ;;  %v53_v1 = vld [vmem:[%s5550_s0 + $0x8] sm:$0xff]  ;;  %v52_v2 = vld [vmem:[%s5550_s0] sm:$0xff]  ;;  %v4069_v3 = vmov 1   ;;  %v5557_v15 = vlaneseq }
  0x28   :  { %3830 = vset.pattern.permute.xlu1 %v4068_v0  ;;  %3828 = vset.pattern.permute.xlu0 %v4068_v0  ;;  %v54_v4 = vld [vmem:[%s5550_s0 + $0x10] sm:$0xff]  ;;  %v55_v5 = vld [vmem:[%s5550_s0 + $0x18] sm:$0xff]  ;;  %v56_v6 = vld [vmem:[%s5550_s0 + $0x20] sm:$0xff]  ;;  %v5577_v62 = vmov 683565275  }
  0x29   :  { %75 = vperm.xlu1 %3830, %v53_v1   ;;  %70 = vperm.xlu0 %3828, %v52_v2   ;;  %v57_v7 = vld [vmem:[%s5550_s0 + $0x28] sm:$0xff]  ;;  %v58_v8 = vld [vmem:[%s5550_s0 + $0x30] sm:$0xff]  ;;  %v59_v9 = vld [vmem:[%s5550_s0 + $0x38] sm:$0xff]  ;;  %v4180_v16 = vand.u32 127, %v5557_v15 }
  0x2a   :  { %v60_v10 = vld [vmem:[%s5550_s0 + $0x40] sm:$0xff]  ;;  %v61_v11 = vld [vmem:[%s5550_s0 + $0x48] sm:$0xff]  ;;  %v62_v12 = vld [vmem:[%s5550_s0 + $0x50] sm:$0xff] }
  0x2b   :  { %v63_v13 = vld [vmem:[%s5550_s0 + $0x58] sm:$0xff]  ;;  %v64_v14 = vld [vmem:[%s5550_s0 + $0x60] sm:$0xff]  ;;  %vm67_vm0 = vcmp.lt.s32.totalorder %v4180_v16, 64 }
  0x2c   :  { %v4186_v19 = vld [vmem:[%s5551_s1] ss:$0 sm:$0xff] }
  0x2d   :  { %3831 = vset.pattern.permute.xlu1 %v4069_v3  ;;  %3829 = vset.pattern.permute.xlu0 %v4069_v3  ;;  %v5571_v3 = vmov 2131351028  }
  0x2e   :  { %138 = vperm.xlu1 %3831, %v53_v1   ;;  %134 = vperm.xlu0 %3829, %v52_v2  }
  0x32   :  { %3832 = vset.pattern.permute.xlu1 %v4068_v0  ;;  %142 = vperm.xlu0 %3829, %v54_v4   ;;  %v5575_v0 = vmov 2475754826  }
  0x33   :  { %80 = vperm.xlu1 %3832, %v54_v4  }
  0x36   :  { %146 = vperm.xlu0 %3829, %v55_v5  }
  0x37   :  { %85 = vperm.xlu1 %3832, %v55_v5   ;;  %v5573_v5 = vmov 2102212464  }
  0x3a   :  { %150 = vperm.xlu0 %3829, %v56_v6  }
  0x3b   :  { %90 = vperm.xlu1 %3832, %v56_v6  }
  0x3e   :  { %154 = vperm.xlu0 %3829, %v57_v7  }
  0x3f   :  { %95 = vperm.xlu1 %3832, %v57_v7   ;;  %v5568_v7 = vmov 920167782  }
  0x42   :  { %158 = vperm.xlu0 %3829, %v58_v8  }
  0x43   :  { %100 = vperm.xlu1 %3832, %v58_v8  }
  0x46   :  { %162 = vperm.xlu0 %3829, %v59_v9  }
  0x47   :  { %105 = vperm.xlu1 %3832, %v59_v9  }
  0x4a   :  { %166 = vperm.xlu0 %3829, %v60_v10  }
  0x4b   :  { %110 = vperm.xlu1 %3832, %v60_v10  }
  0x4e   :  { %170 = vperm.xlu0 %3829, %v61_v11  }
  0x4f   :  { %115 = vperm.xlu1 %3832, %v61_v11  }
  0x52   :  { %174 = vperm.xlu0 %3829, %v62_v12  }
  0x53   :  { %120 = vperm.xlu1 %3832, %v62_v12  }
  0x56   :  { %178 = vperm.xlu0 %3829, %v63_v13  }
  0x57   :  { %125 = vperm.xlu1 %3832, %v63_v13  }
  0x5a   :  { %182 = vperm.xlu0 %3829, %v64_v14  }
  0x5b   :  { %130 = vperm.xlu1 %3832, %v64_v14   ;;  %v5566_v14 = vmov 1326507024  }
  0xa8   :  { %v71_v17 = vpop.permute.xlu0 %70  ;;  %v76_v18 = vpop.permute.xlu1 %75 }
  0xad   :  { %v139_v20 = vpop.permute.xlu1 %138  ;;  %v135_v21 = vpop.permute.xlu0 %134 }
  0xae   :  { %v186_v22 = vsel %vm67_vm0, %v76_v18, %v139_v20  ;;  %v185_v23 = vsel %vm67_vm0, %v71_v17, %v135_v21 }
  0xaf   :  { %v4193_v24 = vmul.f32 %v4186_v19, %v186_v22  ;;  %v4196_v25 = vmul.f32 %v4186_v19, %v185_v23 }
  0xb1   :  { %v5564_v26 = vand.u32 2147483647, %v4193_v24  ;;  %v327_v27 = vand.u32 2139095040, %v4193_v24  ;;  %v5565_v28 = vand.u32 2147483647, %v4196_v25  ;;  %v143_v29 = vpop.permute.xlu0 %142  ;;  %v223_v30 = vand.u32 2139095040, %v4196_v25 }
  0xb2   :  { %v81_v31 = vpop.permute.xlu1 %80 }
  0xb3   :  { %v328_v32 = vshrl.u32 %v327_v27, 23  ;;  %v331_v33 = vand.u32 8388607, %v5564_v26  ;;  %v227_v34 = vand.u32 8388607, %v5565_v28  ;;  %v187_v35 = vsel %vm67_vm0, %v81_v31, %v143_v29 }
  0xb4   :  { %v224_v36 = vshrl.u32 %v223_v30, 23  ;;  %v4209_v37 = vmul.f32 %v4186_v19, %v187_v35 }
  0xb5   :  { %v3498_v38 = vadd.s32 4294967169, %v328_v32  ;;  %v332_v39 = vor.u32 8388608, %v331_v33  ;;  %v147_v42 = vpop.permute.xlu0 %146  ;;  %v228_v45 = vor.u32 8388608, %v227_v34 }
  0xb6   :  { %v3494_v40 = vadd.s32 4294967169, %v224_v36  ;;  %v431_v41 = vand.u32 2139095040, %v4209_v37  ;;  %v86_v43 = vpop.permute.xlu1 %85  ;;  %v5563_v47 = vand.u32 2147483647, %v4209_v37 }
  0xb7   :  { %v334_v44 = vadd.s32 1, %v3498_v38  ;;  %v188_v49 = vsel %vm67_vm0, %v86_v43, %v147_v42  ;;  %v4215_v51 = vshll.u32 %v332_v39, 8  ;;  %v4217_v56 = vshll.u32 %v228_v45, 8 }
  0xb8   :  { %v230_v46 = vadd.s32 1, %v3494_v40  ;;  %v432_v48 = vshrl.u32 %v431_v41, 23  ;;  %v4223_v59 = vand.u32 8388607, %v5563_v47  ;;  %v4226_v60 = vmul.f32 %v4186_v19, %v188_v49 }
  0xb9   :  { %vm335_vm1 = vcmp.gt.s32.totalorder %v334_v44, 0 }
  0xba   :  { %v336_v50 = vsel %vm335_vm1, %v334_v44, 0  ;;  %vm231_vm2 = vcmp.gt.s32.totalorder %v230_v46, 0  ;;  %v3502_v52 = vadd.s32 4294967169, %v432_v48 }
  0xbb   :  { %v337_v53 = vshrl.u32 %v336_v50, 5  ;;  %v338_v54 = vand.u32 31, %v336_v50  ;;  %v232_v55 = vsel %vm231_vm2, %v230_v46, 0 }
  0xbc   :  { %v4219_v57 = vshrl.u32 %v232_v55, 5  ;;  %v234_v58 = vand.u32 31, %v232_v55  ;;  %v4230_v2 = vadd.s32 1, %v3502_v52 }
  0xbd   :  { %v339_v61 = vsub.s32 32, %v338_v54  ;;  %v341_v63 = vshll.u32 %v5577_v62, %v338_v54  ;;  %v344_v1 = vshll.u32 %v5575_v0, %v338_v54  ;;  %v347_v4 = vshll.u32 %v5571_v3, %v338_v54 }
  0xbe   :  { %v350_v6 = vshll.u32 %v5573_v5, %v338_v54  ;;  %v353_v8 = vshll.u32 %v5568_v7, %v338_v54  ;;  %vm356_vm3 = vcmp.lt.s32.totalorder %v337_v53, 1  ;;  %vm357_vm4 = vcmp.lt.s32.totalorder %v337_v53, 2 }
  0xbf   :  { %v342_v9 = vshrl.u32 %v5575_v0, %v339_v61  ;;  %v345_v10 = vshrl.u32 %v5571_v3, %v339_v61  ;;  %v348_v11 = vshrl.u32 %v5573_v5, %v339_v61  ;;  %v340_v12 = vshrl.u32 %v5577_v62, %v339_v61 }
  0xc0   :  { %v351_v13 = vshrl.u32 %v5568_v7, %v339_v61  ;;  %v354_v17 = vshrl.u32 %v5566_v14, %v339_v61  ;;  %vm358_vm5 = vcmp.lt.s32.totalorder %v337_v53, 3  ;;  %v235_v22 = vsub.s32 32, %v234_v58 }
  0xc1   :  { %v343_v18 = vor.u32 %v342_v9, %v341_v63  ;;  %v346_v20 = vor.u32 %v345_v10, %v344_v1  ;;  %v349_v21 = vor.u32 %v348_v11, %v347_v4  ;;  %vm359_vm6 = vcmp.lt.s32.totalorder %v337_v53, 4 }
  0xc2   :  { %v352_v23 = vor.u32 %v351_v13, %v350_v6  ;;  %v355_v27 = vor.u32 %v354_v17, %v353_v8  ;;  %v237_v29 = vshll.u32 %v5577_v62, %v234_v58  ;;  %v240_v38 = vshll.u32 %v5575_v0, %v234_v58 }
  0xc3   :  { %v360_v30 = vsel %vm356_vm3, %v340_v12, %v343_v18  ;;  %v361_v31 = vsel %vm359_vm6, %v349_v21, 2102212464  ;;  %v364_v32 = vsel %vm356_vm3, %v343_v18, %v346_v20  ;;  %v368_v33 = vsel %vm356_vm3, %v346_v20, %v349_v21 }
  0xc4   :  { %v362_v34 = vsel %vm358_vm5, %v346_v20, %v361_v31  ;;  %v365_v35 = vsel %vm359_vm6, %v352_v23, 920167782  ;;  %v369_v36 = vsel %vm359_vm6, %v355_v27, 1326507024  ;;  %v236_v41 = vshrl.u32 %v5577_v62, %v235_v22 }
  0xc5   :  { %v366_v39 = vsel %vm358_vm5, %v349_v21, %v365_v35  ;;  %v370_v40 = vsel %vm358_vm5, %v352_v23, %v369_v36  ;;  %v238_v42 = vshrl.u32 %v5575_v0, %v235_v22  ;;  %v363_v43 = vsel %vm357_vm4, %v360_v30, %v362_v34 }
  0xc6   :  { %v367_v44 = vsel %vm357_vm4, %v364_v32, %v366_v39  ;;  %v371_v45 = vsel %vm357_vm4, %v368_v33, %v370_v40  ;;  %v241_v46 = vshrl.u32 %v5571_v3, %v235_v22  ;;  %v243_v61 = vshll.u32 %v5571_v3, %v234_v58 }
  0xc7   :  { %v4256_v48 = vmul.u32.u64.low %v4215_v51, %v371_v45  ;;  %v4257_v49 = vmul.u32.u64.high %v4215_v51, %v371_v45, %v4256_v48  ;;  %v4260_v50 = vmul.u32.u64.low %v4215_v51, %v367_v44  ;;  %v4261_v52 = vmul.u32.u64.high %v4215_v51, %v367_v44, %v4260_v50 }
  0xc8   :  { %v239_v54 = vor.u32 %v238_v42, %v237_v29  ;;  %v242_v55 = vor.u32 %v241_v46, %v240_v38  ;;  %v244_v63 = vshrl.u32 %v5573_v5, %v235_v22  ;;  %v379_v53 = vmul.u32 %v4215_v51, %v363_v43 }
  0xc9   :  { %v246_v1 = vshll.u32 %v5573_v5, %v234_v58  ;;  %v247_v4 = vshrl.u32 %v5568_v7, %v235_v22  ;;  %v250_v6 = vshrl.u32 %v5566_v14, %v235_v22  ;;  %v249_v9 = vshll.u32 %v5568_v7, %v234_v58 }
  0xca   :  { %v245_v8 = vor.u32 %v244_v63, %v243_v61  ;;  %vm252_vm7 = vcmp.lt.s32.totalorder %v4219_v57, 1  ;;  %vm253_vm8 = vcmp.lt.s32.totalorder %v4219_v57, 2  ;;  %vm381_vm9 = vc.u32 %v4257_v49, %v4260_v50 }
  0xcb   :  { %v382_v10 = vadd.s32 1, %v4261_v52  ;;  %v248_v11 = vor.u32 %v247_v4, %v246_v1  ;;  %vm254_vm10 = vcmp.lt.s32.totalorder %v4219_v57, 3  ;;  %v251_v51 = vor.u32 %v250_v6, %v249_v9 }
  0xcc   :  { %vm255_vm11 = vcmp.lt.s32.totalorder %v4219_v57, 4  ;;  %v256_v12 = vsel %vm252_vm7, %v236_v41, %v239_v54  ;;  %v260_v13 = vsel %vm252_vm7, %v239_v54, %v242_v55  ;;  %v264_v20 = vsel %vm252_vm7, %v242_v55, %v245_v8 }
  0xcd   :  { %v383_v17 = vsel %vm381_vm9, %v382_v10, %v4261_v52  ;;  %v257_v58 = vsel %vm255_vm11, %v245_v8, 2102212464  ;;  %v261_v18 = vsel %vm255_vm11, %v248_v11, 920167782  ;;  %v265_v27 = vsel %vm255_vm11, %v251_v51, 1326507024 }
  0xce   :  { %v384_v21 = vadd.s32 %v383_v17, %v379_v53  ;;  %v258_v22 = vsel %vm254_vm10, %v242_v55, %v257_v58  ;;  %v262_v23 = vsel %vm254_vm10, %v245_v8, %v261_v18  ;;  %v266_v30 = vsel %vm254_vm10, %v248_v11, %v265_v27 }
  0xcf   :  { %v263_v29 = vsel %vm253_vm8, %v260_v13, %v262_v23  ;;  %v436_v31 = vor.u32 8388608, %v4223_v59  ;;  %vm439_vm12 = vcmp.gt.s32.totalorder %v4230_v2, 0  ;;  %v267_v33 = vsel %vm253_vm8, %v264_v20, %v266_v30 }
  0xd0   :  { %v385_v32 = vadd.s32 536870912, %v384_v21  ;;  %v4286_v34 = vmul.u32.u64.low %v4217_v56, %v263_v29  ;;  %v4287_v35 = vmul.u32.u64.high %v4217_v56, %v263_v29, %v4286_v34  ;;  %v259_v36 = vsel %vm253_vm8, %v256_v12, %v258_v22 }
  0xd1   :  { %v4293_v38 = vmul.u32.u64.low %v4217_v56, %v267_v33  ;;  %v4294_v39 = vmul.u32.u64.high %v4217_v56, %v267_v33, %v4293_v38  ;;  %v440_v59 = vsel %vm439_vm12, %v4230_v2, 0  ;;  %v4299_v42 = vshll.u32 %v436_v31, 8 }
  0xd2   :  { %v4297_v40 = vshrl.u32 %v385_v32, 30  ;;  %v442_v41 = vand.u32 31, %v440_v59  ;;  %v5560_v43 = vand.u32 2147483647, %v4226_v60  ;;  %v275_v45 = vmul.u32 %v4217_v56, %v259_v36 }
  0xd3   :  { %v278_v57 = vadd.s32 1, %v4287_v35  ;;  %vm277_vm13 = vc.u32 %v4294_v39, %v4286_v34  ;;  %v441_v48 = vshrl.u32 %v440_v59, 5  ;;  %v535_v20 = vand.u32 2139095040, %v4226_v60 }
  0xd4   :  { %v387_v44 = vshll.u32 %v4297_v40, 30  ;;  %v443_v46 = vsub.s32 32, %v442_v41  ;;  %v445_v2 = vshll.u32 %v5577_v62, %v442_v41  ;;  %v448_v52 = vshll.u32 %v5575_v0, %v442_v41 }
  0xd5   :  { %v279_v55 = vsel %vm277_vm13, %v278_v57, %v4287_v35  ;;  %v451_v63 = vshll.u32 %v5571_v3, %v442_v41  ;;  %v454_v4 = vshll.u32 %v5573_v5, %v442_v41  ;;  %v457_v10 = vshll.u32 %v5568_v7, %v442_v41  ;;  %v151_v57 = vpop.permute.xlu0 %150 }
  0xd6   :  { %v4309_v54 = vsub.s32 %v384_v21, %v387_v44  ;;  %v446_v61 = vshrl.u32 %v5575_v0, %v443_v46  ;;  %v280_v56 = vadd.s32 %v279_v55, %v275_v45  ;;  %v449_v53 = vshrl.u32 %v5571_v3, %v443_v46 }
  0xd7   :  { %v452_v1 = vshrl.u32 %v5573_v5, %v443_v46  ;;  %v455_v9 = vshrl.u32 %v5568_v7, %v443_v46  ;;  %v458_v13 = vshrl.u32 %v5566_v14, %v443_v46  ;;  %v444_v58 = vshrl.u32 %v5577_v62, %v443_v46  ;;  %v91_v46 = vpop.permute.xlu1 %90 }
  0xd8   :  { %v390_v6 = vsub.s32 0, %v4309_v54  ;;  %v447_v8 = vor.u32 %v446_v61, %v445_v2  ;;  %v281_v11 = vadd.s32 536870912, %v280_v56  ;;  %v450_v51 = vor.u32 %v449_v53, %v448_v52 }
  0xd9   :  { %v453_v12 = vor.u32 %v452_v1, %v451_v63  ;;  %v456_v18 = vor.u32 %v455_v9, %v454_v4  ;;  %v459_v22 = vor.u32 %v458_v13, %v457_v10  ;;  %vm460_vm14 = vcmp.lt.s32.totalorder %v441_v48, 1 }
  0xda   :  { %v3499_v17 = vmin.u32 %v390_v6, %v4309_v54  ;;  %v4324_v21 = vshrl.u32 %v281_v11, 30  ;;  %vm463_vm15 = vcmp.lt.s32.totalorder %v441_v48, 4  ;;  %vm461_vm1 = vcmp.lt.s32.totalorder %v441_v48, 2 }
  0xdb   :  { %v465_v27 = vsel %vm463_vm15, %v453_v12, 2102212464  ;;  %v468_v29 = vsel %vm460_vm14, %v447_v8, %v450_v51  ;;  %vm462_vm2 = vcmp.lt.s32.totalorder %v441_v48, 3  ;;  %v469_v31 = vsel %vm463_vm15, %v456_v18, 920167782 }
  0xdc   :  { %v392_v23 = vclz %v3499_v17  ;;  %v283_v30 = vshll.u32 %v4324_v21, 30  ;;  %v472_v32 = vsel %vm460_vm14, %v450_v51, %v453_v12  ;;  %v464_v35 = vsel %vm460_vm14, %v444_v58, %v447_v8  ;;  %v155_v58 = vpop.permute.xlu0 %154 }
  0xdd   :  { %v470_v36 = vsel %vm462_vm2, %v453_v12, %v469_v31  ;;  %v473_v38 = vsel %vm463_vm15, %v459_v22, 1326507024  ;;  %v466_v41 = vsel %vm462_vm2, %v450_v51, %v465_v27  ;;  %v536_v8 = vshrl.u32 %v535_v20, 23 }
  0xde   :  { %v3500_v33 = vadd.s32 4294967294, %v392_v23  ;;  %v4327_v59 = vsub.s32 %v280_v56, %v283_v30  ;;  %v471_v44 = vsel %vm461_vm1, %v468_v29, %v470_v36  ;;  %v474_v45 = vsel %vm462_vm2, %v456_v18, %v473_v38  ;;  %v96_v18 = vpop.permute.xlu1 %95 }
  0xdf   :  { %v475_v2 = vsel %vm461_vm1, %v472_v32, %v474_v45  ;;  %v4332_v52 = vmul.u32.u64.low %v4299_v42, %v471_v44  ;;  %v4333_v55 = vmul.u32.u64.high %v4299_v42, %v471_v44, %v4332_v52  ;;  %v467_v6 = vsel %vm461_vm1, %v464_v35, %v466_v41 }
  0xe0   :  { %vm3501_vm3 = vcmp.lt.s32.totalorder %v3500_v33, 0  ;;  %v286_v63 = vsub.s32 0, %v4327_v59  ;;  %v4338_v56 = vmul.u32.u64.low %v4299_v42, %v475_v2  ;;  %v4339_v53 = vmul.u32.u64.high %v4299_v42, %v475_v2, %v4338_v56 }
  0xe1   :  { %v395_v61 = vsel %vm3501_vm3, 0, %v3500_v33  ;;  %v380_v10 = vadd.s32 %v4260_v50, %v4257_v49  ;;  %v486_v11 = vadd.s32 1, %v4333_v55  ;;  %v3506_v51 = vadd.s32 4294967169, %v536_v8 }
  0xe2   :  { %v396_v1 = vsub.s32 32, %v395_v61  ;;  %v400_v4 = vsub.s32 4294967266, %v395_v61  ;;  %v3495_v9 = vmin.u32 %v286_v63, %v4327_v59  ;;  %v539_v12 = vand.u32 8388607, %v5560_v43 }
  0xe3   :  { %v483_v17 = vmul.u32 %v4299_v42, %v467_v6  ;;  %vm485_vm4 = vc.u32 %v4339_v53, %v4332_v52  ;;  %v189_v48 = vsel %vm67_vm0, %v91_v46, %v151_v57  ;;  %v542_v50 = vadd.s32 1, %v3506_v51 }
  0xe4   :  { %v288_v13 = vclz %v3495_v9  ;;  %v398_v20 = vshrl.u32 %v380_v10, %v396_v1  ;;  %v401_v22 = vadd.s32 127, %v400_v4  ;;  %v487_v49 = vsel %vm485_vm4, %v486_v11, %v4333_v55 }
  0xe5   :  { %v488_v23 = vadd.s32 %v487_v49, %v483_v17  ;;  %v397_v27 = vshll.u32 %v4309_v54, %v395_v61  ;;  %v540_v29 = vor.u32 8388608, %v539_v12  ;;  %vm543_vm5 = vcmp.gt.s32.totalorder %v542_v50, 0 }
  0xe6   :  { %v190_v42 = vsel %vm67_vm0, %v96_v18, %v155_v58  ;;  %v3496_v30 = vadd.s32 4294967294, %v288_v13  ;;  %v544_v32 = vsel %vm543_vm5, %v542_v50, 0  ;;  %v4358_v33 = vmul.f32 %v4186_v19, %v189_v48 }
  0xe7   :  { %v489_v31 = vadd.s32 536870912, %v488_v23  ;;  %v399_v35 = vor.u32 %v398_v20, %v397_v27  ;;  %v402_v36 = vshll.u32 %v401_v22, 23  ;;  %v546_v38 = vand.u32 31, %v544_v32 }
  0xe8   :  { %5607 = vst [vmem:[#allocation11_spill] sm:$0xff] %v4358_v33  ;;  %v276_v44 = vadd.s32 %v4286_v34, %v4294_v39  ;;  %v4365_v45 = vmul.f32 %v4186_v19, %v190_v42  ;;  %vm3497_vm6 = vcmp.lt.s32.totalorder %v3496_v30, 0  ;;  %v4368_v46 = vshll.u32 %v540_v29, 8 }
  0xe9   :  { %v4360_v41 = vshrl.u32 %v489_v31, 30  ;;  %v547_v54 = vsub.s32 32, %v546_v38  ;;  %v5559_v2 = vand.u32 2147483647, %v4358_v33  ;;  %v403_v55 = vor.u32 4788187, %v402_v36 }
  0xea   :  { %5608 = vst [vmem:[#allocation12_spill] sm:$0xff] %v4365_v45  ;;  %v406_v61 = vcvt.s32.f32 %v399_v35  ;;  %v549_v34 = vshll.u32 %v5577_v62, %v546_v38  ;;  %v552_v39 = vshll.u32 %v5575_v0, %v546_v38  ;;  %v291_v6 = vsel %vm3497_vm6, 0, %v3496_v30 }
  0xeb   :  { %v491_v57 = vshll.u32 %v4360_v41, 30  ;;  %v550_v63 = vshrl.u32 %v5575_v0, %v547_v54  ;;  %v553_v56 = vshrl.u32 %v5571_v3, %v547_v54  ;;  %v556_v4 = vshrl.u32 %v5573_v5, %v547_v54 }
  0xec   :  { %v545_v8 = vshrl.u32 %v544_v32, 5  ;;  %v555_v9 = vshll.u32 %v5571_v3, %v546_v38  ;;  %v639_v10 = vand.u32 2139095040, %v4358_v33  ;;  %v558_v13 = vshll.u32 %v5573_v5, %v546_v38 }
  0xed   :  { %v4373_v1 = vsub.s32 %v488_v23, %v491_v57  ;;  %v551_v51 = vor.u32 %v550_v63, %v549_v34  ;;  %v554_v12 = vor.u32 %v553_v56, %v552_v39  ;;  %v559_v48 = vshrl.u32 %v5568_v7, %v547_v54 }
  0xee   :  { %v557_v17 = vor.u32 %v556_v4, %v555_v9  ;;  %v561_v58 = vshll.u32 %v5568_v7, %v546_v38  ;;  %v562_v18 = vshrl.u32 %v5566_v14, %v547_v54  ;;  %v292_v20 = vsub.s32 32, %v291_v6 }
  0xef   :  { %v494_v11 = vsub.s32 0, %v4373_v1  ;;  %v296_v22 = vsub.s32 4294967266, %v291_v6  ;;  %v643_v50 = vand.u32 8388607, %v5559_v2  ;;  %v404_v23 = vand.u32 2147483647, %v403_v55 }
  0xf0   :  { %v293_v27 = vshll.u32 %v4327_v59, %v291_v6  ;;  %v560_v29 = vor.u32 %v559_v48, %v558_v13  ;;  %v563_v42 = vor.u32 %v562_v18, %v561_v58  ;;  %vm564_vm7 = vcmp.lt.s32.totalorder %v545_v8, 1 }
  0xf1   :  { %v3503_v49 = vmin.u32 %v494_v11, %v4373_v1  ;;  %vm566_vm8 = vcmp.lt.s32.totalorder %v545_v8, 3  ;;  %vm567_vm9 = vcmp.lt.s32.totalorder %v545_v8, 4  ;;  %v572_v31 = vsel %vm564_vm7, %v551_v51, %v554_v12 }
  0xf2   :  { %v573_v32 = vsel %vm567_vm9, %v560_v29, 920167782  ;;  %v576_v35 = vsel %vm564_vm7, %v554_v12, %v557_v17  ;;  %v577_v36 = vsel %vm567_vm9, %v563_v42, 1326507024  ;;  %v294_v38 = vshrl.u32 %v276_v44, %v292_v20 }
  0xf3   :  { %v496_v30 = vclz %v3503_v49  ;;  %v297_v57 = vadd.s32 127, %v296_v22  ;;  %v574_v56 = vsel %vm566_vm8, %v557_v17, %v573_v32  ;;  %vm565_vm10 = vcmp.lt.s32.totalorder %v545_v8, 2 }
  0xf4   :  { %v569_v55 = vsel %vm567_vm9, %v557_v17, 2102212464  ;;  %v578_v59 = vsel %vm566_vm8, %v560_v29, %v577_v36  ;;  %v640_v34 = vshrl.u32 %v639_v10, 23  ;;  %v548_v39 = vshrl.u32 %v5577_v62, %v547_v54 }
  0xf5   :  { %v3504_v63 = vadd.s32 4294967294, %v496_v30  ;;  %v575_v4 = vsel %vm565_vm10, %v572_v31, %v574_v56  ;;  %v579_v6 = vsel %vm565_vm10, %v576_v35, %v578_v59  ;;  %v4396_v9 = vmul.f32 %v406_v61, %v404_v23 }
  0xf6   :  { %v4399_v44 = vmul.u32.u64.low %v4368_v46, %v579_v6  ;;  %v4400_v11 = vmul.u32.u64.high %v4368_v46, %v579_v6, %v4399_v44  ;;  %v3510_v13 = vadd.s32 4294967169, %v640_v34  ;;  %v4402_v48 = vor.u32 %v294_v38, %v293_v27 }
  0xf7   :  { %vm3505_vm11 = vcmp.lt.s32.totalorder %v3504_v63, 0  ;;  %v568_v10 = vsel %vm564_vm7, %v548_v39, %v551_v51  ;;  %v570_v58 = vsel %vm566_vm8, %v554_v12, %v569_v55  ;;  %v298_v54 = vshll.u32 %v297_v57, 23 }
  0xf8   :  { %v4404_v17 = vsel %vm3505_vm11, 0, %v3504_v63  ;;  %v4409_v18 = vmul.u32.u64.low %v4368_v46, %v575_v4  ;;  %v4410_v20 = vmul.u32.u64.high %v4368_v46, %v575_v4, %v4409_v18  ;;  %v646_v61 = vadd.s32 1, %v3510_v13 }
  0xf9   :  { %v644_v22 = vor.u32 8388608, %v643_v50  ;;  %v500_v49 = vsub.s32 32, %v4404_v17  ;;  %v571_v23 = vsel %vm565_vm10, %v568_v10, %v570_v58  ;;  %v743_v27 = vand.u32 2139095040, %v4365_v45 }
  0xfa   :  { %vm647_vm12 = vcmp.gt.s32.totalorder %v646_v61, 0  ;;  %v408_v29 = vxor.u32 2147483648, %v4396_v9  ;;  %v484_v51 = vadd.s32 %v4332_v52, %v4339_v53  ;;  %vm589_vm13 = vc.u32 %v4400_v11, %v4409_v18 }
  0xfb   :  { %v648_v12 = vsel %vm647_vm12, %v646_v61, 0  ;;  %v4421_v42 = vor.u32 4788187, %v298_v54  ;;  %v302_v50 = vcvt.s32.f32 %v4402_v48  ;;  %v590_v30 = vadd.s32 1, %v4410_v20 }
  0xfc   :  { %v650_v8 = vand.u32 31, %v648_v12  ;;  %v504_v31 = vsub.s32 4294967266, %v4404_v17  ;;  %v587_v32 = vmul.u32 %v4368_v46, %v571_v23  ;;  %v4427_v35 = vshll.u32 %v644_v22, 8 }
  0xfd   :  { %v5558_v36 = vand.u32 2147483647, %v4365_v45  ;;  %v502_v52 = vshrl.u32 %v484_v51, %v500_v49  ;;  %v591_v53 = vsel %vm589_vm13, %v590_v30, %v4410_v20  ;;  %v744_v57 = vshrl.u32 %v743_v27, 23 }
  0xfe   :  { %v651_v38 = vsub.s32 32, %v650_v8  ;;  %v592_v63 = vadd.s32 %v591_v53, %v587_v32  ;;  %v649_v56 = vshrl.u32 %v648_v12, 5  ;;  %v653_v55 = vshll.u32 %v5577_v62, %v650_v8  ;;  %v159_v53 = vpop.permute.xlu0 %158 }
  0xff   :  { %v656_v59 = vshll.u32 %v5575_v0, %v650_v8  ;;  %v659_v46 = vshll.u32 %v5571_v3, %v650_v8  ;;  %v662_v44 = vshll.u32 %v5573_v5, %v650_v8  ;;  %v665_v10 = vshll.u32 %v5568_v7, %v650_v8 }
 0x100   :  { %v654_v34 = vshrl.u32 %v5575_v0, %v651_v38  ;;  %v657_v39 = vshrl.u32 %v5571_v3, %v651_v38  ;;  %v660_v4 = vshrl.u32 %v5573_v5, %v651_v38  ;;  %v593_v6 = vadd.s32 536870912, %v592_v63 }
 0x101   :  { %v663_v13 = vshrl.u32 %v5568_v7, %v651_v38  ;;  %v666_v61 = vshrl.u32 %v5566_v14, %v651_v38  ;;  %v4441_v22 = vadd.s32 127, %v504_v31  ;;  %v4447_v27 = vand.u32 8388607, %v5558_v36  ;;  %v101_v31 = vpop.permute.xlu1 %100 }
 0x102   :  { %v655_v58 = vor.u32 %v654_v34, %v653_v55  ;;  %v658_v54 = vor.u32 %v657_v39, %v656_v59  ;;  %v661_v20 = vor.u32 %v660_v4, %v659_v46  ;;  %v4443_v49 = vshrl.u32 %v593_v6, 30 }
 0x103   :  { %v664_v23 = vor.u32 %v663_v13, %v662_v44  ;;  %v652_v51 = vshrl.u32 %v5577_v62, %v651_v38  ;;  %v667_v12 = vor.u32 %v666_v61, %v665_v10  ;;  %vm671_vm14 = vcmp.lt.s32.totalorder %v649_v56, 4 }
 0x104   :  { %v3514_v30 = vadd.s32 4294967169, %v744_v57  ;;  %v595_v8 = vshll.u32 %v4443_v49, 30  ;;  %vm668_vm15 = vcmp.lt.s32.totalorder %v649_v56, 1  ;;  %vm669_vm1 = vcmp.lt.s32.totalorder %v649_v56, 2 }
 0x105   :  { %v673_v32 = vsel %vm671_vm14, %v661_v20, 2102212464  ;;  %vm670_vm2 = vcmp.lt.s32.totalorder %v649_v56, 3  ;;  %v676_v55 = vsel %vm668_vm15, %v655_v58, %v658_v54  ;;  %v677_v59 = vsel %vm671_vm14, %v664_v23, 920167782 }
 0x106   :  { %v680_v34 = vsel %vm668_vm15, %v658_v54, %v661_v20  ;;  %v4451_v39 = vsub.s32 %v592_v63, %v595_v8  ;;  %v672_v46 = vsel %vm668_vm15, %v652_v51, %v655_v58  ;;  %v678_v4 = vsel %vm670_vm2, %v661_v20, %v677_v59  ;;  %v106_v8 = vpop.permute.xlu1 %105 }
 0x107   :  { %v681_v6 = vsel %vm671_vm14, %v667_v12, 1326507024  ;;  %v674_v38 = vsel %vm670_vm2, %v658_v54, %v673_v32  ;;  %v679_v44 = vsel %vm669_vm1, %v676_v55, %v678_v4  ;;  %v750_v13 = vadd.s32 1, %v3514_v30  ;;  %v163_v30 = vpop.permute.xlu0 %162 }
 0x108   :  { %v682_v57 = vsel %vm670_vm2, %v664_v23, %v681_v6  ;;  %v598_v10 = vsub.s32 0, %v4451_v39  ;;  %v4457_v15 = vmul.u32.u64.low %v4427_v35, %v679_v44  ;;  %v4458_v36 = vmul.u32.u64.high %v4427_v35, %v679_v44, %v4457_v15 }
 0x109   :  { %v683_v61 = vsel %vm669_vm1, %v680_v34, %v682_v57  ;;  %v501_v63 = vshll.u32 %v4373_v1, %v4404_v17  ;;  %vm751_vm3 = vcmp.gt.s32.totalorder %v750_v13, 0  ;;  %v300_v54 = vand.u32 2147483647, %v4421_v42 }
 0x10a   :  { %v4464_v58 = vmul.u32.u64.low %v4427_v35, %v683_v61  ;;  %v4465_v20 = vmul.u32.u64.high %v4427_v35, %v683_v61, %v4464_v58  ;;  %v3507_v23 = vmin.u32 %v598_v10, %v4451_v39  ;;  %v675_v51 = vsel %vm669_vm1, %v672_v46, %v674_v38 }
 0x10b   :  { %v752_v12 = vsel %vm751_vm3, %v750_v13, 0  ;;  %v4470_v32 = vor.u32 %v502_v52, %v501_v63  ;;  %v506_v55 = vshll.u32 %v4441_v22, 23  ;;  %v588_v1 = vadd.s32 %v4409_v18, %v4400_v11 }
 0x10c   :  { %v754_v17 = vand.u32 31, %v752_v12  ;;  %v600_v59 = vclz %v3507_v23  ;;  %v694_v34 = vadd.s32 1, %v4458_v36  ;;  %v748_v4 = vor.u32 8388608, %v4447_v27 }
 0x10d   :  { %v191_v56 = vsel %vm67_vm0, %v101_v31, %v159_v53  ;;  %v691_v46 = vmul.u32 %v4427_v35, %v675_v51  ;;  %vm693_vm4 = vc.u32 %v4465_v20, %v4457_v15  ;;  %v192_v22 = vsel %vm67_vm0, %v106_v8, %v163_v30 }
 0x10e   :  { %v755_v52 = vsub.s32 32, %v754_v17  ;;  %v3508_v6 = vadd.s32 4294967294, %v600_v59  ;;  %v695_v11 = vsel %vm693_vm4, %v694_v34, %v4458_v36  ;;  %v753_v18 = vshrl.u32 %v752_v12, 5 }
 0x10f   :  { %v757_v38 = vshll.u32 %v5577_v62, %v754_v17  ;;  %v696_v44 = vadd.s32 %v695_v11, %v691_v46  ;;  %v760_v53 = vshll.u32 %v5575_v0, %v754_v17  ;;  %v763_v31 = vshll.u32 %v5571_v3, %v754_v17 }
 0x110   :  { %v758_v27 = vshrl.u32 %v5575_v0, %v755_v52  ;;  %v761_v35 = vshrl.u32 %v5571_v3, %v755_v52  ;;  %vm3509_vm5 = vcmp.lt.s32.totalorder %v3508_v6, 0  ;;  %v764_v57 = vshrl.u32 %v5573_v5, %v755_v52 }
 0x111   :  { %v767_v13 = vshrl.u32 %v5568_v7, %v755_v52  ;;  %v603_v10 = vsel %vm3509_vm5, 0, %v3508_v6  ;;  %v697_v61 = vadd.s32 536870912, %v696_v44  ;;  %v766_v63 = vshll.u32 %v5573_v5, %v754_v17 }
 0x112   :  { %v759_v36 = vor.u32 %v758_v27, %v757_v38  ;;  %v604_v58 = vsub.s32 32, %v603_v10  ;;  %v608_v23 = vsub.s32 4294967266, %v603_v10  ;;  %v762_v51 = vor.u32 %v761_v35, %v760_v53 }
 0x113   :  { %v765_v12 = vor.u32 %v764_v57, %v763_v31  ;;  %v4493_v30 = vshrl.u32 %v697_v61, 30  ;;  %v768_v8 = vor.u32 %v767_v13, %v766_v63  ;;  %v769_v59 = vshll.u32 %v5568_v7, %v754_v17 }
 0x114   :  { %v770_v34 = vshrl.u32 %v5566_v14, %v755_v52  ;;  %v507_v46 = vor.u32 4788187, %v506_v55  ;;  %v609_v11 = vadd.s32 127, %v608_v23  ;;  %v788_v2 = vshll.u32 %v748_v4, 8 }
 0x115   :  { %5609 = vst [vmem:[#allocation13_spill] sm:$0xff] %v4493_v30  ;;  %v4498_v6 = vmul.f32 %v4186_v19, %v191_v56  ;;  %v699_v38 = vshll.u32 %v4493_v30, 30  ;;  %v756_v27 = vshrl.u32 %v5577_v62, %v755_v52  ;;  %v4503_v53 = vmul.f32 %v4186_v19, %v192_v22 }
 0x116   :  { %v771_v43 = vor.u32 %v770_v34, %v769_v59  ;;  %v606_v35 = vshrl.u32 %v588_v1, %v604_v58  ;;  %vm772_vm6 = vcmp.lt.s32.totalorder %v753_v18, 1  ;;  %vm774_vm7 = vcmp.lt.s32.totalorder %v753_v18, 3 }
 0x117   :  { %vm775_vm8 = vcmp.lt.s32.totalorder %v753_v18, 4  ;;  %v4505_v17 = vsub.s32 %v696_v44, %v699_v38  ;;  %v780_v31 = vsel %vm772_vm6, %v759_v36, %v762_v51  ;;  %v610_v57 = vshll.u32 %v609_v11, 23 }
 0x118   :  { %v777_v55 = vsel %vm775_vm8, %v765_v12, 2102212464  ;;  %v781_v4 = vsel %vm775_vm8, %v768_v8, 920167782  ;;  %vm773_vm9 = vcmp.lt.s32.totalorder %v753_v18, 2  ;;  %v776_v56 = vsel %vm772_vm6, %v756_v27, %v759_v36 }
 0x119   :  { %v782_v13 = vsel %vm774_vm7, %v765_v12, %v781_v4  ;;  %v702_v61 = vsub.s32 0, %v4505_v17  ;;  %v784_v63 = vsel %vm772_vm6, %v762_v51, %v765_v12  ;;  %v785_v22 = vsel %vm775_vm8, %v771_v43, 1326507024 }
 0x11a   :  { %v783_v52 = vsel %vm773_vm9, %v780_v31, %v782_v13  ;;  %v778_v23 = vsel %vm774_vm7, %v762_v51, %v777_v55  ;;  %v786_v1 = vsel %vm774_vm7, %v768_v8, %v785_v22  ;;  %v5562_v11 = vand.u32 2147483647, %v4498_v6 }
 0x11b   :  { %v4509_v58 = vmul.u32.u64.low %v788_v2, %v783_v52  ;;  %v4510_v59 = vmul.u32.u64.high %v788_v2, %v783_v52, %v4509_v58  ;;  %v3511_v44 = vmin.u32 %v702_v61, %v4505_v17  ;;  %v787_v34 = vsel %vm773_vm9, %v784_v63, %v786_v1 }
 0x11c   :  { %v847_v36 = vand.u32 2139095040, %v4498_v6  ;;  %vm326_vm10 = vcmp.lt.s32.totalorder %v4193_v24, 0  ;;  %v303_v43 = vmul.f32 %v302_v50, %v300_v54  ;;  %v605_v51 = vshll.u32 %v4451_v39, %v603_v10  ;;  %v167_v39 = vpop.permute.xlu0 %166  ;;  %v111_v54 = vpop.permute.xlu1 %110 }
 0x11d   :  { %v4523_v12 = vmul.u32.u64.low %v788_v2, %v787_v34  ;;  %v4524_v8 = vmul.u32.u64.high %v788_v2, %v787_v34, %v4523_v12  ;;  %v508_v38 = vand.u32 2147483647, %v507_v46  ;;  %v704_v27 = vclz %v3511_v44 }
 0x11e   :  { %v779_v55 = vsel %vm773_vm9, %v776_v56, %v778_v23  ;;  %v848_v31 = vshrl.u32 %v847_v36, 23  ;;  %v510_v4 = vcvt.s32.f32 %v4470_v32  ;;  %v607_v13 = vor.u32 %v606_v35, %v605_v51 }
 0x11f   :  { %v611_v61 = vor.u32 4788187, %v610_v57  ;;  %v798_v52 = vadd.s32 1, %v4510_v59  ;;  %v3512_v42 = vadd.s32 4294967294, %v704_v27  ;;  %v851_v48 = vand.u32 8388607, %v5562_v11 }
 0x120   :  { %v3518_v63 = vadd.s32 4294967169, %v848_v31  ;;  %v5561_v50 = vand.u32 2147483647, %v4503_v53  ;;  %v304_v10 = vxor.u32 2147483648, %v303_v43  ;;  %v795_v46 = vmul.u32 %v788_v2, %v779_v55 }
 0x121   :  { %vm797_vm11 = vc.u32 %v4524_v8, %v4509_v58  ;;  %v951_v32 = vand.u32 2139095040, %v4503_v53  ;;  %v4535_v18 = vmul.f32 %v510_v4, %v508_v38  ;;  %vm3513_vm12 = vcmp.lt.s32.totalorder %v3512_v42, 0 }
 0x122   :  { %v799_v35 = vsel %vm797_vm11, %v798_v52, %v4510_v59  ;;  %v854_v57 = vadd.s32 1, %v3518_v63  ;;  %vm222_vm13 = vcmp.lt.s32.totalorder %v4196_v25, 0  ;;  %v612_v56 = vand.u32 2147483647, %v611_v61 }
 0x123   :  { %v800_v22 = vadd.s32 %v799_v35, %v795_v46  ;;  %v193_v23 = vsel %vm67_vm0, %v111_v54, %v167_v39  ;;  %v614_v1 = vcvt.s32.f32 %v607_v13  ;;  %v852_v2 = vor.u32 8388608, %v851_v48 }
 0x124   :  { %vm855_vm14 = vcmp.gt.s32.totalorder %v854_v57, 0  ;;  %v4543_v44 = vand.u32 8388607, %v5561_v50  ;;  %v4545_v34 = vsel %vm3513_vm12, 0, %v3512_v42  ;;  %v952_v59 = vshrl.u32 %v951_v32, 23 }
 0x125   :  { %v801_v36 = vadd.s32 536870912, %v800_v22  ;;  %v856_v51 = vsel %vm855_vm14, %v854_v57, 0  ;;  %v4552_v12 = vsel %vm326_vm10, %v408_v29, %v4396_v9  ;;  %v4556_v38 = vsel %vm222_vm13, %v304_v10, %v303_v43 }
 0x126   :  { %v512_v27 = vxor.u32 2147483648, %v4535_v18  ;;  %v858_v55 = vand.u32 31, %v856_v51  ;;  %v4559_v31 = vmul.f32 %v614_v1, %v612_v56  ;;  %v4563_v4 = vadd.s32 %v4457_v15, %v4465_v20 }
 0x127   :  { %v4565_v13 = vshrl.u32 %v801_v36, 30  ;;  %v4568_v61 = vmul.f32 %v4186_v19, %v193_v23  ;;  %v712_v9 = vsub.s32 4294967266, %v4545_v34  ;;  %v4571_v52 = vshll.u32 %v852_v2, 8 }
 0x128   :  { %v859_v29 = vsub.s32 32, %v858_v55  ;;  %v956_v43 = vor.u32 8388608, %v4543_v44  ;;  %v857_v63 = vshrl.u32 %v856_v51, 5  ;;  %v861_v48 = vshll.u32 %v5577_v62, %v858_v55 }
 0x129   :  { %5610 = vst [vmem:[#allocation14_spill] sm:$0xff] %v4565_v13  ;;  %v803_v42 = vshll.u32 %v4565_v13, 30  ;;  %v3522_v39 = vadd.s32 4294967169, %v952_v59  ;;  %v864_v20 = vshll.u32 %v5575_v0, %v858_v55  ;;  %v867_v19 = vshll.u32 %v5571_v3, %v858_v55 }
 0x12a   :  { %v862_v15 = vshrl.u32 %v5575_v0, %v859_v29  ;;  %v870_v54 = vshll.u32 %v5573_v5, %v858_v55  ;;  %v865_v46 = vshrl.u32 %v5571_v3, %v859_v29  ;;  %v868_v32 = vshrl.u32 %v5573_v5, %v859_v29 }
 0x12b   :  { %v4580_v10 = vsub.s32 %v800_v22, %v803_v42  ;;  %v871_v35 = vshrl.u32 %v5568_v7, %v859_v29  ;;  %v713_v57 = vadd.s32 127, %v712_v9  ;;  %v873_v23 = vshll.u32 %v5568_v7, %v858_v55 }
 0x12c   :  { %v863_v56 = vor.u32 %v862_v15, %v861_v48  ;;  %v874_v1 = vshrl.u32 %v5566_v14, %v859_v29  ;;  %vm430_vm15 = vcmp.lt.s32.totalorder %v4209_v37, 0  ;;  %v866_v44 = vor.u32 %v865_v46, %v864_v20 }
 0x12d   :  { %v806_v2 = vsub.s32 0, %v4580_v10  ;;  %v869_v36 = vor.u32 %v868_v32, %v867_v19  ;;  %v872_v22 = vor.u32 %v871_v35, %v870_v54  ;;  %v860_v51 = vshrl.u32 %v5577_v62, %v859_v29 }
 0x12e   :  { %v875_v59 = vor.u32 %v874_v1, %v873_v23  ;;  %vm876_vm1 = vcmp.lt.s32.totalorder %v857_v63, 1  ;;  %v958_v42 = vadd.s32 1, %v3522_v39  ;;  %vm877_vm2 = vcmp.lt.s32.totalorder %v857_v63, 2 }
 0x12f   :  { %v3515_v50 = vmin.u32 %v806_v2, %v4580_v10  ;;  %vm878_vm3 = vcmp.lt.s32.totalorder %v857_v63, 3  ;;  %vm879_vm4 = vcmp.lt.s32.totalorder %v857_v63, 4  ;;  %v880_v55 = vsel %vm876_vm1, %v860_v51, %v863_v56 }
 0x130   :  { %v881_v9 = vsel %vm879_vm4, %v869_v36, 2102212464  ;;  %v884_v48 = vsel %vm876_vm1, %v863_v56, %v866_v44  ;;  %v885_v15 = vsel %vm879_vm4, %v872_v22, 920167782  ;;  %v888_v20 = vsel %vm876_vm1, %v866_v44, %v869_v36 }
 0x131   :  { %v808_v11 = vclz %v3515_v50  ;;  %v882_v47 = vsel %vm878_vm3, %v866_v44, %v881_v9  ;;  %v886_v26 = vsel %vm878_vm3, %v869_v36, %v885_v15  ;;  %v708_v19 = vsub.s32 32, %v4545_v34 }
 0x132   :  { %v887_v29 = vsel %vm877_vm2, %v884_v48, %v886_v26  ;;  %v889_v54 = vsel %vm879_vm4, %v875_v59, 1326507024  ;;  %v1055_v39 = vand.u32 2139095040, %v4568_v61  ;;  %v714_v56 = vshll.u32 %v713_v57, 23 }
 0x133   :  { %v3516_v46 = vadd.s32 4294967294, %v808_v11  ;;  %v890_v32 = vsel %vm878_vm3, %v872_v22, %v889_v54  ;;  %v4595_v35 = vmul.u32.u64.low %v4571_v52, %v887_v29  ;;  %v4596_v23 = vmul.u32.u64.high %v4571_v52, %v887_v29, %v4595_v35 }
 0x134   :  { %v883_v50 = vsel %vm877_vm2, %v880_v55, %v882_v47  ;;  %v891_v1 = vsel %vm877_vm2, %v888_v20, %v890_v32  ;;  %vm959_vm5 = vcmp.gt.s32.totalorder %v958_v42, 0  ;;  %v4610_v11 = vsel %vm430_vm15, %v512_v27, %v4535_v18 }
 0x135   :  { %vm3517_vm6 = vcmp.lt.s32.totalorder %v3516_v46, 0  ;;  %v4602_v2 = vmul.u32.u64.low %v4571_v52, %v891_v1  ;;  %v4603_v26 = vmul.u32.u64.high %v4571_v52, %v891_v1, %v4602_v2  ;;  %v960_v44 = vsel %vm959_vm5, %v958_v42, 0 }
 0x136   :  { %v616_v57 = vxor.u32 2147483648, %v4559_v31  ;;  %v962_v36 = vand.u32 31, %v960_v44  ;;  %v5570_v47 = vand.u32 2147483647, %v4568_v61  ;;  %v709_v63 = vshll.u32 %v4505_v17, %v4545_v34 }
 0x137   :  { %v710_v22 = vshrl.u32 %v4563_v4, %v708_v19  ;;  %v902_v51 = vadd.s32 1, %v4596_v23  ;;  %v4618_v59 = vshll.u32 %v956_v43, 8  ;;  %v4620_v42 = vor.u32 4788187, %v714_v56 }
 0x138   :  { %v4622_v55 = vsel %vm3517_vm6, 0, %v3516_v46  ;;  %v899_v18 = vmul.u32 %v4571_v52, %v883_v50  ;;  %v963_v27 = vsub.s32 32, %v962_v36  ;;  %vm901_vm7 = vc.u32 %v4603_v26, %v4595_v35 }
 0x139   :  { %v961_v9 = vshrl.u32 %v960_v44, 5  ;;  %v965_v48 = vshll.u32 %v5577_v62, %v962_v36  ;;  %v1056_v17 = vshrl.u32 %v1055_v39, 23  ;;  %v903_v34 = vsel %vm901_vm7, %v902_v51, %v4596_v23 }
 0x13a   :  { %v966_v4 = vshrl.u32 %v5575_v0, %v963_v27  ;;  %v968_v43 = vshll.u32 %v5575_v0, %v962_v36  ;;  %v969_v15 = vshrl.u32 %v5571_v3, %v963_v27  ;;  %v816_v20 = vsub.s32 4294967266, %v4622_v55 }
 0x13b   :  { %v904_v19 = vadd.s32 %v903_v34, %v899_v18  ;;  %v971_v52 = vshll.u32 %v5571_v3, %v962_v36  ;;  %v972_v29 = vshrl.u32 %v5573_v5, %v963_v27  ;;  %vm534_vm8 = vcmp.lt.s32.totalorder %v4226_v60, 0 }
 0x13c   :  { %v967_v54 = vor.u32 %v966_v4, %v965_v48  ;;  %v970_v46 = vor.u32 %v969_v15, %v968_v43  ;;  %v974_v39 = vshll.u32 %v5573_v5, %v962_v36  ;;  %v975_v32 = vshrl.u32 %v5568_v7, %v963_v27 }
 0x13d   :  { %v711_v23 = vor.u32 %v710_v22, %v709_v63  ;;  %v716_v56 = vand.u32 2147483647, %v4620_v42  ;;  %v905_v50 = vadd.s32 536870912, %v904_v19  ;;  %v973_v1 = vor.u32 %v972_v29, %v971_v52 }
 0x13e   :  { %v976_v2 = vor.u32 %v975_v32, %v974_v39  ;;  %v977_v44 = vshll.u32 %v5568_v7, %v962_v36  ;;  %v978_v51 = vshrl.u32 %v5566_v14, %v963_v27  ;;  %v3526_v18 = vadd.s32 4294967169, %v1056_v17  ;;  %v171_v14 = vpop.permute.xlu0 %170  ;;  %v116_v7 = vpop.permute.xlu1 %115 }
 0x13f   :  { %v812_v34 = vsub.s32 32, %v4622_v55  ;;  %v817_v28 = vadd.s32 127, %v816_v20  ;;  %v4642_v48 = vshrl.u32 %v905_v50, 30  ;;  %vm980_vm9 = vcmp.lt.s32.totalorder %v961_v9, 1 }
 0x140   :  { %v964_v4 = vshrl.u32 %v5577_v62, %v963_v27  ;;  %v979_v43 = vor.u32 %v978_v51, %v977_v44  ;;  %vm983_vm11 = vcmp.lt.s32.totalorder %v961_v9, 4  ;;  %v988_v63 = vsel %vm980_vm9, %v967_v54, %v970_v46 }
 0x141   :  { %5611 = vst [vmem:[#allocation15_spill] sm:$0xff] %v4642_v48  ;;  %v907_v22 = vshll.u32 %v4642_v48, 30  ;;  %vm982_vm12 = vcmp.lt.s32.totalorder %v961_v9, 3  ;;  %v985_v42 = vsel %vm983_vm11, %v973_v1, 2102212464  ;;  %vm981_vm14 = vcmp.lt.s32.totalorder %v961_v9, 2 }
 0x142   :  { %v989_v15 = vsel %vm983_vm11, %v976_v2, 920167782  ;;  %v992_v52 = vsel %vm980_vm9, %v970_v46, %v973_v1  ;;  %v993_v17 = vsel %vm983_vm11, %v979_v43, 1326507024  ;;  %v818_v29 = vshll.u32 %v817_v28, 23 }
 0x143   :  { %v990_v36 = vsel %vm982_vm12, %v973_v1, %v989_v15  ;;  %v4646_v39 = vsub.s32 %v904_v19, %v907_v22  ;;  %v984_v20 = vsel %vm980_vm9, %v964_v4, %v967_v54  ;;  %v986_v50 = vsel %vm982_vm12, %v970_v46, %v985_v42 }
 0x144   :  { %v991_v32 = vsel %vm981_vm14, %v988_v63, %v990_v36  ;;  %v994_v27 = vsel %vm982_vm12, %v976_v2, %v993_v17  ;;  %v4659_v28 = vsel %vm534_vm8, %v616_v57, %v4559_v31  ;;  %v796_v19 = vadd.s32 %v4509_v58, %v4524_v8  ;;  %v121_v17 = vpop.permute.xlu1 %120 }
 0x145   :  { %v4650_v44 = vmul.u32.u64.low %v4618_v59, %v991_v32  ;;  %v4651_v51 = vmul.u32.u64.high %v4618_v59, %v991_v32, %v4650_v44  ;;  %5612 = vst [vmem:[#allocation16_spill] sm:$0xff] %v4659_v28  ;;  %v910_v54 = vsub.s32 0, %v4646_v39  ;;  %v995_v46 = vsel %vm981_vm14, %v992_v52, %v994_v27  ;;  %v175_v52 = vpop.permute.xlu0 %174 }
 0x146   :  { %v718_v1 = vcvt.s32.f32 %v711_v23  ;;  %v4666_v2 = vmul.u32.u64.low %v4618_v59, %v995_v46  ;;  %v4667_v4 = vmul.u32.u64.high %v4618_v59, %v995_v46, %v4666_v2  ;;  %v1062_v43 = vadd.s32 1, %v3526_v18 }
 0x147   :  { %v814_v63 = vshrl.u32 %v796_v19, %v812_v34  ;;  %v4669_v22 = vor.u32 4788187, %v818_v29  ;;  %v3519_v42 = vmin.u32 %v910_v54, %v4646_v39  ;;  %v987_v31 = vsel %vm981_vm14, %v984_v20, %v986_v50 }
 0x148   :  { %v4673_v57 = vmul.f32 %v718_v1, %v716_v56  ;;  %v1006_v58 = vadd.s32 1, %v4651_v51  ;;  %v1059_v8 = vand.u32 8388607, %v5570_v47  ;;  %vm1063_vm1 = vcmp.gt.s32.totalorder %v1062_v43, 0 }
 0x149   :  { %v813_v23 = vshll.u32 %v4580_v10, %v4622_v55  ;;  %v912_v15 = vclz %v3519_v42  ;;  %v1064_v18 = vsel %vm1063_vm1, %v1062_v43, 0  ;;  %v194_v34 = vsel %vm67_vm0, %v116_v7, %v171_v14 }
 0x14a   :  { %v4684_v9 = vadd.s32 %v4595_v35, %v4603_v26  ;;  %v1003_v56 = vmul.u32 %v4618_v59, %v987_v31  ;;  %vm1005_vm2 = vc.u32 %v4667_v4, %v4650_v44  ;;  %v1066_v36 = vand.u32 31, %v1064_v18  ;;  %v4696_v35 = vld [vmem:[%s5551_s1] ss:$0 sm:$0xff] }
 0x14b   :  { %v4689_v29 = vor.u32 %v814_v63, %v813_v23  ;;  %v3520_v55 = vadd.s32 4294967294, %v912_v15  ;;  %v1007_v20 = vsel %vm1005_vm2, %v1006_v58, %v4651_v51  ;;  %v1060_v14 = vor.u32 8388608, %v1059_v8 }
 0x14c   :  { %v1008_v7 = vadd.s32 %v1007_v20, %v1003_v56  ;;  %v1067_v32 = vsub.s32 32, %v1066_v36  ;;  %v4699_v26 = vmul.f32 %v4696_v35, %v194_v34  ;;  %v1065_v59 = vshrl.u32 %v1064_v18, 5 }
 0x14d   :  { %vm3521_vm3 = vcmp.lt.s32.totalorder %v3520_v55, 0  ;;  %v1069_v50 = vshll.u32 %v5577_v62, %v1066_v36  ;;  %v195_v27 = vsel %vm67_vm0, %v121_v17, %v175_v52  ;;  %v1072_v46 = vshll.u32 %v5575_v0, %v1066_v36 }
 0x14e   :  { %v4704_v19 = vsel %vm3521_vm3, 0, %v3520_v55  ;;  %v1009_v51 = vadd.s32 536870912, %v1008_v7  ;;  %v1070_v54 = vshrl.u32 %v5575_v0, %v1067_v32  ;;  %v1073_v2 = vshrl.u32 %v5571_v3, %v1067_v32 }
 0x14f   :  { %v920_v1 = vsub.s32 4294967266, %v4704_v19  ;;  %v1075_v43 = vshll.u32 %v5571_v3, %v1066_v36  ;;  %v1078_v63 = vshll.u32 %v5573_v5, %v1066_v36  ;;  %v1076_v31 = vshrl.u32 %v5573_v5, %v1067_v32 }
 0x150   :  { %v4712_v42 = vshrl.u32 %v1009_v51, 30  ;;  %v5614_v58 = vmov 920167782   ;;  %v1071_v18 = vor.u32 %v1070_v54, %v1069_v50  ;;  %v1074_v34 = vor.u32 %v1073_v2, %v1072_v46 }
 0x151   :  { %v1079_v8 = vshrl.u32 %v5614_v58, %v1067_v32  ;;  %v1081_v23 = vshll.u32 %v5614_v58, %v1066_v36  ;;  %v921_v15 = vadd.s32 127, %v920_v1  ;;  %v5615_v56 = vmov 1326507024  }
 0x152   :  { %5613 = vst [vmem:[#allocation17_spill] sm:$0xff] %v4712_v42  ;;  %v1082_v52 = vshrl.u32 %v5615_v56, %v1067_v32  ;;  %v1011_v17 = vshll.u32 %v4712_v42, 30  ;;  %v1077_v55 = vor.u32 %v1076_v31, %v1075_v43  ;;  %v4720_v47 = vmul.f32 %v4696_v35, %v195_v27 }
 0x153   :  { %v1080_v20 = vor.u32 %v1079_v8, %v1078_v63  ;;  %v1100_v3 = vshll.u32 %v1060_v14, 8  ;;  %v1159_v0 = vand.u32 2139095040, %v4699_v26  ;;  %v1068_v36 = vshrl.u32 %v5577_v62, %v1067_v32 }
 0x154   :  { %v1083_v51 = vor.u32 %v1082_v52, %v1081_v23  ;;  %v4724_v10 = vsub.s32 %v1008_v7, %v1011_v17  ;;  %vm1084_vm4 = vcmp.lt.s32.totalorder %v1065_v59, 1  ;;  %vm1087_vm5 = vcmp.lt.s32.totalorder %v1065_v59, 4 }
 0x155   :  { %v916_v50 = vsub.s32 32, %v4704_v19  ;;  %v922_v54 = vshll.u32 %v921_v15, 23  ;;  %v1089_v46 = vsel %vm1087_vm5, %v1077_v55, 2102212464  ;;  %v1092_v1 = vsel %vm1084_vm4, %v1071_v18, %v1074_v34 }
 0x156   :  { %v1014_v27 = vsub.s32 0, %v4724_v10  ;;  %vm1086_vm6 = vcmp.lt.s32.totalorder %v1065_v59, 3  ;;  %v1093_v2 = vsel %vm1087_vm5, %v1080_v20, 920167782  ;;  %v1096_v14 = vsel %vm1084_vm4, %v1074_v34, %v1077_v55 }
 0x157   :  { %vm1085_vm7 = vcmp.lt.s32.totalorder %v1065_v59, 2  ;;  %v1088_v43 = vsel %vm1084_vm4, %v1068_v36, %v1071_v18  ;;  %v1094_v63 = vsel %vm1086_vm6, %v1077_v55, %v1093_v2  ;;  %v1097_v31 = vsel %vm1087_vm5, %v1083_v51, 1326507024  ;;  %v126_v2 = vpop.permute.xlu1 %125 }
 0x158   :  { %v3523_v7 = vmin.u32 %v1014_v27, %v4724_v10  ;;  %v1090_v8 = vsel %vm1086_vm6, %v1074_v34, %v1089_v46  ;;  %v1095_v32 = vsel %vm1085_vm7, %v1092_v1, %v1094_v63  ;;  %v1098_v23 = vsel %vm1086_vm6, %v1080_v20, %v1097_v31  ;;  %v179_v27 = vpop.permute.xlu0 %178 }
 0x159   :  { %v918_v52 = vshrl.u32 %v4684_v9, %v916_v50  ;;  %v1099_v15 = vsel %vm1085_vm7, %v1096_v14, %v1098_v23  ;;  %v4733_v17 = vmul.u32.u64.low %v1100_v3, %v1095_v32  ;;  %v4734_v62 = vmul.u32.u64.high %v1100_v3, %v1095_v32, %v4733_v17 }
 0x15a   :  { %v1016_v5 = vclz %v3523_v7  ;;  %v4737_v42 = vmul.u32.u64.low %v1100_v3, %v1099_v15  ;;  %v4738_v48 = vmul.u32.u64.high %v1100_v3, %v1099_v15, %v4737_v42  ;;  %v1160_v18 = vshrl.u32 %v1159_v0, 23 }
 0x15b   :  { %v822_v55 = vcvt.s32.f32 %v4689_v29  ;;  %v917_v34 = vshll.u32 %v4646_v39, %v4704_v19  ;;  %v923_v51 = vor.u32 4788187, %v922_v54  ;;  %v1091_v20 = vsel %vm1085_vm7, %v1088_v43, %v1090_v8 }
 0x15c   :  { %v3524_v36 = vadd.s32 4294967294, %v1016_v5  ;;  %v3530_v50 = vadd.s32 4294967169, %v1160_v18  ;;  %v5616_v46 = vand.u32 2147483647, %v4699_v26  ;;  %v5617_v42 = vand.u32 2147483647, %v4669_v22 }
 0x15d   :  { %v919_v29 = vor.u32 %v918_v52, %v917_v34  ;;  %v1110_v14 = vadd.s32 1, %v4734_v62  ;;  %v1263_v39 = vand.u32 2139095040, %v4720_v47  ;;  %v1107_v59 = vmul.u32 %v1100_v3, %v1091_v20 }
 0x15e   :  { %v1163_v1 = vand.u32 8388607, %v5616_v46  ;;  %v4749_v0 = vmul.f32 %v822_v55, %v5617_v42  ;;  %vm3525_vm9 = vcmp.lt.s32.totalorder %v3524_v36, 0  ;;  %vm1109_vm11 = vc.u32 %v4738_v48, %v4733_v17 }
 0x15f   :  { %v1166_v5 = vadd.s32 1, %v3530_v50  ;;  %v924_v19 = vand.u32 2147483647, %v923_v51  ;;  %v1019_v54 = vsel %vm3525_vm9, 0, %v3524_v36  ;;  %v1111_v43 = vsel %vm1109_vm11, %v1110_v14, %v4734_v62 }
 0x160   :  { %v196_v22 = vsel %vm67_vm0, %v126_v2, %v179_v27  ;;  %v1024_v63 = vsub.s32 4294967266, %v1019_v54  ;;  %v1112_v31 = vadd.s32 %v1111_v43, %v1107_v59  ;;  %v1164_v7 = vor.u32 8388608, %v1163_v1 }
 0x161   :  { %v5583_v8 = vand.u32 2147483647, %v4720_v47  ;;  %v926_v32 = vcvt.s32.f32 %v919_v29  ;;  %v1020_v23 = vsub.s32 32, %v1019_v54  ;;  %vm1167_vm12 = vcmp.gt.s32.totalorder %v1166_v5, 0 }
 0x162   :  { %v1264_v3 = vshrl.u32 %v1263_v39, 23  ;;  %v1025_v15 = vadd.s32 127, %v1024_v63  ;;  %v1113_v18 = vadd.s32 536870912, %v1112_v31  ;;  %v1168_v55 = vsel %vm1167_vm12, %v1166_v5, 0 }
 0x163   :  { %v4760_v34 = vmul.f32 %v926_v32, %v924_v19  ;;  %v1004_v62 = vadd.s32 %v4650_v44, %v4667_v4  ;;  %v1170_v51 = vand.u32 31, %v1168_v55  ;;  %v4765_v20 = vmul.f32 %v4696_v35, %v196_v22 }
 0x164   :  { %v1021_v36 = vshll.u32 %v4724_v10, %v1019_v54  ;;  %v4768_v50 = vshrl.u32 %v1113_v18, 30  ;;  %v4770_v46 = vshll.u32 %v1164_v7, 8  ;;  %v4774_v1 = vand.u32 8388607, %v5583_v8 }
 0x165   :  { %v1022_v27 = vshrl.u32 %v1004_v62, %v1020_v23  ;;  %v1169_v2 = vshrl.u32 %v1168_v55, 5  ;;  %v1171_v42 = vsub.s32 32, %v1170_v51  ;;  %v3534_v29 = vadd.s32 4294967169, %v1264_v3 }
 0x166   :  { %5618 = vst [vmem:[#allocation18_spill] sm:$0xff] %v4768_v50  ;;  %v1026_v14 = vshll.u32 %v1025_v15, 23  ;;  %v1115_v44 = vshll.u32 %v4768_v50, 30  ;;  %v5619_v4 = vmov 683565275   ;;  %vm638_vm14 = vcmp.lt.s32.totalorder %v4358_v33, 0 }
 0x167   :  { %v1173_v39 = vshll.u32 %v5619_v4, %v1170_v51  ;;  %v5620_v59 = vmov 2475754826   ;;  %v5621_v19 = vmov 2131351028   ;;  %v5622_v22 = vmov 2102212464  }
 0x168   :  { %v1176_v5 = vshll.u32 %v5620_v59, %v1170_v51  ;;  %v1174_v10 = vshrl.u32 %v5620_v59, %v1171_v42  ;;  %v1177_v54 = vshrl.u32 %v5621_v19, %v1171_v42  ;;  %v1179_v43 = vshll.u32 %v5621_v19, %v1170_v51  ;;  %v2925_v33 = vld [vmem:[#allocation2 + $0x8] sm:$0xff] }
 0x169   :  { %v1180_v63 = vshrl.u32 %v5622_v22, %v1171_v42  ;;  %v4784_v7 = vsub.s32 %v1112_v31, %v1115_v44  ;;  %v1182_v32 = vshll.u32 %v5622_v22, %v1170_v51  ;;  %v1183_v23 = vshrl.u32 %v5614_v58, %v1171_v42 }
 0x16a   :  { %v1185_v3 = vshll.u32 %v5614_v58, %v1170_v51  ;;  %v1175_v15 = vor.u32 %v1174_v10, %v1173_v39  ;;  %v1178_v18 = vor.u32 %v1177_v54, %v1176_v5  ;;  %v1186_v62 = vshrl.u32 %v5615_v56, %v1171_v42 }
 0x16b   :  { %v1181_v55 = vor.u32 %v1180_v63, %v1179_v43  ;;  %vm742_vm1 = vcmp.lt.s32.totalorder %v4365_v45, 0  ;;  %v1118_v8 = vsub.s32 0, %v4784_v7  ;;  %v1184_v52 = vor.u32 %v1183_v23, %v1182_v32 }
 0x16c   :  { %v1268_v9 = vor.u32 8388608, %v4774_v1  ;;  %v1270_v31 = vadd.s32 1, %v3534_v29  ;;  %v1023_v44 = vor.u32 %v1022_v27, %v1021_v36  ;;  %v1027_v50 = vor.u32 4788187, %v1026_v14 }
 0x16d   :  { %v1187_v13 = vor.u32 %v1186_v62, %v1185_v3  ;;  %vm1191_vm2 = vcmp.lt.s32.totalorder %v1169_v2, 4  ;;  %v3527_v30 = vmin.u32 %v1118_v8, %v4784_v7  ;;  %v1172_v51 = vshrl.u32 %v5619_v4, %v1171_v42 }
 0x16e   :  { %vm1188_vm3 = vcmp.lt.s32.totalorder %v1169_v2, 1  ;;  %v1193_v39 = vsel %vm1191_vm2, %v1181_v55, 2102212464  ;;  %vm1189_vm4 = vcmp.lt.s32.totalorder %v1169_v2, 2  ;;  %vm1190_vm5 = vcmp.lt.s32.totalorder %v1169_v2, 3 }
 0x16f   :  { %v1196_v5 = vsel %vm1188_vm3, %v1175_v15, %v1178_v18  ;;  %v1197_v10 = vsel %vm1191_vm2, %v1184_v52, 920167782  ;;  %v1120_v54 = vclz %v3527_v30  ;;  %v1192_v43 = vsel %vm1188_vm3, %v1172_v51, %v1175_v15 }
 0x170   :  { %v1198_v63 = vsel %vm1190_vm5, %v1181_v55, %v1197_v10  ;;  %v1200_v32 = vsel %vm1188_vm3, %v1178_v18, %v1181_v55  ;;  %v1194_v1 = vsel %vm1190_vm5, %v1178_v18, %v1193_v39  ;;  %v1201_v27 = vsel %vm1191_vm2, %v1187_v13, 1326507024 }
 0x171   :  { %v1199_v36 = vsel %vm1189_vm4, %v1196_v5, %v1198_v63  ;;  %vm1271_vm6 = vcmp.gt.s32.totalorder %v1270_v31, 0  ;;  %v3528_v29 = vadd.s32 4294967294, %v1120_v54  ;;  %v1202_v14 = vsel %vm1190_vm5, %v1184_v52, %v1201_v27 }
 0x172   :  { %v4797_v8 = vmul.u32.u64.low %v4770_v46, %v1199_v36  ;;  %v4798_v42 = vmul.u32.u64.high %v4770_v46, %v1199_v36, %v4797_v8  ;;  %v5623_v23 = vxor.u32 2147483648, %v4673_v57  ;;  %v1203_v3 = vsel %vm1189_vm4, %v1200_v32, %v1202_v14 }
 0x173   :  { %v1272_v15 = vsel %vm1271_vm6, %v1270_v31, 0  ;;  %v5590_v13 = vand.u32 2147483647, %v4765_v20  ;;  %vm3529_vm7 = vcmp.lt.s32.totalorder %v3528_v29, 0  ;;  %v1195_v52 = vsel %vm1189_vm4, %v1192_v43, %v1194_v1 }
 0x174   :  { %v4806_v30 = vsel %vm638_vm14, %v5623_v23, %v4673_v57  ;;  %v4812_v18 = vmul.u32.u64.low %v4770_v46, %v1203_v3  ;;  %v4813_v55 = vmul.u32.u64.high %v4770_v46, %v1203_v3, %v4812_v18  ;;  %v5625_v62 = vxor.u32 2147483648, %v4749_v0 }
 0x175   :  { %5624 = vst [vmem:[#allocation19_spill] sm:$0xff] %v4806_v30  ;;  %v1108_v31 = vadd.s32 %v4733_v17, %v4738_v48  ;;  %v1274_v39 = vand.u32 31, %v1272_v15  ;;  %v1028_v5 = vand.u32 2147483647, %v1027_v50  ;;  %v1030_v2 = vcvt.s32.f32 %v1023_v44 }
 0x176   :  { %v4820_v51 = vsel %vm742_vm1, %v5625_v62, %v4749_v0  ;;  %v1214_v10 = vadd.s32 1, %v4798_v42  ;;  %v4826_v54 = vshll.u32 %v1268_v9, 8  ;;  %v4828_v43 = vsel %vm3529_vm7, 0, %v3528_v29 }
 0x177   :  { %5626 = vst [vmem:[#allocation20_spill] sm:$0xff] %v4820_v51  ;;  %v1211_v63 = vmul.u32 %v4770_v46, %v1195_v52  ;;  %v1275_v32 = vsub.s32 32, %v1274_v39  ;;  %v1367_v0 = vand.u32 2139095040, %v4765_v20  ;;  %vm1213_vm9 = vc.u32 %v4813_v55, %v4797_v8 }
 0x178   :  { %v4834_v1 = vshrl.u32 %v1272_v15, 5  ;;  %v1277_v48 = vshll.u32 %v5619_v4, %v1274_v39  ;;  %v4839_v17 = vand.u32 8388607, %v5590_v13  ;;  %v1215_v9 = vsel %vm1213_vm9, %v1214_v10, %v4798_v42 }
 0x179   :  { %v1278_v50 = vshrl.u32 %v5620_v59, %v1275_v32  ;;  %v1280_v46 = vshll.u32 %v5620_v59, %v1274_v39  ;;  %v1281_v44 = vshrl.u32 %v5621_v19, %v1275_v32  ;;  %v1128_v36 = vsub.s32 4294967266, %v4828_v43 }
 0x17a   :  { %v1216_v27 = vadd.s32 %v1215_v9, %v1211_v63  ;;  %v1283_v29 = vshll.u32 %v5621_v19, %v1274_v39  ;;  %v1284_v14 = vshrl.u32 %v5622_v22, %v1275_v32  ;;  %v1286_v15 = vshll.u32 %v5622_v22, %v1274_v39 }
 0x17b   :  { %v1279_v23 = vor.u32 %v1278_v50, %v1277_v48  ;;  %v1282_v3 = vor.u32 %v1281_v44, %v1280_v46  ;;  %v1287_v52 = vshrl.u32 %v5614_v58, %v1275_v32  ;;  %v4850_v42 = vmul.f32 %v1030_v2, %v1028_v5 }
 0x17c   :  { %v1217_v18 = vadd.s32 536870912, %v1216_v27  ;;  %v1285_v62 = vor.u32 %v1284_v14, %v1283_v29  ;;  %v1368_v10 = vshrl.u32 %v1367_v0, 23  ;;  %v1289_v57 = vshll.u32 %v5614_v58, %v1274_v39 }
 0x17d   :  { %v1288_v13 = vor.u32 %v1287_v52, %v1286_v15  ;;  %v1290_v63 = vshrl.u32 %v5615_v56, %v1275_v32  ;;  %v1124_v51 = vsub.s32 32, %v4828_v43  ;;  %v1129_v48 = vadd.s32 127, %v1128_v36 }
 0x17e   :  { %v4856_v50 = vshrl.u32 %v1217_v18, 30  ;;  %vm1292_vm11 = vcmp.lt.s32.totalorder %v4834_v1, 1  ;;  %v1276_v5 = vshrl.u32 %v5619_v4, %v1275_v32  ;;  %vm1295_vm12 = vcmp.lt.s32.totalorder %v4834_v1, 4  ;;  %v183_v32 = vpop.permute.xlu0 %182 }
 0x17f   :  { %v1291_v2 = vor.u32 %v1290_v63, %v1289_v57  ;;  %v1300_v0 = vsel %vm1292_vm11, %v1279_v23, %v1282_v3  ;;  %vm1294_vm2 = vcmp.lt.s32.totalorder %v4834_v1, 3  ;;  %v1297_v39 = vsel %vm1295_vm12, %v1285_v62, 2102212464  ;;  %v131_v63 = vpop.permute.xlu1 %130 }
 0x180   :  { %5627 = vst [vmem:[#allocation21_spill] sm:$0xff] %v4856_v50  ;;  %v1219_v46 = vshll.u32 %v4856_v50, 30  ;;  %v1301_v44 = vsel %vm1295_vm12, %v1288_v13, 920167782  ;;  %vm1293_vm3 = vcmp.lt.s32.totalorder %v4834_v1, 2  ;;  %v1304_v36 = vsel %vm1292_vm11, %v1282_v3, %v1285_v62  ;;  %v2933_v1 = vld [vmem:[#allocation2 + $0x48] sm:$0xff] }
 0x181   :  { %v1302_v29 = vsel %vm1294_vm2, %v1285_v62, %v1301_v44  ;;  %v1305_v14 = vsel %vm1295_vm12, %v1291_v2, 1326507024  ;;  %v1126_v15 = vshrl.u32 %v1108_v31, %v1124_v51  ;;  %v1296_v18 = vsel %vm1292_vm11, %v1276_v5, %v1279_v23  ;;  %v2927_v44 = vld [vmem:[#allocation2 + $0x18] sm:$0xff]  ;;  %v2924_v62 = vld [vmem:[#allocation2] sm:$0xff]  ;;  %v2926_v23 = vld [vmem:[#allocation2 + $0x10] sm:$0xff] }
 0x182   :  { %v4864_v52 = vsub.s32 %v1216_v27, %v1219_v46  ;;  %v1303_v57 = vsel %vm1293_vm3, %v1300_v0, %v1302_v29  ;;  %v1298_v9 = vsel %vm1294_vm2, %v1282_v3, %v1297_v39  ;;  %v1306_v50 = vsel %vm1294_vm2, %v1288_v13, %v1305_v14  ;;  %v2929_v5 = vld [vmem:[#allocation2 + $0x28] sm:$0xff]  ;;  %v2931_v0 = vld [vmem:[#allocation2 + $0x38] sm:$0xff]  ;;  %v2930_v14 = vld [vmem:[#allocation2 + $0x30] sm:$0xff] }
 0x183   :  { %v4869_v45 = vmul.u32.u64.low %v4826_v54, %v1303_v57  ;;  %v4870_v30 = vmul.u32.u64.high %v4826_v54, %v1303_v57, %v4869_v45  ;;  %v1130_v2 = vshll.u32 %v1129_v48, 23  ;;  %v1307_v31 = vsel %vm1293_vm3, %v1304_v36, %v1306_v50  ;;  %v2928_v36 = vld [vmem:[#allocation2 + $0x20] sm:$0xff] }
 0x184   :  { %v1222_v51 = vsub.s32 0, %v4864_v52  ;;  %v3538_v27 = vadd.s32 4294967169, %v1368_v10  ;;  %v1125_v13 = vshll.u32 %v4784_v7, %v4828_v43  ;;  %v197_v39 = vsel %vm67_vm0, %v131_v63, %v183_v32 }
 0x185   :  { %v4879_v3 = vmul.u32.u64.low %v4826_v54, %v1307_v31  ;;  %v4880_v46 = vmul.u32.u64.high %v4826_v54, %v1307_v31, %v4879_v3  ;;  %v1299_v29 = vsel %vm1293_vm3, %v1296_v18, %v1298_v9  ;;  %v3696_v10 = vpack.c.bf16 %v2927_v44, %v2925_v33  ;;  %v2935_v9 = vld [vmem:[#allocation2 + $0x58] sm:$0xff] }
 0x186   :  { %v3531_v48 = vmin.u32 %v1222_v51, %v4864_v52  ;;  %v1374_v50 = vadd.s32 1, %v3538_v27  ;;  %v4887_v57 = vor.u32 %v1126_v15, %v1125_v13  ;;  %v1318_v7 = vadd.s32 1, %v4870_v30 }
 0x187   :  { %v3698_v43 = vpack.c.bf16 %v2926_v23, %v2924_v62  ;;  %v3700_v28 = vpack.c.bf16 %v2931_v0, %v2929_v5  ;;  %v4890_v31 = vor.u32 4788187, %v1130_v2  ;;  %v4893_v32 = vmul.f32 %v4696_v35, %v197_v39  ;;  %3697 = vmatprep.subr.bf16.mxu0 %v3696_v10 }
 0x188   :  { %v1224_v3 = vclz %v3531_v48  ;;  %vm1375_vm4 = vcmp.gt.s32.totalorder %v1374_v50, 0  ;;  %v1315_v33 = vmul.u32 %v4826_v54, %v1299_v29  ;;  %vm1317_vm0 = vc.u32 %v4880_v46, %v4869_v45 }
 0x189   :  { %5628 = vst [vmem:[#allocation22_spill] sm:$0xff] %v4893_v32  ;;  %v1376_v15 = vsel %vm1375_vm4, %v1374_v50, 0  ;;  %3699 = vmatpush1.bf16.msra.mxu0 %v3698_v43  ;;  %v3702_v18 = vpack.c.bf16 %v2930_v14, %v2928_v36  ;;  %v1319_v62 = vsel %vm1317_vm0, %v1318_v7, %v4870_v30  ;;  %v1212_v51 = vadd.s32 %v4797_v8, %v4813_v55 }
 0x18a   :  { %v3532_v44 = vadd.s32 4294967294, %v1224_v3  ;;  %v1378_v2 = vand.u32 31, %v1376_v15  ;;  %3701 = vmatprep.subr.bf16.mxu0 %v3700_v28  ;;  %v1320_v27 = vadd.s32 %v1319_v62, %v1315_v33  ;;  %v3704_v54 = vpack.c.bf16 %v2935_v9, %v2933_v1 }
 0x18b   :  { %v1471_v0 = vand.u32 2139095040, %v4893_v32  ;;  %v5629_v30 = vor.u32 8388608, %v4839_v17  ;;  %v5597_v28 = vand.u32 2147483647, %v4893_v32  ;;  %v1377_v7 = vshrl.u32 %v1376_v15, 5  ;;  %v2937_v32 = vld [vmem:[#allocation2 + $0x68] sm:$0xff] }
 0x18c   :  { %vm3533_vm5 = vcmp.lt.s32.totalorder %v3532_v44, 0  ;;  %v1379_v5 = vsub.s32 32, %v1378_v2  ;;  %v1321_v39 = vadd.s32 536870912, %v1320_v27  ;;  %v1381_v55 = vshll.u32 %v5619_v4, %v1378_v2 }
 0x18d   :  { %v4905_v13 = vsel %vm3533_vm5, 0, %v3532_v44  ;;  %v4909_v48 = vshll.u32 %v5629_v30, 8  ;;  %3703 = vmatpush1.bf16.msra.mxu0 %v3702_v18  ;;  %v1384_v29 = vshll.u32 %v5620_v59, %v1378_v2  ;;  %v1387_v50 = vshll.u32 %v5621_v19, %v1378_v2 }
 0x18e   :  { %v1232_v8 = vsub.s32 4294967266, %v4905_v13  ;;  %3705 = vmatprep.subr.bf16.mxu0 %v3704_v54  ;;  %v4916_v10 = vshrl.u32 %v1321_v39, 30  ;;  %v1382_v36 = vshrl.u32 %v5620_v59, %v1379_v5  ;;  %v1385_v17 = vshrl.u32 %v5621_v19, %v1379_v5 }
 0x18f   :  { %v1388_v14 = vshrl.u32 %v5622_v22, %v1379_v5  ;;  %v1390_v43 = vshll.u32 %v5622_v22, %v1378_v2  ;;  %v1391_v3 = vshrl.u32 %v5614_v58, %v1379_v5  ;;  %v1472_v1 = vshrl.u32 %v1471_v0, 23 }
 0x190   :  { %5630 = vst [vmem:[#allocation23_spill] sm:$0xff] %v4916_v10  ;;  %v1323_v9 = vshll.u32 %v4916_v10, 30  ;;  %v1383_v33 = vor.u32 %v1382_v36, %v1381_v55  ;;  %v1386_v18 = vor.u32 %v1385_v17, %v1384_v29  ;;  %v1228_v62 = vsub.s32 32, %v4905_v13 }
 0x191   :  { %v1389_v44 = vor.u32 %v1388_v14, %v1387_v50  ;;  %v1392_v54 = vor.u32 %v1391_v3, %v1390_v43  ;;  %v1393_v39 = vshll.u32 %v5614_v58, %v1378_v2  ;;  %v1394_v30 = vshrl.u32 %v5615_v56, %v1379_v5  ;;  %v2932_v3 = vld [vmem:[#allocation2 + $0x40] sm:$0xff] }
 0x192   :  { %v1233_v63 = vadd.s32 127, %v1232_v8  ;;  %v4927_v35 = vsub.s32 %v1320_v27, %v1323_v9  ;;  %v1380_v15 = vshrl.u32 %v5619_v4, %v1379_v5  ;;  %v4932_v0 = vand.u32 8388607, %v5597_v28 }
 0x193   :  { %v1395_v23 = vor.u32 %v1394_v30, %v1393_v39  ;;  %vm1396_vm6 = vcmp.lt.s32.totalorder %v1377_v7, 1  ;;  %vm1398_vm7 = vcmp.lt.s32.totalorder %v1377_v7, 3  ;;  %vm1399_vm9 = vcmp.lt.s32.totalorder %v1377_v7, 4 }
 0x194   :  { %v1326_v55 = vsub.s32 0, %v4927_v35  ;;  %v1400_v29 = vsel %vm1396_vm6, %v1380_v15, %v1383_v33  ;;  %v1401_v50 = vsel %vm1399_vm9, %v1389_v44, 2102212464  ;;  %v1404_v2 = vsel %vm1396_vm6, %v1383_v33, %v1386_v18  ;;  %v2934_v15 = vld [vmem:[#allocation2 + $0x50] sm:$0xff]  ;;  %v2939_v33 = vld [vmem:[#allocation2 + $0x78] sm:$0xff] }
 0x195   :  { %v1230_v36 = vshrl.u32 %v1212_v51, %v1228_v62  ;;  %v1402_v8 = vsel %vm1398_vm7, %v1386_v18, %v1401_v50  ;;  %v1405_v27 = vsel %vm1399_vm9, %v1392_v54, 920167782  ;;  %v1408_v17 = vsel %vm1396_vm6, %v1386_v18, %v1389_v44 }
 0x196   :  { %v3535_v5 = vmin.u32 %v1326_v55, %v4927_v35  ;;  %vm1397_vm11 = vcmp.lt.s32.totalorder %v1377_v7, 2  ;;  %v1406_v14 = vsel %vm1398_vm7, %v1389_v44, %v1405_v27  ;;  %v1409_v43 = vsel %vm1399_vm9, %v1395_v23, 1326507024  ;;  %v2936_v7 = vld [vmem:[#allocation2 + $0x60] sm:$0xff] }
 0x197   :  { %v1234_v9 = vshll.u32 %v1233_v63, 23  ;;  %v1403_v39 = vsel %vm1397_vm11, %v1400_v29, %v1402_v8  ;;  %v1407_v30 = vsel %vm1397_vm11, %v1404_v2, %v1406_v14  ;;  %v1410_v28 = vsel %vm1398_vm7, %v1392_v54, %v1409_v43  ;;  %v2938_v54 = vld [vmem:[#allocation2 + $0x70] sm:$0xff]  ;;  %v2943_v14 = vld [vmem:[#allocation2 + $0x98] sm:$0xff] }
 0x198   :  { %v1328_v51 = vclz %v3535_v5  ;;  %v1411_v62 = vsel %vm1397_vm11, %v1408_v17, %v1410_v28  ;;  %v4940_v50 = vmul.u32.u64.low %v4909_v48, %v1407_v30  ;;  %v4941_v18 = vmul.u32.u64.high %v4909_v48, %v1407_v30, %v4940_v50  ;;  %v2941_v5 = vld [vmem:[#allocation2 + $0x88] sm:$0xff] }
 0x199   :  { %v1229_v44 = vshll.u32 %v4864_v52, %v4905_v13  ;;  %v4947_v23 = vmul.u32.u64.low %v4909_v48, %v1411_v62  ;;  %v4948_v63 = vmul.u32.u64.high %v4909_v48, %v1411_v62, %v4947_v23  ;;  %v3542_v55 = vadd.s32 4294967169, %v1472_v1 }
 0x19a   :  { %v5631_v29 = vand.u32 2147483647, %v4890_v31  ;;  %v5632_v2 = vcvt.s32.f32 %v4887_v57  ;;  %v3536_v8 = vadd.s32 4294967294, %v1328_v51  ;;  %v3706_v27 = vpack.c.bf16 %v2934_v15, %v2932_v3  ;;  %v2942_v3 = vld [vmem:[#allocation2 + $0x90] sm:$0xff]  ;;  %v2944_v51 = vld [vmem:[#allocation2 + $0xa0] sm:$0xff] }
 0x19b   :  { %v3708_v17 = vpack.c.bf16 %v2939_v33, %v2937_v32  ;;  %v4956_v43 = vor.u32 %v1230_v36, %v1229_v44  ;;  %v4958_v52 = vor.u32 4788187, %v1234_v9  ;;  %v1419_v13 = vmul.u32 %v4909_v48, %v1403_v39  ;;  %v2940_v36 = vld [vmem:[#allocation2 + $0x80] sm:$0xff]  ;;  %v2945_v9 = vld [vmem:[#allocation2 + $0xa8] sm:$0xff]  ;;  %v2946_v44 = vld [vmem:[#allocation2 + $0xb0] sm:$0xff] }
 0x19c   :  { %v4954_v28 = vmul.f32 %v5632_v2, %v5631_v29  ;;  %v1478_v1 = vadd.s32 1, %v3542_v55  ;;  %vm3537_vm12 = vcmp.lt.s32.totalorder %v3536_v8, 0  ;;  %v1422_v30 = vadd.s32 1, %v4941_v18  ;;  %3707 = vmatpush1.bf16.msra.mxu0 %v3706_v27  ;;  %v2951_v27 = vld [vmem:[#allocation2 + $0xd8] sm:$0xff] }
 0x19d   :  { %v1476_v31 = vor.u32 8388608, %v4932_v0  ;;  %v3710_v57 = vpack.c.bf16 %v2938_v54, %v2936_v7  ;;  %v1331_v62 = vsel %vm3537_vm12, 0, %v3536_v8  ;;  %vm1421_vm2 = vc.u32 %v4948_v63, %v4940_v50  ;;  %3709 = vmatprep.subr.bf16.mxu0 %v3708_v17  ;;  %v2947_v0 = vld [vmem:[#allocation2 + $0xb8] sm:$0xff] }
 0x19e   :  { %vm1479_vm3 = vcmp.gt.s32.totalorder %v1478_v1, 0  ;;  %v3712_v32 = vpack.c.bf16 %v2943_v14, %v2941_v5  ;;  %v1316_v48 = vadd.s32 %v4869_v45, %v4880_v46  ;;  %v1332_v39 = vsub.s32 32, %v1331_v62  ;;  %v2949_v46 = vld [vmem:[#allocation2 + $0xc8] sm:$0xff] }
 0x19f   :  { %v1336_v15 = vsub.s32 4294967266, %v1331_v62  ;;  %v1423_v33 = vsel %vm1421_vm2, %v1422_v30, %v4941_v18  ;;  %v1480_v54 = vsel %vm1479_vm3, %v1478_v1, 0  ;;  %v4971_v8 = vshll.u32 %v1476_v31, 8 }
 0x1a0   :  { %v1424_v7 = vadd.s32 %v1423_v33, %v1419_v13  ;;  %v1482_v2 = vand.u32 31, %v1480_v54  ;;  %3711 = vmatpush1.bf16.msra.mxu0 %v3710_v57  ;;  %v3714_v45 = vpack.c.bf16 %v2942_v3, %v2940_v36  ;;  %v1333_v18 = vshll.u32 %v4927_v35, %v1331_v62  ;;  %v2948_v3 = vld [vmem:[#allocation2 + $0xc0] sm:$0xff] }
 0x1a1   :  { %v1337_v29 = vadd.s32 127, %v1336_v15  ;;  %3713 = vmatprep.subr.bf16.mxu0 %v3712_v32  ;;  %v3716_v5 = vpack.c.bf16 %v2947_v0, %v2945_v9  ;;  %v3718_v14 = vpack.c.bf16 %v2946_v44, %v2944_v51  ;;  %v1334_v30 = vshrl.u32 %v1316_v48, %v1332_v39  ;;  %v2950_v15 = vld [vmem:[#allocation2 + $0xd0] sm:$0xff]  ;;  %v2953_v51 = vld [vmem:[#allocation2 + $0xe8] sm:$0xff]  ;;  %v2955_v44 = vld [vmem:[#allocation2 + $0xf8] sm:$0xff] }
 0x1a2   :  { %v1425_v17 = vadd.s32 536870912, %v1424_v7  ;;  %v4974_v55 = vshrl.u32 %v1480_v54, 5  ;;  %v1483_v13 = vsub.s32 32, %v1482_v2  ;;  %v1485_v31 = vshll.u32 %v5619_v4, %v1482_v2 }
 0x1a3   :  { %v1338_v23 = vshll.u32 %v1337_v29, 23  ;;  %v1488_v57 = vshll.u32 %v5620_v59, %v1482_v2  ;;  %v3720_v36 = vpack.c.bf16 %v2951_v27, %v2949_v46  ;;  %v1491_v62 = vshll.u32 %v5621_v19, %v1482_v2 }
 0x1a4   :  { %v4976_v1 = vshrl.u32 %v1425_v17, 30  ;;  %v1486_v35 = vshrl.u32 %v5620_v59, %v1483_v13  ;;  %v1494_v32 = vshll.u32 %v5622_v22, %v1482_v2  ;;  %3715 = vmatpush1.bf16.msra.mxu0 %v3714_v45  ;;  %v1489_v48 = vshrl.u32 %v5621_v19, %v1483_v13 }
 0x1a5   :  { %v4980_v33 = vor.u32 4788187, %v1338_v23  ;;  %v1492_v39 = vshrl.u32 %v5622_v22, %v1483_v13  ;;  %v1495_v0 = vshrl.u32 %v5614_v58, %v1483_v13  ;;  %3717 = vmatprep.subr.bf16.mxu0 %v3716_v5  ;;  %v1497_v54 = vshll.u32 %v5614_v58, %v1482_v2 }
 0x1a6   :  { %5633 = vst [vmem:[#allocation24_spill] sm:$0xff] %v4976_v1  ;;  %v1427_v9 = vshll.u32 %v4976_v1, 30  ;;  %v1487_v23 = vor.u32 %v1486_v35, %v1485_v31  ;;  %v1498_v59 = vshrl.u32 %v5615_v56, %v1483_v13  ;;  %v3722_v29 = vpack.c.bf16 %v2950_v15, %v2948_v3 }
 0x1a7   :  { %v1490_v45 = vor.u32 %v1489_v48, %v1488_v57  ;;  %v1493_v27 = vor.u32 %v1492_v39, %v1491_v62  ;;  %v1496_v17 = vor.u32 %v1495_v0, %v1494_v32  ;;  %v1335_v1 = vor.u32 %v1334_v30, %v1333_v18  ;;  %v2954_v30 = vld [vmem:[#allocation2 + $0xf0] sm:$0xff] }
 0x1a8   :  { %v4991_v46 = vsub.s32 %v1424_v7, %v1427_v9  ;;  %v1484_v19 = vshrl.u32 %v5619_v4, %v1483_v13  ;;  %v1499_v22 = vor.u32 %v1498_v59, %v1497_v54  ;;  %3719 = vmatpush1.bf16.msra.mxu0 %v3718_v14  ;;  %v3724_v10 = vpack.c.bf16 %v2955_v44, %v2953_v51  ;;  %v2952_v14 = vld [vmem:[#allocation2 + $0xe0] sm:$0xff] }
 0x1a9   :  { %v1340_v5 = vand.u32 2147483647, %v4980_v33  ;;  %vm1500_vm4 = vcmp.lt.s32.totalorder %v4974_v55, 1  ;;  %vm1503_vm0 = vcmp.lt.s32.totalorder %v4974_v55, 4  ;;  %3721 = vmatprep.subr.bf16.mxu0 %v3720_v36  ;;  %vm1502_vm5 = vcmp.lt.s32.totalorder %v4974_v55, 3 }
 0x1aa   :  { %v1430_v31 = vsub.s32 0, %v4991_v46  ;;  %v1505_v58 = vsel %vm1503_vm0, %v1493_v27, 2102212464  ;;  %v1508_v56 = vsel %vm1500_vm4, %v1487_v23, %v1490_v45  ;;  %v1509_v7 = vsel %vm1503_vm0, %v1496_v17, 920167782 }
 0x1ab   :  { %vm1501_vm6 = vcmp.lt.s32.totalorder %v4974_v55, 2  ;;  %v1510_v4 = vsel %vm1502_vm5, %v1493_v27, %v1509_v7  ;;  %v1512_v18 = vsel %vm1500_vm4, %v1490_v45, %v1493_v27  ;;  %v1504_v13 = vsel %vm1500_vm4, %v1484_v19, %v1487_v23 }
 0x1ac   :  { %v3539_v2 = vmin.u32 %v1430_v31, %v4991_v46  ;;  %v1506_v57 = vsel %vm1502_vm5, %v1490_v45, %v1505_v58  ;;  %v1511_v36 = vsel %vm1501_vm6, %v1508_v56, %v1510_v4  ;;  %v1513_v3 = vsel %vm1503_vm0, %v1499_v22, 1326507024  ;;  %3723 = vmatpush1.bf16.msra.mxu0 %v3722_v29 }
 0x1ad   :  { %v1514_v33 = vsel %vm1502_vm5, %v1496_v17, %v1513_v3  ;;  %v5010_v35 = vmul.u32.u64.low %v4971_v8, %v1511_v36  ;;  %v5011_v62 = vmul.u32.u64.high %v4971_v8, %v1511_v36, %v5010_v35  ;;  %3725 = vmatprep.subr.bf16.mxu0 %v3724_v10  ;;  %vm5605_vm7 = vcmp.lt.s32.totalorder %v4498_v6, 0 }
 0x1ae   :  { %v1432_v15 = vclz %v3539_v2  ;;  %vm5604_vm9 = vcmp.lt.s32.totalorder %v4503_v53, 0  ;;  %v5634_v32 = vand.u32 2147483647, %v4958_v52  ;;  %v5635_v9 = vcvt.s32.f32 %v4956_v43 }
 0x1af   :  { %v1515_v39 = vsel %vm1501_vm6, %v1512_v18, %v1514_v33  ;;  %v3726_v0 = vpack.c.bf16 %v2954_v30, %v2952_v14  ;;  %v1342_v51 = vcvt.s32.f32 %v1335_v1  ;;  %v4076_v10 = vmov 0.0  }
 0x1b0   :  { %v5019_v48 = vmul.f32 %v5635_v9, %v5634_v32  ;;  %v3540_v44 = vadd.s32 4294967294, %v1432_v15  ;;  %v5024_v23 = vmul.u32.u64.low %v4971_v8, %v1515_v39  ;;  %v5025_v54 = vmul.u32.u64.high %v4971_v8, %v1515_v39, %v5024_v23  ;;  %3032 = vmatprep.mubr.f32.mxu0 %v4076_v10  ;;  %v3314_v39 = vld [vmem:[#allocation5 + $0xa8] sm:$0xff] }
 0x1b1   :  { %v1420_v52 = vadd.s32 %v4940_v50, %v4948_v63  ;;  %v1507_v43 = vsel %vm1501_vm6, %v1504_v13, %v1506_v57  ;;  %3727 = vmatpush1.bf16.msra.mxu0 %v3726_v0  ;;  %v5636_v59 = vand.u32 2147483647, %v4196_v25  ;;  %v306_v1 = vsub.s32 4, %v4324_v21 }
 0x1b2   :  { %v5039_v45 = vmul.f32 %v1342_v51, %v1340_v5  ;;  %vm3541_vm12 = vcmp.lt.s32.totalorder %v3540_v44, 0  ;;  %v1526_v27 = vadd.s32 1, %v5011_v62  ;;  %v410_v17 = vsub.s32 4, %v4297_v40 }
 0x1b3   :  { %vm5034_vm11 = vcmp.le.f32.partialorder %v5636_v59, 0.7853982  ;;  %v1435_v63 = vsel %vm3541_vm12, 0, %v3540_v44  ;;  %v307_v55 = vsel %vm222_vm13, %v306_v1, %v4324_v21  ;;  %v1523_v5 = vmul.u32 %v4971_v8, %v1507_v43 }
 0x1b4   :  { %v308_v50 = vsel %vm5034_vm11, %v4196_v25, %v4556_v38  ;;  %v1436_v19 = vsub.s32 32, %v1435_v63  ;;  %v1440_v22 = vsub.s32 4294967266, %v1435_v63  ;;  %v5639_v31 = vand.u32 2147483647, %v4193_v24 }
 0x1b5   :  { %3833 = vcosq.f32 %v308_v50  ;;  %vm1525_vm3 = vc.u32 %v5025_v54, %v5010_v35  ;;  %v309_v38 = vsel %vm5034_vm11, 0, %v307_v55  ;;  %v411_v21 = vsel %vm326_vm10, %v410_v17, %v4297_v40 }
 0x1b6   :  { %vm5053_vm2 = vcmp.le.f32.partialorder %v5639_v31, 0.7853982  ;;  %3835 = vsinq.f32 %v308_v50  ;;  %v1438_v56 = vshrl.u32 %v1420_v52, %v1436_v19  ;;  %v1441_v7 = vadd.s32 127, %v1440_v22 }
 0x1b7   :  { %v1527_v8 = vsel %vm1525_vm3, %v1526_v27, %v5011_v62  ;;  %v313_v2 = vadd.s32 3, %v309_v38  ;;  %v1437_v4 = vshll.u32 %v4991_v46, %v1435_v63  ;;  %v218_v14 = vand.u32 32, %v4180_v16 }
 0x1b8   :  { %v1528_v18 = vadd.s32 %v1527_v8, %v1523_v5  ;;  %v412_v30 = vsel %vm5053_vm2, %v4193_v24, %v4552_v12  ;;  %v5642_v13 = vxor.u32 2147483648, %v4760_v34  ;;  %v5643_v57 = vxor.u32 2147483648, %v4850_v42 }
 0x1b9   :  { %v1665_v16 = vand.u32 3, %v309_v38  ;;  %3837 = vcosq.f32 %v412_v30  ;;  %v1439_v36 = vor.u32 %v1438_v56, %v1437_v4  ;;  %v1442_v3 = vshll.u32 %v1441_v7, 23 }
 0x1ba   :  { %v5075_v40 = vsel %vm5605_vm7, %v5642_v13, %v4760_v34  ;;  %v5082_v46 = vsel %vm5604_vm9, %v5643_v57, %v4850_v42  ;;  %v1529_v15 = vadd.s32 536870912, %v1528_v18  ;;  %v413_v12 = vsel %vm5053_vm2, 0, %v411_v21 }
 0x1bb   :  { %v1136_v33 = vxor.u32 2147483648, %v4954_v28  ;;  %v1240_v34 = vxor.u32 2147483648, %v5019_v48  ;;  %v1344_v62 = vxor.u32 2147483648, %v5039_v45  ;;  %v314_v32 = vand.u32 3, %v313_v2 }
 0x1bc   :  { %v5090_v9 = vadd.s32 %v5010_v35, %v5025_v54  ;;  %v5092_v42 = vshrl.u32 %v1529_v15, 30  ;;  %vm5094_vm10 = vcmp.eq.s32.totalorder %v218_v14, 0  ;;  %vm312_vm13 = vweird.f32 %v4196_v25 }
 0x1bd   :  { %3839 = vsinq.f32 %v412_v30  ;;  %vm1666_vm4 = vcmp.lt.s32.totalorder %v1665_v16, 2  ;;  %vm1667_vm0 = vcmp.eq.s32.totalorder %v1665_v16, 0  ;;  %vm1670_vm5 = vcmp.eq.s32.totalorder %v1665_v16, 2 }
 0x1be   :  { %v417_v0 = vadd.s32 3, %v413_v12  ;;  %v1443_v44 = vor.u32 4788187, %v1442_v3  ;;  %v1446_v23 = vcvt.s32.f32 %v1439_v36  ;;  %v1531_v52 = vshll.u32 %v5092_v42, 30 }
 0x1bf   :  { %v3834_v51 = vpop.eup %3833  ;;  %v514_v35 = vsub.s32 4, %v4360_v41  ;;  %vm315_vm6 = vcmp.lt.s32.totalorder %v314_v32, 2  ;;  %vm316_vm11 = vcmp.eq.s32.totalorder %v314_v32, 0  ;;  %v1768_v43 = vand.u32 3, %v413_v12 }
 0x1c0   :  { %v320_v54 = vxor.u32 2147483648, %v3834_v51  ;;  %v3836_v59 = vpop.eup %3835  ;;  %v5101_v29 = vsub.s32 %v1528_v18, %v1531_v52  ;;  %vm319_vm12 = vcmp.eq.s32.totalorder %v314_v32, 2  ;;  %v5646_v1 = vand.u32 2147483647, %v4209_v37 }
 0x1c1   :  { %v515_v27 = vsel %vm430_vm15, %v514_v35, %v4360_v41  ;;  %v317_v50 = vxor.u32 2147483648, %v3836_v59  ;;  %v418_v17 = vand.u32 3, %v417_v0  ;;  %v1444_v19 = vand.u32 2147483647, %v1443_v44 }
 0x1c2   :  { %vm429_vm2 = vcmp.le.f32.partialorder %v5646_v1, 0.7853982  ;;  %v321_v63 = vsel %vm319_vm12, %v320_v54, %v3836_v59  ;;  %v1672_v55 = vsel %vm1670_vm5, %v320_v54, %v3836_v59  ;;  %v1534_v22 = vsub.s32 0, %v5101_v29 }
 0x1c3   :  { %vm416_vm3 = vweird.f32 %v4193_v24  ;;  %v516_v5 = vsel %vm429_vm2, %v4209_v37, %v4610_v11  ;;  %v3838_v31 = vpop.eup %3837  ;;  %v318_v58 = vsel %vm316_vm11, %v3834_v51, %v317_v50  ;;  %v1669_v38 = vsel %vm1667_vm0, %v3834_v51, %v317_v50  ;;  %v5650_v50 = vld [vmem:[#allocation16_spill] sm:$0xff] }
 0x1c4   :  { %vm1773_vm9 = vcmp.eq.s32.totalorder %v1768_v43, 2  ;;  %v517_v41 = vsel %vm429_vm2, 0, %v515_v27  ;;  %v3543_v21 = vmin.u32 %v1534_v22, %v5101_v29  ;;  %v322_v56 = vsel %vm315_vm6, %v318_v58, %v321_v63 }
 0x1c5   :  { %v1673_v7 = vsel %vm1666_vm4, %v1669_v38, %v1672_v55  ;;  %v424_v8 = vxor.u32 2147483648, %v3838_v31  ;;  %v323_v2 = vsel %vm312_vm13, nan, %v322_v56  ;;  %vm423_vm15 = vcmp.eq.s32.totalorder %v418_v17, 2 }
 0x1c6   :  { %v1674_v11 = vsel %vm312_vm13, nan, %v1673_v7  ;;  %3841 = vcosq.f32 %v516_v5  ;;  %v1536_v18 = vclz %v3543_v21  ;;  %v521_v30 = vadd.s32 3, %v517_v41 }
 0x1c7   :  { %v3840_v4 = vpop.eup %3839  ;;  %v2911_v14 = vsel %vm5094_vm10, %v323_v2, %v1674_v11  ;;  %3843 = vsinq.f32 %v516_v5  ;;  %v5124_v13 = vmul.f32 %v1446_v23, %v1444_v19  ;;  %vm420_vm13 = vcmp.eq.s32.totalorder %v418_v17, 0  ;;  %v5652_v2 = vld [vmem:[#allocation11_spill] sm:$0xff] }
 0x1c8   :  { %3033 = vmatmul.mubr.f32.vlgmr.msra.gmra.mrb[0].mxu0 %v2911_v14  ;;  %v421_v57 = vxor.u32 2147483648, %v3840_v4  ;;  %v425_v16 = vsel %vm423_vm15, %v424_v8, %v3840_v4  ;;  %v1775_v36 = vsel %vm1773_vm9, %v424_v8, %v3840_v4  ;;  %v3544_v3 = vadd.s32 4294967294, %v1536_v18  ;;  %v5656_v18 = vld [vmem:[#allocation19_spill] sm:$0xff] }
 0x1c9   :  { %3038 = vmatprep.mubr.f32.mxu0 %v4076_v10  ;;  %vm1769_vm4 = vcmp.lt.s32.totalorder %v1768_v43, 2  ;;  %vm1770_vm0 = vcmp.eq.s32.totalorder %v1768_v43, 0  ;;  %vm419_vm5 = vcmp.lt.s32.totalorder %v418_v17, 2  ;;  %v1871_v12 = vand.u32 3, %v517_v41  ;;  %v5651_v41 = vld [vmem:[#allocation13_spill] sm:$0xff] }
 0x1ca   :  { %v422_v25 = vsel %vm420_vm13, %v3838_v31, %v421_v57  ;;  %v1772_v15 = vsel %vm1770_vm0, %v3838_v31, %v421_v57  ;;  %vm3545_vm6 = vcmp.lt.s32.totalorder %v3544_v3, 0  ;;  %v522_v51 = vand.u32 3, %v521_v30 }
 0x1cb   :  { %v426_v32 = vsel %vm419_vm5, %v422_v25, %v425_v16  ;;  %v1776_v0 = vsel %vm1769_vm4, %v1772_v15, %v1775_v36  ;;  %v1448_v44 = vxor.u32 2147483648, %v5124_v13  ;;  %v1539_v23 = vsel %vm3545_vm6, 0, %v3544_v3 }
 0x1cc   :  { %v427_v52 = vsel %vm416_vm3, nan, %v426_v32  ;;  %v1777_v35 = vsel %vm416_vm3, nan, %v1776_v0  ;;  %vm1054_vm9 = vcmp.lt.s32.totalorder %v4568_v61, 0  ;;  %v1540_v54 = vsub.s32 32, %v1539_v23 }
 0x1cd   :  { %v1544_v43 = vsub.s32 4294967266, %v1539_v23  ;;  %v2912_v59 = vsel %vm5094_vm10, %v427_v52, %v1777_v35  ;;  %vm520_vm11 = vweird.f32 %v4209_v37  ;;  %v5647_v1 = vand.u32 2147483647, %v4226_v60 }
 0x1ce   :  { %vm1158_vm2 = vcmp.lt.s32.totalorder %v4699_v26, 0  ;;  %vm1262_vm15 = vcmp.lt.s32.totalorder %v4720_v47, 0  ;;  %vm5606_vm3 = vcmp.lt.s32.totalorder %v4765_v20, 0  ;;  %3039 = vmatmul.mubr.f32.gmra.mrb[2].mxu0 %v2912_v59  ;;  %vm1872_vm13 = vcmp.lt.s32.totalorder %v1871_v12, 2  ;;  %v5658_v59 = vld [vmem:[#allocation12_spill] sm:$0xff] }
 0x1cf   :  { %vm5139_vm12 = vcmp.le.f32.partialorder %v5647_v1, 0.7853982  ;;  %vm1873_vm4 = vcmp.eq.s32.totalorder %v1871_v12, 0  ;;  %v618_v24 = vsub.s32 4, %v4443_v49  ;;  %v1545_v55 = vadd.s32 127, %v1544_v43  ;;  %3044 = vmatprep.mubr.f32.mxu0 %v4076_v10 }
 0x1d0   :  { %v620_v63 = vsel %vm5139_vm12, %v4226_v60, %v5650_v50  ;;  %vm523_vm0 = vcmp.lt.s32.totalorder %v522_v51, 2  ;;  %vm1876_vm5 = vcmp.eq.s32.totalorder %v1871_v12, 2  ;;  %v3842_v17 = vpop.eup %3841  ;;  %v1542_v19 = vshrl.u32 %v5090_v9, %v1540_v54 }
 0x1d1   :  { %3845 = vcosq.f32 %v620_v63  ;;  %vm527_vm6 = vcmp.eq.s32.totalorder %v522_v51, 2  ;;  %v619_v22 = vsel %vm534_vm8, %v618_v24, %v4443_v49  ;;  %v3844_v5 = vpop.eup %3843  ;;  %v1546_v31 = vshll.u32 %v1545_v55, 23 }
 0x1d2   :  { %3847 = vsinq.f32 %v620_v63  ;;  %v528_v58 = vxor.u32 2147483648, %v3842_v17  ;;  %v621_v38 = vsel %vm5139_vm12, 0, %v619_v22  ;;  %v722_v21 = vsub.s32 4, %v5651_v41  ;;  %v5660_v63 = vld [vmem:[#allocation20_spill] sm:$0xff] }
 0x1d3   :  { %v1541_v56 = vshll.u32 %v5101_v29, %v1539_v23  ;;  %v525_v7 = vxor.u32 2147483648, %v3844_v5  ;;  %v625_v8 = vadd.s32 3, %v621_v38  ;;  %v5653_v9 = vand.u32 2147483647, %v5652_v2 }
 0x1d4   :  { %vm524_vm8 = vcmp.eq.s32.totalorder %v522_v51, 0  ;;  %v529_v49 = vsel %vm527_vm6, %v528_v58, %v3844_v5  ;;  %v1878_v4 = vsel %vm1876_vm5, %v528_v58, %v3844_v5  ;;  %v1974_v16 = vand.u32 3, %v621_v38 }
 0x1d5   :  { %vm5162_vm7 = vcmp.le.f32.partialorder %v5653_v9, 0.7853982  ;;  %v1543_v30 = vor.u32 %v1542_v19, %v1541_v56  ;;  %v526_v57 = vsel %vm524_vm8, %v3842_v17, %v525_v7  ;;  %v1875_v29 = vsel %vm1873_vm4, %v3842_v17, %v525_v7 }
 0x1d6   :  { %v724_v14 = vsel %vm5162_vm7, %v5652_v2, %v5656_v18  ;;  %v1547_v36 = vor.u32 4788187, %v1546_v31  ;;  %v530_v3 = vsel %vm523_vm0, %v526_v57, %v529_v49  ;;  %v1879_v25 = vsel %vm1872_vm13, %v1875_v29, %v1878_v4  ;;  %v5664_v4 = vld [vmem:[#allocation15_spill] sm:$0xff] }
 0x1d7   :  { %v723_v15 = vsel %vm638_vm14, %v722_v21, %v5651_v41  ;;  %v5182_v32 = vsel %vm1054_vm9, %v1136_v33, %v4954_v28  ;;  %v531_v0 = vsel %vm520_vm11, nan, %v530_v3  ;;  %v1880_v51 = vsel %vm520_vm11, nan, %v1879_v25 }
 0x1d8   :  { %v626_v23 = vand.u32 3, %v625_v8  ;;  %v5193_v12 = vsel %vm1158_vm2, %v1240_v34, %v5019_v48  ;;  %v5200_v28 = vsel %vm1262_vm15, %v1344_v62, %v5039_v45  ;;  %v5205_v37 = vsel %vm5606_vm3, %v1448_v44, %v5124_v13  ;;  %v5657_v34 = vld [vmem:[#allocation14_spill] sm:$0xff] }
 0x1d9   :  { %v2913_v33 = vsel %vm5094_vm10, %v531_v0, %v1880_v51  ;;  %vm624_vm14 = vweird.f32 %v4226_v60  ;;  %v725_v48 = vsel %vm5162_vm7, 0, %v723_v15  ;;  %3849 = vcosq.f32 %v724_v14  ;;  %v5666_v0 = vld [vmem:[#allocation17_spill] sm:$0xff] }
 0x1da   :  { %3045 = vmatmul.mubr.f32.gmra.mrb[4].mxu0 %v2913_v33  ;;  %v826_v52 = vsub.s32 4, %v5657_v34  ;;  %v1548_v45 = vand.u32 2147483647, %v1547_v36  ;;  %v1550_v62 = vcvt.s32.f32 %v1543_v30  ;;  %vm1975_vm11 = vcmp.lt.s32.totalorder %v1974_v16, 2 }
 0x1db   :  { %v3846_v35 = vpop.eup %3845  ;;  %3050 = vmatprep.mubr.f32.mxu0 %v4076_v10  ;;  %3851 = vsinq.f32 %v724_v14  ;;  %vm631_vm12 = vcmp.eq.s32.totalorder %v626_v23, 2  ;;  %vm1976_vm13 = vcmp.eq.s32.totalorder %v1974_v16, 0  ;;  %vm1979_vm4 = vcmp.eq.s32.totalorder %v1974_v16, 2 }
 0x1dc   :  { %v3848_v13 = vpop.eup %3847  ;;  %v632_v44 = vxor.u32 2147483648, %v3846_v35  ;;  %v729_v43 = vadd.s32 3, %v725_v48  ;;  %v5659_v1 = vand.u32 2147483647, %v5658_v59  ;;  %v827_v27 = vsel %vm742_vm1, %v826_v52, %v5657_v34 }
 0x1dd   :  { %v629_v54 = vxor.u32 2147483648, %v3848_v13  ;;  %vm628_vm0 = vcmp.eq.s32.totalorder %v626_v23, 0  ;;  %v5221_v17 = vmul.f32 %v1550_v62, %v1548_v45  ;;  %vm627_vm5 = vcmp.lt.s32.totalorder %v626_v23, 2 }
 0x1de   :  { %vm741_vm7 = vcmp.le.f32.partialorder %v5659_v1, 0.7853982  ;;  %v633_v24 = vsel %vm631_vm12, %v632_v44, %v3848_v13  ;;  %v1981_v50 = vsel %vm1979_vm4, %v632_v44, %v3848_v13  ;;  %v2077_v58 = vand.u32 3, %v725_v48 }
 0x1df   :  { %v828_v55 = vsel %vm741_vm7, %v5658_v59, %v5660_v63  ;;  %v630_v19 = vsel %vm628_vm0, %v3846_v35, %v629_v54  ;;  %v1978_v22 = vsel %vm1976_vm13, %v3846_v35, %v629_v54  ;;  %v829_v38 = vsel %vm741_vm7, 0, %v827_v27 }
 0x1e0   :  { %v634_v5 = vsel %vm627_vm5, %v630_v19, %v633_v24  ;;  %v1982_v31 = vsel %vm1975_vm11, %v1978_v22, %v1981_v50  ;;  %vm728_vm1 = vweird.f32 %v5652_v2  ;;  %v730_v56 = vand.u32 3, %v729_v43 }
 0x1e1   :  { %v635_v41 = vsel %vm624_vm14, nan, %v634_v5  ;;  %v1983_v21 = vsel %vm624_vm14, nan, %v1982_v31  ;;  %3853 = vcosq.f32 %v828_v55  ;;  %v833_v8 = vadd.s32 3, %v829_v38 }
 0x1e2   :  { %v2914_v7 = vsel %vm5094_vm10, %v635_v41, %v1983_v21  ;;  %3855 = vsinq.f32 %v828_v55  ;;  %v5661_v9 = vand.u32 2147483647, %v4498_v6  ;;  %v1552_v49 = vxor.u32 2147483648, %v5221_v17 }
 0x1e3   :  { %3051 = vmatmul.mubr.f32.gmra.mrb[6].mxu0 %v2914_v7  ;;  %v5238_v60 = vand.u32 3, %v829_v38  ;;  %v930_v18 = vsub.s32 4, %v5664_v4  ;;  %v3850_v30 = vpop.eup %3849  ;;  %vm2078_vm8 = vcmp.lt.s32.totalorder %v2077_v58, 2  ;;  %vm2079_vm14 = vcmp.eq.s32.totalorder %v2077_v58, 0 }
 0x1e4   :  { %vm5233_vm6 = vcmp.le.f32.partialorder %v5661_v9, 0.7853982  ;;  %3056 = vmatprep.mubr.f32.mxu0 %v4076_v10  ;;  %vm2082_vm11 = vcmp.eq.s32.totalorder %v2077_v58, 2  ;;  %vm731_vm12 = vcmp.lt.s32.totalorder %v730_v56, 2  ;;  %vm732_vm13 = vcmp.eq.s32.totalorder %v730_v56, 0 }
 0x1e5   :  { %v932_v14 = vsel %vm5233_vm6, %v4498_v6, %v5075_v40  ;;  %v3852_v57 = vpop.eup %3851  ;;  %vm735_vm4 = vcmp.eq.s32.totalorder %v730_v56, 2  ;;  %v736_v29 = vxor.u32 2147483648, %v3850_v30  ;;  %v834_v36 = vand.u32 3, %v833_v8 }
 0x1e6   :  { %3857 = vcosq.f32 %v932_v14  ;;  %v733_v16 = vxor.u32 2147483648, %v3852_v57  ;;  %vm5665_vm7 = vcmp.lt.s32.totalorder %v4498_v6, 0  ;;  %vm2181_vm0 = vcmp.lt.s32.totalorder %v5238_v60, 2 }
 0x1e7   :  { %v931_v3 = vsel %vm5665_vm7, %v930_v18, %v5664_v4  ;;  %3859 = vsinq.f32 %v932_v14  ;;  %v737_v40 = vsel %vm735_vm4, %v736_v29, %v3852_v57  ;;  %v2084_v25 = vsel %vm2082_vm11, %v736_v29, %v3852_v57 }
 0x1e8   :  { %v933_v15 = vsel %vm5233_vm6, 0, %v931_v3  ;;  %v1034_v51 = vsub.s32 4, %v5666_v0  ;;  %v734_v23 = vsel %vm732_vm13, %v3850_v30, %v733_v16  ;;  %v2081_v33 = vsel %vm2079_vm14, %v3850_v30, %v733_v16  ;;  %v5670_v16 = vld [vmem:[#allocation18_spill] sm:$0xff] }
 0x1e9   :  { %vm832_vm5 = vweird.f32 %v5658_v59  ;;  %v937_v48 = vadd.s32 3, %v933_v15  ;;  %v5667_v34 = vand.u32 2147483647, %v4503_v53  ;;  %v738_v52 = vsel %vm731_vm12, %v734_v23, %v737_v40 }
 0x1ea   :  { %v2085_v35 = vsel %vm2078_vm8, %v2081_v33, %v2084_v25  ;;  %v2283_v45 = vand.u32 3, %v933_v15  ;;  %vm5668_vm11 = vcmp.lt.s32.totalorder %v4503_v53, 0  ;;  %v739_v13 = vsel %vm728_vm1, nan, %v738_v52 }
 0x1eb   :  { %vm949_vm3 = vcmp.le.f32.partialorder %v5667_v34, 0.7853982  ;;  %v1035_v62 = vsel %vm5668_vm11, %v1034_v51, %v5666_v0  ;;  %v2086_v44 = vsel %vm728_vm1, nan, %v2085_v35  ;;  %vm2182_vm6 = vcmp.eq.s32.totalorder %v5238_v60, 0  ;;  %v3854_v43 = vpop.eup %3853 }
 0x1ec   :  { %v1036_v54 = vsel %vm949_vm3, %v4503_v53, %v5082_v46  ;;  %v2915_v1 = vsel %vm5094_vm10, %v739_v13, %v2086_v44  ;;  %vm835_vm8 = vcmp.lt.s32.totalorder %v834_v36, 2  ;;  %vm2185_vm14 = vcmp.eq.s32.totalorder %v5238_v60, 2  ;;  %v3856_v24 = vpop.eup %3855 }
 0x1ed   :  { %v1037_v27 = vsel %vm949_vm3, 0, %v1035_v62  ;;  %3057 = vmatmul.mubr.f32.gmra.mrb[8].mxu0 %v2915_v1  ;;  %vm836_vm12 = vcmp.eq.s32.totalorder %v834_v36, 0  ;;  %vm839_vm13 = vcmp.eq.s32.totalorder %v834_v36, 2  ;;  %v840_v50 = vxor.u32 2147483648, %v3854_v43 }
 0x1ee   :  { %vm936_vm1 = vweird.f32 %v4498_v6  ;;  %v938_v2 = vand.u32 3, %v937_v48  ;;  %3062 = vmatprep.mubr.f32.mxu0 %v4076_v10  ;;  %v837_v63 = vxor.u32 2147483648, %v3856_v24  ;;  %vm2284_vm4 = vcmp.lt.s32.totalorder %v2283_v45, 2  ;;  %v5674_v48 = vld [vmem:[#allocation21_spill] sm:$0xff] }
 0x1ef   :  { %3861 = vcosq.f32 %v1036_v54  ;;  %v1041_v46 = vadd.s32 3, %v1037_v27  ;;  %v841_v19 = vsel %vm839_vm13, %v840_v50, %v3856_v24  ;;  %v2187_v22 = vsel %vm2185_vm14, %v840_v50, %v3856_v24 }
 0x1f0   :  { %v3858_v55 = vpop.eup %3857  ;;  %vm2288_vm3 = vcmp.eq.s32.totalorder %v2283_v45, 2  ;;  %3863 = vsinq.f32 %v1036_v54  ;;  %v838_v5 = vsel %vm836_vm12, %v3854_v43, %v837_v63  ;;  %v2184_v31 = vsel %vm2182_vm6, %v3854_v43, %v837_v63 }
 0x1f1   :  { %v944_v58 = vxor.u32 2147483648, %v3858_v55  ;;  %v2386_v38 = vand.u32 3, %v1037_v27  ;;  %v3860_v41 = vpop.eup %3859  ;;  %v842_v21 = vsel %vm835_vm8, %v838_v5, %v841_v19  ;;  %v2188_v56 = vsel %vm2181_vm0, %v2184_v31, %v2187_v22 }
 0x1f2   :  { %vm943_vm7 = vcmp.eq.s32.totalorder %v938_v2, 2  ;;  %v1042_v7 = vand.u32 3, %v1041_v46  ;;  %v843_v8 = vsel %vm832_vm5, nan, %v842_v21  ;;  %v2189_v9 = vsel %vm832_vm5, nan, %v2188_v56 }
 0x1f3   :  { %v941_v11 = vxor.u32 2147483648, %v3860_v41  ;;  %v945_v4 = vsel %vm943_vm7, %v944_v58, %v3860_v41  ;;  %v2916_v18 = vsel %vm5094_vm10, %v843_v8, %v2189_v9  ;;  %vm940_vm11 = vcmp.eq.s32.totalorder %v938_v2, 0  ;;  %v5679_v9 = vld [vmem:[#allocation24_spill] sm:$0xff] }
 0x1f4   :  { %vm2285_vm6 = vcmp.eq.s32.totalorder %v2283_v45, 0  ;;  %v2290_v14 = vsel %vm2288_vm3, %v944_v58, %v3860_v41  ;;  %3063 = vmatmul.mubr.f32.gmra.mrb[10].mxu0 %v2916_v18  ;;  %vm939_vm8 = vcmp.lt.s32.totalorder %v938_v2, 2  ;;  %vm2388_vm0 = vcmp.eq.s32.totalorder %v2386_v38, 0 }
 0x1f5   :  { %v942_v60 = vsel %vm940_vm11, %v3858_v55, %v941_v11  ;;  %v2287_v30 = vsel %vm2285_vm6, %v3858_v55, %v941_v11  ;;  %3068 = vmatprep.mubr.f32.mxu0 %v4076_v10  ;;  %vm1040_vm5 = vweird.f32 %v4503_v53  ;;  %v5669_v29 = vand.u32 2147483647, %v4568_v61  ;;  %v5678_v53 = vld [vmem:[#allocation23_spill] sm:$0xff] }
 0x1f6   :  { %v946_v57 = vsel %vm939_vm8, %v942_v60, %v945_v4  ;;  %v2291_v59 = vsel %vm2284_vm4, %v2287_v30, %v2290_v14  ;;  %v1138_v36 = vsub.s32 4, %v5670_v16  ;;  %vm1044_vm12 = vcmp.eq.s32.totalorder %v1042_v7, 0 }
 0x1f7   :  { %vm1053_vm14 = vcmp.le.f32.partialorder %v5669_v29, 0.7853982  ;;  %v947_v3 = vsel %vm936_vm1, nan, %v946_v57  ;;  %v2292_v40 = vsel %vm936_vm1, nan, %v2291_v59  ;;  %v5671_v51 = vand.u32 2147483647, %v4699_v26 }
 0x1f8   :  { %v1140_v25 = vsel %vm1053_vm14, %v4568_v61, %v5182_v32  ;;  %v2917_v15 = vsel %vm5094_vm10, %v947_v3, %v2292_v40  ;;  %v1139_v0 = vsel %vm1054_vm9, %v1138_v36, %v5670_v16  ;;  %v1242_v32 = vsub.s32 4, %v5674_v48 }
 0x1f9   :  { %3865 = vcosq.f32 %v1140_v25  ;;  %vm5307_vm13 = vcmp.le.f32.partialorder %v5671_v51, 0.7853982  ;;  %v3862_v6 = vpop.eup %3861  ;;  %3069 = vmatmul.mubr.f32.gmra.mrb[12].mxu0 %v2917_v15  ;;  %v1141_v33 = vsel %vm1053_vm14, 0, %v1139_v0  ;;  %vm1047_vm9 = vcmp.eq.s32.totalorder %v1042_v7, 2 }
 0x1fa   :  { %3867 = vsinq.f32 %v1140_v25  ;;  %v1244_v34 = vsel %vm5307_vm13, %v4699_v26, %v5193_v12  ;;  %v3864_v52 = vpop.eup %3863  ;;  %3074 = vmatprep.mubr.f32.mxu0 %v4076_v10  ;;  %v1048_v35 = vxor.u32 2147483648, %v3862_v6  ;;  %v1145_v45 = vadd.s32 3, %v1141_v33 }
 0x1fb   :  { %v2489_v62 = vand.u32 3, %v1141_v33  ;;  %3869 = vcosq.f32 %v1244_v34  ;;  %v1045_v13 = vxor.u32 2147483648, %v3864_v52  ;;  %vm2391_vm1 = vcmp.eq.s32.totalorder %v2386_v38, 2 }
 0x1fc   :  { %3871 = vsinq.f32 %v1244_v34  ;;  %v1049_v44 = vsel %vm1047_vm9, %v1048_v35, %v3864_v52  ;;  %v2393_v54 = vsel %vm2391_vm1, %v1048_v35, %v3864_v52  ;;  %v1146_v43 = vand.u32 3, %v1145_v45 }
 0x1fd   :  { %v1243_v1 = vsel %vm1158_vm2, %v1242_v32, %v5674_v48  ;;  %vm1043_vm4 = vcmp.lt.s32.totalorder %v1042_v7, 2  ;;  %v1046_v12 = vsel %vm1044_vm12, %v3862_v6, %v1045_v13  ;;  %vm2387_vm3 = vcmp.lt.s32.totalorder %v2386_v38, 2 }
 0x1fe   :  { %v2390_v27 = vsel %vm2388_vm0, %v3862_v6, %v1045_v13  ;;  %v1050_v24 = vsel %vm1043_vm4, %v1046_v12, %v1049_v44  ;;  %vm2490_vm7 = vcmp.lt.s32.totalorder %v2489_v62, 2  ;;  %vm2491_vm11 = vcmp.eq.s32.totalorder %v2489_v62, 0 }
 0x1ff   :  { %v2394_v50 = vsel %vm2387_vm3, %v2390_v27, %v2393_v54  ;;  %vm2494_vm6 = vcmp.eq.s32.totalorder %v2489_v62, 2  ;;  %v1051_v2 = vsel %vm1040_vm5, nan, %v1050_v24  ;;  %vm1144_vm8 = vweird.f32 %v4568_v61 }
 0x200   :  { %v2395_v63 = vsel %vm1040_vm5, nan, %v2394_v50  ;;  %vm1147_vm2 = vcmp.lt.s32.totalorder %v1146_v43, 2  ;;  %v1245_v46 = vsel %vm5307_vm13, 0, %v1243_v1  ;;  %v5675_v5 = vand.u32 2147483647, %v4720_v47 }
 0x201   :  { %v2918_v55 = vsel %vm5094_vm10, %v1051_v2, %v2395_v63  ;;  %v1249_v19 = vadd.s32 3, %v1245_v46  ;;  %v2592_v22 = vand.u32 3, %v1245_v46  ;;  %vm1148_vm14 = vcmp.eq.s32.totalorder %v1146_v43, 0 }
 0x202   :  { %vm5333_vm0 = vcmp.le.f32.partialorder %v5675_v5, 0.7853982  ;;  %3075 = vmatmul.mubr.f32.gmra.mrb[14].mxu0 %v2918_v55  ;;  %vm1151_vm5 = vcmp.eq.s32.totalorder %v1146_v43, 2  ;;  %v1346_v58 = vsub.s32 4, %v5678_v53  ;;  %v1450_v11 = vsub.s32 4, %v5679_v9  ;;  %v5684_v43 = vld [vmem:[#allocation22_spill] sm:$0xff] }
 0x203   :  { %v1348_v38 = vsel %vm5333_vm0, %v4720_v47, %v5200_v28  ;;  %v3866_v41 = vpop.eup %3865  ;;  %3080 = vmatprep.mubr.f32.mxu0 %v4076_v10  ;;  %v1250_v21 = vand.u32 3, %v1249_v19  ;;  %vm2593_vm13 = vcmp.lt.s32.totalorder %v2592_v22, 2  ;;  %vm2594_vm9 = vcmp.eq.s32.totalorder %v2592_v22, 0 }
 0x204   :  { %vm2597_vm1 = vcmp.eq.s32.totalorder %v2592_v22, 2  ;;  %v3868_v56 = vpop.eup %3867  ;;  %v1152_v7 = vxor.u32 2147483648, %v3866_v41  ;;  %v1347_v8 = vsel %vm1262_vm15, %v1346_v58, %v5678_v53  ;;  %3873 = vcosq.f32 %v1348_v38 }
 0x205   :  { %v3870_v4 = vpop.eup %3869  ;;  %v1149_v18 = vxor.u32 2147483648, %v3868_v56  ;;  %vm1251_vm4 = vcmp.lt.s32.totalorder %v1250_v21, 2  ;;  %vm1252_vm3 = vcmp.eq.s32.totalorder %v1250_v21, 0  ;;  %vm1255_vm12 = vcmp.eq.s32.totalorder %v1250_v21, 2 }
 0x206   :  { %v3872_v28 = vpop.eup %3871  ;;  %v1153_v14 = vsel %vm1151_vm5, %v1152_v7, %v3868_v56  ;;  %v2496_v60 = vsel %vm2494_vm6, %v1152_v7, %v3868_v56  ;;  %v1256_v30 = vxor.u32 2147483648, %v3870_v4  ;;  %v1349_v57 = vsel %vm5333_vm0, 0, %v1347_v8 }
 0x207   :  { %v1150_v59 = vsel %vm1148_vm14, %v3866_v41, %v1149_v18  ;;  %v2493_v29 = vsel %vm2491_vm11, %v3866_v41, %v1149_v18  ;;  %v1253_v16 = vxor.u32 2147483648, %v3872_v28  ;;  %3875 = vsinq.f32 %v1348_v38 }
 0x208   :  { %v1154_v36 = vsel %vm1147_vm2, %v1150_v59, %v1153_v14  ;;  %v2497_v3 = vsel %vm2490_vm7, %v2493_v29, %v2496_v60  ;;  %v1257_v40 = vsel %vm1255_vm12, %v1256_v30, %v3872_v28  ;;  %v2599_v25 = vsel %vm2597_vm1, %v1256_v30, %v3872_v28 }
 0x209   :  { %v1155_v15 = vsel %vm1144_vm8, nan, %v1154_v36  ;;  %v2498_v0 = vsel %vm1144_vm8, nan, %v2497_v3  ;;  %v1254_v51 = vsel %vm1252_vm3, %v3870_v4, %v1253_v16  ;;  %v2596_v23 = vsel %vm2594_vm9, %v3870_v4, %v1253_v16 }
 0x20a   :  { %v2919_v6 = vsel %vm5094_vm10, %v1155_v15, %v2498_v0  ;;  %v1258_v33 = vsel %vm1251_vm4, %v1254_v51, %v1257_v40  ;;  %v2600_v48 = vsel %vm2593_vm13, %v2596_v23, %v2599_v25  ;;  %v1353_v32 = vadd.s32 3, %v1349_v57 }
 0x20b   :  { %3081 = vmatmul.mubr.f32.gmra.mrb[16].mxu0 %v2919_v6  ;;  %vm5680_vm15 = vweird.f32 %v4699_v26  ;;  %v5682_v52 = vand.u32 2147483647, %v4765_v20  ;;  %vm5683_vm6 = vcmp.lt.s32.totalorder %v4765_v20, 0  ;;  %v2695_v45 = vand.u32 3, %v1349_v57 }
 0x20c   :  { %v1259_v34 = vsel %vm5680_vm15, nan, %v1258_v33  ;;  %vm5681_vm7 = vmmov %vm5680_vm15  ;;  %v1451_v35 = vsel %vm5683_vm6, %v1450_v11, %v5679_v9  ;;  %3086 = vmatprep.mubr.f32.mxu0 %v4076_v10  ;;  %v1354_v13 = vand.u32 3, %v1353_v32  ;;  %vm1470_vm8 = vcmp.lt.s32.totalorder %v5684_v43, 0  ;;  %v3310_v32 = vld [vmem:[#allocation5 + $0x88] sm:$0xff] }
 0x20d   :  { %v2601_v61 = vsel %vm5681_vm7, nan, %v2600_v48  ;;  %vm1365_vm11 = vcmp.le.f32.partialorder %v5682_v52, 0.7853982  ;;  %v1553_v1 = vsel %vm1470_vm8, %v1552_v49, %v5221_v17  ;;  %vm1352_vm2 = vweird.f32 %v4720_v47  ;;  %v3309_v48 = vld [vmem:[#allocation5 + $0x80] sm:$0xff]  ;;  %v3294_v52 = vld [vmem:[#allocation5 + $0x8] sm:$0xff] }
 0x20e   :  { %v1452_v62 = vsel %vm1365_vm11, %v4765_v20, %v5205_v37  ;;  %v1453_v44 = vsel %vm1365_vm11, 0, %v1451_v35  ;;  %v3874_v54 = vpop.eup %3873  ;;  %v2920_v26 = vsel %vm5094_vm10, %v1259_v34, %v2601_v61  ;;  %vm2696_vm0 = vcmp.lt.s32.totalorder %v2695_v45, 2  ;;  %v3293_v34 = vld [vmem:[#allocation5] sm:$0xff] }
 0x20f   :  { %3877 = vcosq.f32 %v1452_v62  ;;  %3087 = vmatmul.mubr.f32.gmra.mrb[18].mxu0 %v2920_v26  ;;  %v1360_v12 = vxor.u32 2147483648, %v3874_v54  ;;  %v1457_v37 = vadd.s32 3, %v1453_v44  ;;  %v1554_v27 = vsub.s32 4, %v5092_v42  ;;  %v3313_v26 = vld [vmem:[#allocation5 + $0xa0] sm:$0xff] }
 0x210   :  { %3879 = vsinq.f32 %v1452_v62  ;;  %3092 = vmatprep.mubr.f32.mxu0 %v4076_v10  ;;  %vm1359_vm14 = vcmp.eq.s32.totalorder %v1354_v13, 2  ;;  %vm2697_vm5 = vcmp.eq.s32.totalorder %v2695_v45, 0  ;;  %vm2700_vm12 = vcmp.eq.s32.totalorder %v2695_v45, 2  ;;  %v3311_v45 = vld [vmem:[#allocation5 + $0x90] sm:$0xff]  ;;  %v3312_v62 = vld [vmem:[#allocation5 + $0x98] sm:$0xff] }
 0x211   :  { %v3876_v24 = vpop.eup %3875  ;;  %v5685_v50 = vand.u32 2147483647, %v5684_v43  ;;  %v1555_v49 = vsel %vm1470_vm8, %v1554_v27, %v5092_v42  ;;  %vm1355_vm9 = vcmp.lt.s32.totalorder %v1354_v13, 2  ;;  %vm1356_vm1 = vcmp.eq.s32.totalorder %v1354_v13, 0  ;;  %v3295_v13 = vld [vmem:[#allocation5 + $0x10] sm:$0xff] }
 0x212   :  { %v1357_v2 = vxor.u32 2147483648, %v3876_v24  ;;  %v1361_v63 = vsel %vm1359_vm14, %v1360_v12, %v3876_v24  ;;  %v2702_v17 = vsel %vm2700_vm12, %v1360_v12, %v3876_v24  ;;  %v2798_v46 = vand.u32 3, %v1453_v44  ;;  %v3315_v24 = vld [vmem:[#allocation5 + $0xb0] sm:$0xff] }
 0x213   :  { %vm1469_vm13 = vcmp.le.f32.partialorder %v5685_v50, 0.7853982  ;;  %v1458_v5 = vand.u32 3, %v1457_v37  ;;  %vm1456_vm4 = vweird.f32 %v4765_v20  ;;  %v3728_v61 = vpack.c.bf16 %v3310_v32, %v3309_v48  ;;  %v3298_v37 = vld [vmem:[#allocation5 + $0x28] sm:$0xff]  ;;  %v3316_v50 = vld [vmem:[#allocation5 + $0xb8] sm:$0xff] }
 0x214   :  { %v1556_v55 = vsel %vm1469_vm13, %v5684_v43, %v1553_v1  ;;  %v1358_v19 = vsel %vm1356_vm1, %v3874_v54, %v1357_v2  ;;  %v2699_v22 = vsel %vm2697_vm5, %v3874_v54, %v1357_v2  ;;  %v1557_v58 = vsel %vm1469_vm13, 0, %v1555_v49  ;;  %v3296_v54 = vld [vmem:[#allocation5 + $0x18] sm:$0xff]  ;;  %v3297_v1 = vld [vmem:[#allocation5 + $0x20] sm:$0xff]  ;;  %v3299_v2 = vld [vmem:[#allocation5 + $0x30] sm:$0xff] }
 0x215   :  { %3881 = vcosq.f32 %v1556_v55  ;;  %v1362_v31 = vsel %vm1355_vm9, %v1358_v19, %v1361_v63  ;;  %v2703_v53 = vsel %vm2696_vm0, %v2699_v22, %v2702_v17  ;;  %v1561_v8 = vadd.s32 3, %v1557_v58  ;;  %3729 = vmatprep.subr.bf16.mxu1 %v3728_v61  ;;  %v3300_v17 = vld [vmem:[#allocation5 + $0x38] sm:$0xff]  ;;  %v3301_v19 = vld [vmem:[#allocation5 + $0x40] sm:$0xff] }
 0x216   :  { %3883 = vsinq.f32 %v1556_v55  ;;  %v1363_v38 = vsel %vm1352_vm2, nan, %v1362_v31  ;;  %v2704_v42 = vsel %vm1352_vm2, nan, %v2703_v53  ;;  %vm1463_vm3 = vcmp.eq.s32.totalorder %v1458_v5, 2  ;;  %v3318_v55 = vld [vmem:[#allocation5 + $0xc8] sm:$0xff]  ;;  %v3319_v53 = vld [vmem:[#allocation5 + $0xd0] sm:$0xff] }
 0x217   :  { %v2921_v21 = vsel %vm5094_vm10, %v1363_v38, %v2704_v42  ;;  %vm2803_vm15 = vcmp.eq.s32.totalorder %v2798_v46, 2  ;;  %vm1460_vm7 = vcmp.eq.s32.totalorder %v1458_v5, 0  ;;  %vm2800_vm11 = vcmp.eq.s32.totalorder %v2798_v46, 0  ;;  %v3303_v38 = vld [vmem:[#allocation5 + $0x50] sm:$0xff] }
 0x218   :  { %3093 = vmatmul.mubr.f32.gmra.mrb[20].mxu0 %v2921_v21  ;;  %vm1459_vm6 = vcmp.lt.s32.totalorder %v1458_v5, 2  ;;  %vm2799_vm8 = vcmp.lt.s32.totalorder %v2798_v46, 2  ;;  %v1562_v60 = vand.u32 3, %v1561_v8  ;;  %v2901_v30 = vand.u32 3, %v1557_v58  ;;  %v3317_v46 = vld [vmem:[#allocation5 + $0xc0] sm:$0xff]  ;;  %v3302_v5 = vld [vmem:[#allocation5 + $0x48] sm:$0xff] }
 0x219   :  { %v3878_v41 = vpop.eup %3877  ;;  %3098 = vmatprep.mubr.f32.mxu0 %v4076_v10  ;;  %vm1560_vm9 = vweird.f32 %v5684_v43  ;;  %v3730_v35 = vpack.c.bf16 %v3294_v52, %v3293_v34  ;;  %v3732_v44 = vpack.c.bf16 %v3312_v62, %v3311_v45  ;;  %v3734_v43 = vpack.c.bf16 %v3296_v54, %v3295_v13  ;;  %v3320_v58 = vld [vmem:[#allocation5 + $0xd8] sm:$0xff]  ;;  %v3305_v8 = vld [vmem:[#allocation5 + $0x60] sm:$0xff] }
 0x21a   :  { %v3880_v56 = vpop.eup %3879  ;;  %v1464_v7 = vxor.u32 2147483648, %v3878_v41  ;;  %vm1567_vm2 = vcmp.eq.s32.totalorder %v1562_v60, 2  ;;  %vm2906_vm0 = vcmp.eq.s32.totalorder %v2901_v30, 2  ;;  %vm1564_vm14 = vcmp.eq.s32.totalorder %v1562_v60, 0 }
 0x21b   :  { %v1461_v9 = vxor.u32 2147483648, %v3880_v56  ;;  %vm2903_vm5 = vcmp.eq.s32.totalorder %v2901_v30, 0  ;;  %vm1563_vm12 = vcmp.lt.s32.totalorder %v1562_v60, 2  ;;  %vm2902_vm13 = vcmp.lt.s32.totalorder %v2901_v30, 2  ;;  %3731 = vmatpush3.bf16.msra.mxu1 %v3730_v35  ;;  %v3308_v60 = vld [vmem:[#allocation5 + $0x78] sm:$0xff] }
 0x21c   :  { %v1465_v11 = vsel %vm1463_vm3, %v1464_v7, %v3880_v56  ;;  %v2805_v47 = vsel %vm2803_vm15, %v1464_v7, %v3880_v56  ;;  %3733 = vmatprep.subr.bf16.mxu1 %v3732_v44  ;;  %v3736_v12 = vpack.c.bf16 %v3314_v39, %v3313_v26  ;;  %v3738_v27 = vpack.c.bf16 %v3298_v37, %v3297_v1  ;;  %v3321_v56 = vld [vmem:[#allocation5 + $0xe0] sm:$0xff]  ;;  %v3322_v7 = vld [vmem:[#allocation5 + $0xe8] sm:$0xff] }
 0x21d   :  { %v1462_v4 = vsel %vm1460_vm7, %v3878_v41, %v1461_v9  ;;  %v2802_v18 = vsel %vm2800_vm11, %v3878_v41, %v1461_v9  ;;  %v3740_v63 = vpack.c.bf16 %v3316_v50, %v3315_v24  ;;  %v3742_v49 = vpack.c.bf16 %v3300_v17, %v3299_v2  ;;  %v3304_v41 = vld [vmem:[#allocation5 + $0x58] sm:$0xff] }
 0x21e   :  { %v1466_v28 = vsel %vm1459_vm6, %v1462_v4, %v1465_v11  ;;  %v2806_v14 = vsel %vm2799_vm8, %v2802_v18, %v2805_v47  ;;  %v3744_v22 = vpack.c.bf16 %v3318_v55, %v3317_v46  ;;  %v3746_v31 = vpack.c.bf16 %v3302_v5, %v3301_v19  ;;  %v3306_v11 = vld [vmem:[#allocation5 + $0x68] sm:$0xff]  ;;  %v3323_v4 = vld [vmem:[#allocation5 + $0xf0] sm:$0xff]  ;;  %v3324_v18 = vld [vmem:[#allocation5 + $0xf8] sm:$0xff] }
 0x21f   :  { %v1467_v57 = vsel %vm1456_vm4, nan, %v1466_v28  ;;  %v2807_v59 = vsel %vm1456_vm4, nan, %v2806_v14  ;;  %v3882_v29 = vpop.eup %3881  ;;  %3735 = vmatpush3.bf16.msra.mxu1 %v3734_v43  ;;  %v3748_v42 = vpack.c.bf16 %v3320_v58, %v3319_v53  ;;  %v3750_v21 = vpack.c.bf16 %v3304_v41, %v3303_v38  ;;  %v3307_v28 = vld [vmem:[#allocation5 + $0x70] sm:$0xff] }
 0x220   :  { %v2922_v16 = vsel %vm5094_vm10, %v1467_v57, %v2807_v59  ;;  %v3884_v36 = vpop.eup %3883  ;;  %v1568_v3 = vxor.u32 2147483648, %v3882_v29  ;;  %3737 = vmatprep.subr.bf16.mxu1 %v3736_v12  ;;  %v3752_v9 = vpack.c.bf16 %v3322_v7, %v3321_v56  ;;  %v3754_v47 = vpack.c.bf16 %v3306_v11, %v3305_v8 }
 0x221   :  { %3099 = vmatmul.mubr.f32.gmra.mrb[22].mxu0 %v2922_v16  ;;  %v1565_v40 = vxor.u32 2147483648, %v3884_v36  ;;  %v3756_v14 = vpack.c.bf16 %v3324_v18, %v3323_v4  ;;  %v3758_v30 = vpack.c.bf16 %v3308_v60, %v3307_v28  ;;  %v5686_v57 = vlaneseq  ;;  %v2956_v16 = vld [vmem:[%s5553_s3] sm:$0x3] }
 0x222   :  { %3104 = vmatprep.mubr.f32.mxu0 %v4076_v10  ;;  %v1569_v25 = vsel %vm1567_vm2, %v1568_v3, %v3884_v36  ;;  %v2908_v15 = vsel %vm2906_vm0, %v1568_v3, %v3884_v36 }
 0x223   :  { %v1566_v0 = vsel %vm1564_vm14, %v3882_v29, %v1565_v40  ;;  %v2905_v20 = vsel %vm2903_vm5, %v3882_v29, %v1565_v40  ;;  %3739 = vmatpush3.bf16.msra.mxu1 %v3738_v27  ;;  %v2959_v59 = vshrl.u32 %v5686_v57, 7 }
 0x224   :  { %v1570_v51 = vsel %vm1563_vm12, %v1566_v0, %v1569_v25  ;;  %v2909_v23 = vsel %vm2902_vm13, %v2905_v20, %v2908_v15  ;;  %3741 = vmatprep.subr.bf16.mxu1 %v3740_v63 }
 0x225   :  { %v1571_v6 = vsel %vm1560_vm9, nan, %v1570_v51  ;;  %v2910_v33 = vsel %vm1560_vm9, nan, %v2909_v23  ;;  %v2960_v29 = vsub.s32 0, %v2959_v59  ;;  %v2964_v36 = vsub.s32 1, %v2959_v59 }
 0x226   :  { %v2923_v10 = vsel %vm5094_vm10, %v1571_v6, %v2910_v33 }
 0x227   :  { %3105 = vmatmul.mubr.f32.gmra.mrb[24].mxu0 %v2923_v10  ;;  %3743 = vmatpush3.bf16.msra.mxu1 %v3742_v49  ;;  %v5419_v3 = vrot.slane %v2956_v16, %v2960_v29  ;;  %v5421_v40 = vrot.slane %v2956_v16, %v2964_v36 }
 0x228   :  { %3745 = vmatprep.subr.bf16.mxu1 %v3744_v22 }
 0x22b   :  { %3747 = vmatpush3.bf16.msra.mxu1 %v3746_v31 }
 0x22c   :  { %3749 = vmatprep.subr.bf16.mxu1 %v3748_v42 }
 0x22f   :  { %3751 = vmatpush3.bf16.msra.mxu1 %v3750_v21 }
 0x230   :  { %3753 = vmatprep.subr.bf16.mxu1 %v3752_v9 }
 0x233   :  { %3755 = vmatpush3.bf16.msra.mxu1 %v3754_v47 }
 0x234   :  { %3757 = vmatprep.subr.bf16.mxu1 %v3756_v14 }
 0x237   :  { %3759 = vmatpush3.bf16.msra.mxu1 %v3758_v30 }
 0x29b   :  { %v3034_v25 = vpop.f32.mrb[0].mxu0 }
 0x29c   :  { %v3035_v15 = vadd.f32 %v3034_v25, %v5419_v3  ;;  %v3036_v0 = vpop.f32.mrb[1].mxu0 }
 0x29d   :  { %v3037_v20 = vadd.f32 %v3036_v0, %v5421_v40 }
 0x29e   :  { %v3598_v51 = vmul.f32 -1.442695, %v3035_v15 }
 0x29f   :  { %v3599_v23 = vmul.f32 -1.442695, %v3037_v20 }
 0x2a0   :  { %3885 = vpow2.f32 %v3598_v51 }
 0x2a1   :  { %3887 = vpow2.f32 %v3599_v23  ;;  %v3040_v6 = vpop.f32.mrb[2].mxu0 }
 0x2a2   :  { %v3041_v33 = vadd.f32 %v3040_v6, %v5419_v3  ;;  %v3042_v10 = vpop.f32.mrb[3].mxu0 }
 0x2a3   :  { %v3043_v48 = vadd.f32 %v3042_v10, %v5421_v40 }
 0x2a4   :  { %v3600_v32 = vmul.f32 -1.442695, %v3041_v33 }
 0x2a5   :  { %v3601_v34 = vmul.f32 -1.442695, %v3043_v48 }
 0x2a6   :  { %3889 = vpow2.f32 %v3600_v32 }
 0x2a7   :  { %3891 = vpow2.f32 %v3601_v34 }
 0x2aa   :  { %v3886_v61 = vpop.eup %3885 }
 0x2ab   :  { %v3888_v52 = vpop.eup %3887  ;;  %v3189_v35 = vadd.f32 1.0, %v3886_v61 }
 0x2ac   :  { %v3190_v62 = vadd.f32 1.0, %v3888_v52 }
 0x2ad   :  { %v3046_v45 = vpop.f32.mrb[4].mxu0  ;;  %3893 = vrcp.f32 %v3189_v35 }
 0x2ae   :  { %v5428_v13 = vadd.f32 %v3046_v45, %v5419_v3  ;;  %v3048_v44 = vpop.f32.mrb[5].mxu0  ;;  %3895 = vrcp.f32 %v3190_v62 }
 0x2af   :  { %v3049_v54 = vadd.f32 %v3048_v44, %v5421_v40 }
 0x2b0   :  { %v3602_v43 = vmul.f32 -1.442695, %v5428_v13  ;;  %v3890_v39 = vpop.eup %3889 }
 0x2b1   :  { %v3603_v26 = vmul.f32 -1.442695, %v3049_v54  ;;  %v3892_v1 = vpop.eup %3891  ;;  %v3191_v12 = vadd.f32 1.0, %v3890_v39 }
 0x2b2   :  { %3897 = vpow2.f32 %v3602_v43  ;;  %v3192_v37 = vadd.f32 1.0, %v3892_v1 }
 0x2b3   :  { %3899 = vpow2.f32 %v3603_v26 }
 0x2b4   :  { %3901 = vrcp.f32 %v3191_v12 }
 0x2b5   :  { %3903 = vrcp.f32 %v3192_v37 }
 0x2b6   :  { %v3052_v27 = vpop.f32.mrb[6].mxu0 }
 0x2b7   :  { %v5433_v24 = vadd.f32 %v3052_v27, %v5419_v3  ;;  %v3054_v50 = vpop.f32.mrb[7].mxu0  ;;  %v3894_v63 = vpop.eup %3893 }
 0x2b8   :  { %v5436_v2 = vadd.f32 %v3054_v50, %v5421_v40  ;;  %v3896_v49 = vpop.eup %3895  ;;  %v3267_v22 = vmul.f32 %v3894_v63, %v3035_v15 }
 0x2b9   :  { %v3604_v17 = vmul.f32 -1.442695, %v5433_v24  ;;  %v3268_v55 = vmul.f32 %v3896_v49, %v3037_v20 }
 0x2ba   :  { %v3605_v46 = vmul.f32 -1.442695, %v5436_v2 }
 0x2bb   :  { %3905 = vpow2.f32 %v3604_v17  ;;  %3396 = vmatprep.mubr.f32.mxu1 %v3268_v55 }
 0x2bc   :  { %v3898_v19 = vpop.eup %3897  ;;  %3907 = vpow2.f32 %v3605_v46  ;;  %3397 = vmatmul.mubr.f32.vlgmr.msra.gmra.mrb[0].mxu1 %v3267_v22 }
 0x2bd   :  { %v3900_v5 = vpop.eup %3899  ;;  %v3193_v31 = vadd.f32 1.0, %v3898_v19 }
 0x2be   :  { %v3194_v53 = vadd.f32 1.0, %v3900_v5  ;;  %v3902_v58 = vpop.eup %3901 }
 0x2bf   :  { %3909 = vrcp.f32 %v3193_v31  ;;  %v3904_v42 = vpop.eup %3903  ;;  %v3269_v8 = vmul.f32 %v3902_v58, %v3041_v33 }
 0x2c0   :  { %v3058_v38 = vpop.f32.mrb[8].mxu0  ;;  %3911 = vrcp.f32 %v3194_v53  ;;  %v3270_v56 = vmul.f32 %v3904_v42, %v3043_v48 }
 0x2c1   :  { %v5441_v41 = vadd.f32 %v3058_v38, %v5419_v3  ;;  %v3060_v21 = vpop.f32.mrb[9].mxu0 }
 0x2c2   :  { %v5444_v7 = vadd.f32 %v3060_v21, %v5421_v40  ;;  %3401 = vmatprep.mubr.f32.mxu1 %v3270_v56 }
 0x2c3   :  { %v3606_v9 = vmul.f32 -1.442695, %v5441_v41  ;;  %3402 = vmatmul.mubr.f32.gmra.mrb[2].mxu1 %v3269_v8 }
 0x2c4   :  { %v3607_v11 = vmul.f32 -1.442695, %v5444_v7 }
 0x2c5   :  { %3913 = vpow2.f32 %v3606_v9  ;;  %v3906_v47 = vpop.eup %3905 }
 0x2c6   :  { %3915 = vpow2.f32 %v3607_v11  ;;  %v3908_v4 = vpop.eup %3907  ;;  %v3195_v18 = vadd.f32 1.0, %v3906_v47 }
 0x2c7   :  { %v3064_v28 = vpop.f32.mrb[10].mxu0  ;;  %v3196_v14 = vadd.f32 1.0, %v3908_v4 }
 0x2c8   :  { %v5449_v60 = vadd.f32 %v3064_v28, %v5419_v3  ;;  %v3066_v30 = vpop.f32.mrb[11].mxu0  ;;  %3917 = vrcp.f32 %v3195_v18 }
 0x2c9   :  { %v5452_v57 = vadd.f32 %v3066_v30, %v5421_v40  ;;  %v3910_v59 = vpop.eup %3909  ;;  %3919 = vrcp.f32 %v3196_v14 }
 0x2ca   :  { %v3608_v29 = vmul.f32 -1.442695, %v5449_v60  ;;  %v3912_v16 = vpop.eup %3911  ;;  %v3271_v51 = vmul.f32 %v3910_v59, %v5428_v13 }
 0x2cb   :  { %v3609_v36 = vmul.f32 -1.442695, %v5452_v57  ;;  %v3272_v15 = vmul.f32 %v3912_v16, %v3049_v54 }
 0x2cc   :  { %v3070_v25 = vpop.f32.mrb[12].mxu0  ;;  %3921 = vpow2.f32 %v3608_v29 }
 0x2cd   :  { %v5457_v0 = vadd.f32 %v3070_v25, %v5419_v3  ;;  %v3072_v20 = vpop.f32.mrb[13].mxu0  ;;  %3923 = vpow2.f32 %v3609_v36  ;;  %3406 = vmatprep.mubr.f32.mxu1 %v3272_v15 }
 0x2ce   :  { %v5461_v23 = vadd.f32 %v3072_v20, %v5421_v40  ;;  %3407 = vmatmul.mubr.f32.gmra.mrb[4].mxu1 %v3271_v51 }
 0x2cf   :  { %v3610_v6 = vmul.f32 -1.442695, %v5457_v0  ;;  %v3914_v33 = vpop.eup %3913 }
 0x2d0   :  { %v3611_v10 = vmul.f32 -1.442695, %v5461_v23  ;;  %v3916_v48 = vpop.eup %3915  ;;  %v3197_v32 = vadd.f32 1.0, %v3914_v33 }
 0x2d1   :  { %3925 = vpow2.f32 %v3610_v6  ;;  %v3198_v34 = vadd.f32 1.0, %v3916_v48 }
 0x2d2   :  { %3927 = vpow2.f32 %v3611_v10  ;;  %v3918_v61 = vpop.eup %3917 }
 0x2d3   :  { %3929 = vrcp.f32 %v3197_v32  ;;  %v3920_v35 = vpop.eup %3919  ;;  %v3273_v43 = vmul.f32 %v3918_v61, %v5433_v24 }
 0x2d4   :  { %3931 = vrcp.f32 %v3198_v34  ;;  %v3274_v13 = vmul.f32 %v3920_v35, %v5436_v2 }
 0x2d5   :  { %v3076_v52 = vpop.f32.mrb[14].mxu0 }
 0x2d6   :  { %v5466_v45 = vadd.f32 %v3076_v52, %v5419_v3  ;;  %v3078_v62 = vpop.f32.mrb[15].mxu0  ;;  %v3922_v54 = vpop.eup %3921  ;;  %3411 = vmatprep.mubr.f32.mxu1 %v3274_v13 }
 0x2d7   :  { %v5470_v44 = vadd.f32 %v3078_v62, %v5421_v40  ;;  %v3924_v39 = vpop.eup %3923  ;;  %v3199_v1 = vadd.f32 1.0, %v3922_v54  ;;  %3412 = vmatmul.mubr.f32.gmra.mrb[6].mxu1 %v3273_v43 }
 0x2d8   :  { %v3612_v26 = vmul.f32 -1.442695, %v5466_v45  ;;  %v3200_v37 = vadd.f32 1.0, %v3924_v39 }
 0x2d9   :  { %v3613_v12 = vmul.f32 -1.442695, %v5470_v44 }
 0x2da   :  { %3933 = vpow2.f32 %v3612_v26 }
 0x2db   :  { %3935 = vrcp.f32 %v3199_v1  ;;  %v3926_v27 = vpop.eup %3925 }
 0x2dc   :  { %3937 = vrcp.f32 %v3200_v37  ;;  %v3928_v50 = vpop.eup %3927  ;;  %v3201_v2 = vadd.f32 1.0, %v3926_v27 }
 0x2dd   :  { %3939 = vpow2.f32 %v3613_v12  ;;  %v3930_v63 = vpop.eup %3929  ;;  %v3202_v17 = vadd.f32 1.0, %v3928_v50 }
 0x2de   :  { %v3082_v49 = vpop.f32.mrb[16].mxu0  ;;  %v3932_v24 = vpop.eup %3931  ;;  %3941 = vrcp.f32 %v3201_v2  ;;  %v3275_v5 = vmul.f32 %v3930_v63, %v5441_v41 }
 0x2df   :  { %v5476_v46 = vadd.f32 %v3082_v49, %v5419_v3  ;;  %v3084_v55 = vpop.f32.mrb[17].mxu0  ;;  %v3276_v19 = vmul.f32 %v3932_v24, %v5444_v7  ;;  %3943 = vrcp.f32 %v3202_v17 }
 0x2e0   :  { %v5480_v22 = vadd.f32 %v3084_v55, %v5421_v40 }
 0x2e1   :  { %v3614_v31 = vmul.f32 -1.442695, %v5476_v46  ;;  %3416 = vmatprep.mubr.f32.mxu1 %v3276_v19 }
 0x2e2   :  { %v3615_v53 = vmul.f32 -1.442695, %v5480_v22  ;;  %v3088_v58 = vpop.f32.mrb[18].mxu0  ;;  %3417 = vmatmul.mubr.f32.gmra.mrb[8].mxu1 %v3275_v5 }
 0x2e3   :  { %3945 = vpow2.f32 %v3614_v31  ;;  %v5486_v38 = vadd.f32 %v3088_v58, %v5419_v3  ;;  %v3090_v42 = vpop.f32.mrb[19].mxu0 }
 0x2e4   :  { %v3934_v21 = vpop.eup %3933  ;;  %3947 = vpow2.f32 %v3615_v53  ;;  %v5489_v56 = vadd.f32 %v3090_v42, %v5421_v40 }
 0x2e5   :  { %v3936_v7 = vpop.eup %3935  ;;  %v3203_v8 = vadd.f32 1.0, %v3934_v21  ;;  %v3616_v41 = vmul.f32 -1.442695, %v5486_v38 }
 0x2e6   :  { %v3938_v9 = vpop.eup %3937  ;;  %v3617_v11 = vmul.f32 -1.442695, %v5489_v56  ;;  %v3277_v18 = vmul.f32 %v3936_v7, %v5449_v60 }
 0x2e7   :  { %v3940_v47 = vpop.eup %3939  ;;  %v3278_v4 = vmul.f32 %v3938_v9, %v5452_v57  ;;  %3949 = vrcp.f32 %v3203_v8 }
 0x2e8   :  { %v3204_v28 = vadd.f32 1.0, %v3940_v47  ;;  %3951 = vpow2.f32 %v3616_v41  ;;  %v3942_v14 = vpop.eup %3941 }
 0x2e9   :  { %3953 = vpow2.f32 %v3617_v11  ;;  %3421 = vmatprep.mubr.f32.mxu1 %v3278_v4  ;;  %v3944_v30 = vpop.eup %3943  ;;  %v3279_v16 = vmul.f32 %v3942_v14, %v5457_v0 }
 0x2ea   :  { %3955 = vrcp.f32 %v3204_v28  ;;  %3422 = vmatmul.mubr.f32.gmra.mrb[10].mxu1 %v3277_v18  ;;  %v3280_v59 = vmul.f32 %v3944_v30, %v5461_v23 }
 0x2eb   :  { %v3094_v29 = vpop.f32.mrb[20].mxu0 }
 0x2ec   :  { %v5498_v36 = vadd.f32 %v3094_v29, %v5419_v3  ;;  %v3096_v57 = vpop.f32.mrb[21].mxu0  ;;  %3426 = vmatprep.mubr.f32.mxu1 %v3280_v59  ;;  %v5520_v29 = vld [vmem:[%s5555_s5] ss:$0 sm:$0xff]  ;;  %s4077_s5 = smov [#allocation7]  }
 0x2ed   :  { %v3946_v25 = vpop.eup %3945  ;;  %v5501_v60 = vadd.f32 %v3096_v57, %v5421_v40  ;;  %s3480_s30 = sshll.u32 %s4077_s5, 4  ;;  %s3481_s30 = int_to_ptr.vmem [resolvable:$true] %s3480_s30 }
 0x2ee   :  { %v3948_v15 = vpop.eup %3947  ;;  %v3205_v20 = vadd.f32 1.0, %v3946_v25  ;;  %v3618_v51 = vmul.f32 -1.442695, %v5498_v36  ;;  %3427 = vmatmul.mubr.f32.gmra.mrb[12].mxu1 %v3279_v16  ;;  %s4034_s7 = scalar_lea.vmem %s3481_s30, 1664  ;;  %p4039_p3 = scmp.lt.s32.totalorder %s3481_s30, %s3481_s30 }
 0x2ef   :  { %v3206_v6 = vadd.f32 1.0, %v3948_v15  ;;  %v3619_v23 = vmul.f32 -1.442695, %v5501_v60  ;;  %p4035_p2 = scmp.ne.s32.totalorder %s3481_s30, %s4034_s7  ;;  %p4040_p4 = scmp.lt.s32.totalorder %s4034_s7, %s4034_s7 }
 0x2f0   :  { %3957 = vrcp.f32 %v3205_v20 }
 0x2f1   :  { %v3950_v33 = vpop.eup %3949  ;;  %3959 = vrcp.f32 %v3206_v6  ;;  %p4041_p5 = por %p4040_p4, %p4039_p3 }
 0x2f2   :  { %v3952_v0 = vpop.eup %3951  ;;  %3961 = vpow2.f32 %v3618_v51  ;;  %v3281_v43 = vmul.f32 %v3950_v33, %v5466_v45 }
 0x2f3   :  { %v3954_v48 = vpop.eup %3953  ;;  %v3207_v32 = vadd.f32 1.0, %v3952_v0  ;;  %3963 = vpow2.f32 %v3619_v23  ;;  %p4042_p6 = pnand %p4041_p5, %p4035_p2 }
 0x2f4   :  { %v3100_v10 = vpop.f32.mrb[22].mxu0  ;;  %v3956_v52 = vpop.eup %3955  ;;  %v3208_v35 = vadd.f32 1.0, %v3954_v48 }
 0x2f5   :  { %v3101_v34 = vadd.f32 %v3100_v10, %v5419_v3  ;;  %v3102_v61 = vpop.f32.mrb[23].mxu0  ;;  %v3282_v13 = vmul.f32 %v3956_v52, %v5470_v44  ;;  %3965 = vrcp.f32 %v3207_v32 }
 0x2f6   :  { %v3103_v62 = vadd.f32 %v3102_v61, %v5421_v40  ;;  %3967 = vrcp.f32 %v3208_v35 }
 0x2f7   :  { %v3620_v54 = vmul.f32 -1.442695, %v3101_v34  ;;  %3431 = vmatprep.mubr.f32.mxu1 %v3282_v13 }
 0x2f8   :  { %v3621_v26 = vmul.f32 -1.442695, %v3103_v62  ;;  %3432 = vmatmul.mubr.f32.gmra.mrb[14].mxu1 %v3281_v43 }
 0x2f9   :  { %3969 = vpow2.f32 %v3620_v54 }
 0x2fa   :  { %3971 = vpow2.f32 %v3621_v26  ;;  %v3106_v39 = vpop.f32.mrb[24].mxu0  ;;  %v3958_v1 = vpop.eup %3957 }
 0x2fb   :  { %v3107_v12 = vadd.f32 %v3106_v39, %v5419_v3  ;;  %v3108_v37 = vpop.f32.mrb[25].mxu0  ;;  %v3960_v27 = vpop.eup %3959  ;;  %v3283_v45 = vmul.f32 %v3958_v1, %v5476_v46 }
 0x2fc   :  { %v3109_v50 = vadd.f32 %v3108_v37, %v5421_v40  ;;  %v3962_v2 = vpop.eup %3961  ;;  %v3284_v44 = vmul.f32 %v3960_v27, %v5480_v22 }
 0x2fd   :  { %v3622_v63 = vmul.f32 -1.442695, %v3107_v12  ;;  %v3964_v17 = vpop.eup %3963  ;;  %v3209_v49 = vadd.f32 1.0, %v3962_v2 }
 0x2fe   :  { %v3623_v24 = vmul.f32 -1.442695, %v3109_v50  ;;  %v3210_v55 = vadd.f32 1.0, %v3964_v17  ;;  %3436 = vmatprep.mubr.f32.mxu1 %v3284_v44 }
 0x2ff   :  { %3973 = vpow2.f32 %v3622_v63  ;;  %v3966_v19 = vpop.eup %3965  ;;  %3437 = vmatmul.mubr.f32.gmra.mrb[16].mxu1 %v3283_v45 }
 0x300   :  { %3975 = vrcp.f32 %v3209_v49  ;;  %v3968_v3 = vpop.eup %3967  ;;  %v3285_v22 = vmul.f32 %v3966_v19, %v5486_v38 }
 0x301   :  { %3977 = vrcp.f32 %v3210_v55  ;;  %v3286_v40 = vmul.f32 %v3968_v3, %v5489_v56 }
 0x302   :  { %3979 = vpow2.f32 %v3623_v24 }
 0x303   :  { %v3970_v5 = vpop.eup %3969  ;;  %3441 = vmatprep.mubr.f32.mxu1 %v3286_v40 }
 0x304   :  { %v3972_v31 = vpop.eup %3971  ;;  %v3211_v53 = vadd.f32 1.0, %v3970_v5  ;;  %3442 = vmatmul.mubr.f32.gmra.mrb[18].mxu1 %v3285_v22 }
 0x305   :  { %v3212_v58 = vadd.f32 1.0, %v3972_v31 }
 0x306   :  { %3981 = vrcp.f32 %v3211_v53 }
 0x307   :  { %3983 = vrcp.f32 %v3212_v58 }
 0x309   :  { %v3974_v46 = vpop.eup %3973 }
 0x30a   :  { %v3976_v42 = vpop.eup %3975  ;;  %v3213_v21 = vadd.f32 1.0, %v3974_v46 }
 0x30b   :  { %v3978_v7 = vpop.eup %3977  ;;  %v3287_v9 = vmul.f32 %v3976_v42, %v5498_v36 }
 0x30c   :  { %v3980_v8 = vpop.eup %3979  ;;  %v3288_v41 = vmul.f32 %v3978_v7, %v5501_v60  ;;  %3985 = vrcp.f32 %v3213_v21 }
 0x30d   :  { %v3214_v56 = vadd.f32 1.0, %v3980_v8 }
 0x30e   :  { %3446 = vmatprep.mubr.f32.mxu1 %v3288_v41 }
 0x30f   :  { %3987 = vrcp.f32 %v3214_v56  ;;  %3447 = vmatmul.mubr.f32.gmra.mrb[20].mxu1 %v3287_v9 }
 0x310   :  { %v3982_v11 = vpop.eup %3981 }
 0x311   :  { %v3984_v38 = vpop.eup %3983  ;;  %v3289_v4 = vmul.f32 %v3982_v11, %v3101_v34 }
 0x312   :  { %v3290_v47 = vmul.f32 %v3984_v38, %v3103_v62 }
 0x314   :  { %3451 = vmatprep.mubr.f32.mxu1 %v3290_v47 }
 0x315   :  { %3452 = vmatmul.mubr.f32.gmra.mrb[22].mxu1 %v3289_v4 }
 0x316   :  { %v3986_v18 = vpop.eup %3985 }
 0x317   :  { %v3291_v30 = vmul.f32 %v3986_v18, %v3107_v12 }
 0x319   :  { %v3988_v28 = vpop.eup %3987 }
 0x31a   :  { %v3292_v14 = vmul.f32 %v3988_v28, %v3109_v50 }
 0x31c   :  { %3456 = vmatprep.mubr.f32.mxu1 %v3292_v14 }
 0x31d   :  { %3457 = vmatmul.mubr.f32.gmra.mrb[24].mxu1 %v3291_v30 }
 0x38f   :  { %v3657_v59 = vpop.f32.mrb[0].mxu1 }
 0x390   :  { %v3658_v16 = vpop.f32.mrb[1].mxu1 }
 0x391   :  { %v3659_v36 = vadd.f32 %v3658_v16, %v3657_v59 }
 0x393   :  { %v3399_v57 = vadd.f32 %v3659_v36, %v5520_v29 }
 0x395   :  { %3462 = vst [vmem:[#allocation7] sm:$0xff] %v3399_v57 }
 0x396   :  { %v3660_v25 = vpop.f32.mrb[2].mxu1 }
 0x397   :  { %v3661_v60 = vpop.f32.mrb[3].mxu1 }
 0x398   :  { %v3662_v15 = vadd.f32 %v3661_v60, %v3660_v25 }
 0x39a   :  { %v3404_v20 = vadd.f32 %v3662_v15, %v5520_v29 }
 0x39c   :  { %3463 = vst [vmem:[#allocation7 + $0x8] sm:$0xff] %v3404_v20 }
 0x3a1   :  { %v3663_v51 = vpop.f32.mrb[4].mxu1 }
 0x3a2   :  { %v3664_v6 = vpop.f32.mrb[5].mxu1 }
 0x3a3   :  { %v3665_v23 = vadd.f32 %v3664_v6, %v3663_v51 }
 0x3a5   :  { %v3409_v33 = vadd.f32 %v3665_v23, %v5520_v29 }
 0x3a7   :  { %3464 = vst [vmem:[#allocation7 + $0x10] sm:$0xff] %v3409_v33 }
 0x3aa   :  { %v3666_v0 = vpop.f32.mrb[6].mxu1 }
 0x3ab   :  { %v3667_v10 = vpop.f32.mrb[7].mxu1 }
 0x3ac   :  { %v3668_v48 = vadd.f32 %v3667_v10, %v3666_v0 }
 0x3ae   :  { %v3414_v32 = vadd.f32 %v3668_v48, %v5520_v29 }
 0x3b0   :  { %3465 = vst [vmem:[#allocation7 + $0x18] sm:$0xff] %v3414_v32 }
 0x3b5   :  { %v3669_v34 = vpop.f32.mrb[8].mxu1 }
 0x3b6   :  { %v3670_v61 = vpop.f32.mrb[9].mxu1 }
 0x3b7   :  { %v3671_v52 = vadd.f32 %v3670_v61, %v3669_v34 }
 0x3b9   :  { %v3419_v35 = vadd.f32 %v3671_v52, %v5520_v29 }
 0x3bb   :  { %3466 = vst [vmem:[#allocation7 + $0x20] sm:$0xff] %v3419_v35 }
 0x3bd   :  { %v3672_v62 = vpop.f32.mrb[10].mxu1 }
 0x3be   :  { %v3673_v13 = vpop.f32.mrb[11].mxu1 }
 0x3bf   :  { %v3674_v54 = vadd.f32 %v3673_v13, %v3672_v62 }
 0x3c1   :  { %v3424_v43 = vadd.f32 %v3674_v54, %v5520_v29  ;;  %v3675_v26 = vpop.f32.mrb[12].mxu1 }
 0x3c2   :  { %v3676_v39 = vpop.f32.mrb[13].mxu1 }
 0x3c3   :  { %3467 = vst [vmem:[#allocation7 + $0x28] sm:$0xff] %v3424_v43  ;;  %v3677_v1 = vadd.f32 %v3676_v39, %v3675_v26 }
 0x3c5   :  { %v3429_v12 = vadd.f32 %v3677_v1, %v5520_v29 }
 0x3c7   :  { %3468 = vst [vmem:[#allocation7 + $0x30] sm:$0xff] %v3429_v12 }
 0x3cb   :  { %v3678_v37 = vpop.f32.mrb[14].mxu1 }
 0x3cc   :  { %v3679_v27 = vpop.f32.mrb[15].mxu1 }
 0x3cd   :  { %v3680_v50 = vadd.f32 %v3679_v27, %v3678_v37 }
 0x3cf   :  { %v3434_v2 = vadd.f32 %v3680_v50, %v5520_v29 }
 0x3d1   :  { %3469 = vst [vmem:[#allocation7 + $0x38] sm:$0xff] %v3434_v2 }
 0x3d2   :  { %v3681_v44 = vpop.f32.mrb[16].mxu1 }
 0x3d3   :  { %v3682_v63 = vpop.f32.mrb[17].mxu1 }
 0x3d4   :  { %v3683_v17 = vadd.f32 %v3682_v63, %v3681_v44 }
 0x3d6   :  { %v3439_v45 = vadd.f32 %v3683_v17, %v5520_v29 }
 0x3d7   :  { %v3684_v49 = vpop.f32.mrb[18].mxu1 }
 0x3d8   :  { %3470 = vst [vmem:[#allocation7 + $0x40] sm:$0xff] %v3439_v45  ;;  %v3685_v24 = vpop.f32.mrb[19].mxu1 }
 0x3d9   :  { %v3686_v55 = vadd.f32 %v3685_v24, %v3684_v49 }
 0x3db   :  { %v3444_v19 = vadd.f32 %v3686_v55, %v5520_v29 }
 0x3dd   :  { %3471 = vst [vmem:[#allocation7 + $0x48] sm:$0xff] %v3444_v19 }
 0x3e2   :  { %v3687_v3 = vpop.f32.mrb[20].mxu1 }
 0x3e3   :  { %v3688_v5 = vpop.f32.mrb[21].mxu1 }
 0x3e4   :  { %v3689_v40 = vadd.f32 %v3688_v5, %v3687_v3 }
 0x3e6   :  { %v3449_v31 = vadd.f32 %v3689_v40, %v5520_v29 }
 0x3e8   :  { %v3690_v22 = vpop.f32.mrb[22].mxu1  ;;  %3472 = vst [vmem:[#allocation7 + $0x50] sm:$0xff] %v3449_v31 }
 0x3e9   :  { %v3691_v53 = vpop.f32.mrb[23].mxu1 }
 0x3ea   :  { %v3692_v58 = vadd.f32 %v3691_v53, %v3690_v22 }
 0x3ec   :  { %v3454_v46 = vadd.f32 %v3692_v58, %v5520_v29 }
 0x3ee   :  { %3473 = vst [vmem:[#allocation7 + $0x58] sm:$0xff] %v3454_v46 }
 0x3f0   :  { %v3693_v42 = vpop.f32.mrb[24].mxu1 }
 0x3f1   :  { %v3694_v21 = vpop.f32.mrb[25].mxu1 }
 0x3f2   :  { %v3695_v7 = vadd.f32 %v3694_v21, %v3693_v42 }
 0x3f4   :  { %v3459_v8 = vadd.f32 %v3695_v7, %v5520_v29 }
 0x3f6   :  { %3474 = vst [vmem:[#allocation7 + $0x60] sm:$0xff] %v3459_v8 }
 0x3f7   :  { %4045 = shalt.err (!%p4042_p6)
}
 0x3f8   :  { %s4046_s10 = scalar_lea.hbm %s5556_s6, 1664 }
 0x3f9   :  { %p4047_p7 = scmp.ne.s32.totalorder %s5556_s6, %s4046_s10  ;;  %p4050_p8 = scmp.lt.u32.totalorder %s4046_s10, %s5556_s6 }
 0x3fb   :  { %p4052_p9 = pnand %p4050_p8, %p4047_p7 }
 0x3fd   :  { %4055 = shalt.err (!%p4052_p9)
}
 0x3fe   :  { %3486 = dma.vmem_to_hbm [thread:$0]  %s3481_s30, 1664, %s5556_s6, [#allocation4], %s4066_s2, %s4066_s2, %s4067_s21  }
 0x3ff   :  { %4060 = dma.done.wait [#allocation4], 1664  }
 0x400   :  { %4061 = vsyncadd [#allocation4], 4294965632 }
 0x401   :  { %3490 = vsyncpa [#allocation3], 1 }
 0x402   :  { %3491 = vsyncpa [#allocation6], 1 }
 0x403   :  { %3492 = vsyncpa [#allocation4], 1 }

</bundles_post_ra>
